<compile_context>
chip_gen: v5e
topology: v5e:2x2
jax: 0.10.0
libtpu: 0.0.40
codegen_flags: <defaults>
</compile_context>

<pallas_src>
from functools import partial

import jax
import jax.numpy as jnp
from jax import lax
from jax.experimental import pallas as pl
from jax.experimental.pallas import tpu as pltpu

STEP = 0.1
T0, T1 = 0.0, 1.0
NUM_STEPS = int(round((T1 - T0) / STEP))  # 10 Euler steps


def _round_up_128(n):
    return ((n + 127) // 128) * 128


# ----------------------------- kernel -----------------------------
def _ode_block_kernel(x_ref, B1_ref, b1_ref, B2_ref, b2_ref, o_ref,
                      xs_ref, ys_ref):
    """One batch block: 10 unrolled Euler steps of f(x)=conv3x3(relu(conv3x3(x))).

    x_ref : (1, H, L)       input state, lane axis = (pair, W, C) padded to L (128k)
    B1_ref: (3*L, Lm)       conv1 K-stacked banded weights (ky bands stacked on K)
    b1_ref: (1, Lm)         conv1 bias tiled along (pair, W), zero in lane padding
    B2_ref: (3*Lm, L)       conv2 K-stacked banded weights, pre-scaled by STEP
    b2_ref: (1, L)          conv2 bias, pre-scaled by STEP
    o_ref : (1, H, L)       state at t=1
    xs_ref: (H, 3*L)  VMEM  resident K-stacked Euler state (3 row-shifted copies)
    ys_ref: (H, 3*Lm) VMEM  K-stacked conv1 activation
    """
    H = x_ref.shape[1]
    L = x_ref.shape[2]
    Lm = b1_ref.shape[1]

    # Zero the stacked slabs once: establishes the constant-zero halo rows
    # (ky=0 band row 0, ky=2 band row H-1) that the Euler loop never rewrites,
    # and zeros any lane padding.
    xs_ref[...] = jnp.zeros_like(xs_ref)
    ys_ref[...] = jnp.zeros_like(ys_ref)

    # Hoisted bias broadcasts (JAX does not CSE broadcast_in_dim).
    b1_full = jnp.broadcast_to(b1_ref[...], (H, Lm))
    b2_full = jnp.broadcast_to(b2_ref[...], (H, L))   # STEP already folded in

    def write_stacked(dst_ref, v, w):
        # Stage v (H rows of new state / activation) as the K-stacked conv LHS:
        #   dst[:,   0:w][h] = v[h-1]   (ky=0 band; row 0 stays zero)
        #   dst[:,  w:2w][h] = v[h]     (ky=1 band)
        #   dst[:, 2w:3w][h] = v[h+1]   (ky=2 band; row H-1 stays zero)
        # All lane offsets are multiples of 128 -> full-lane, unmasked-width stores.
        dst_ref[:, w:2 * w] = v
        dst_ref[1:H, 0:w] = v[0:H - 1, :]
        dst_ref[0:H - 1, 2 * w:3 * w] = v[1:H, :]

    write_stacked(xs_ref, x_ref[0], L)

    # Fully unrolled 10-step explicit Euler integration (static trip count).
    for _ in range(NUM_STEPS):
        # conv1 + bias + relu : single MXU contraction, K = 3*L.
        y = jnp.dot(xs_ref[...], B1_ref[...],
                    preferred_element_type=jnp.float32) + b1_full
        write_stacked(ys_ref, jnp.maximum(y, 0.0), Lm)
        # STEP * (conv2 + bias) : STEP pre-folded into B2 / b2.
        f = jnp.dot(ys_ref[...], B2_ref[...],
                    preferred_element_type=jnp.float32) + b2_full
        write_stacked(xs_ref, xs_ref[:, L:2 * L] + f, L)

    o_ref[0] = xs_ref[:, L:2 * L]


# ----------------------- weight preparation -----------------------
def _build_banded_weights(w_hwio, w_dim):
    """Fold the 3 W-taps + channel mixing of a 3x3 HWIO conv into banded matrices.

    Returns a list of 3 matrices (one per kernel row ky), each (W*Cin, W*Cout) with
    B[ky][w_in*Cin + ci, w*Cout + co] = w_hwio[ky, w_in - w + 1, ci, co] when
    |w_in - w| <= 1, zero elsewhere -- SAME zero-padding along W is implicit.
    """
    kh, kw, cin, cout = w_hwio.shape
    mats = []
    for ky in range(kh):
        b = jnp.zeros((w_dim * cin, w_dim * cout), jnp.float32)
        for kx in range(kw):
            off = kx - 1  # input column = output column + off
            shift = jnp.eye(w_dim, k=-off, dtype=jnp.float32)   # shift[w_in, w]
            b = b + jnp.kron(shift, w_hwio[ky, kx].astype(jnp.float32))
        mats.append(b)
    return mats


def _prep_conv(w_hwio, bias, width, group, lin_pad, lout_pad, scale):
    """Build the K-stacked, pair-block-diagonal, lane-padded banded weights + bias."""
    cin, cout = w_hwio.shape[2], w_hwio.shape[3]
    mats = _build_banded_weights(w_hwio, width)
    eye_g = jnp.eye(group, dtype=jnp.float32)
    stacked = []
    for ky in range(3):
        m = jnp.kron(eye_g, mats[ky]) * scale        # (group*W*cin, group*W*cout)
        m = jnp.pad(m, ((0, lin_pad - group * width * cin),
                        (0, lout_pad - group * width * cout)))
        stacked.append(m)
    B = jnp.concatenate(stacked, axis=0)             # (3*lin_pad, lout_pad)
    brow = jnp.tile(bias.astype(jnp.float32) * scale, group * width)
    brow = jnp.pad(brow, (0, lout_pad - group * width * cout)).reshape(1, lout_pad)
    return B, brow


def build_ode_block_params(w1_hwio, b1, w2_hwio, b2, *, width, batch):
    """Precompute banded weights ONCE (weights are static; keep the kron/eye build
    and STEP folding off the per-call forward path)."""
    cin, cmid = w1_hwio.shape[2], w1_hwio.shape[3]
    # Pack 2 batch elements per grid step only when that still leaves >=2 grid
    # points (keeps both v7x TensorCores busy at N == 2; strict win on v5e/v6e
    # and on v7x once N >= 4).
    group = 2 if (batch % 2 == 0 and batch >= 4) else 1
    L = _round_up_128(group * width * cin)
    Lm = _round_up_128(group * width * cmid)
    B1, b1r = _prep_conv(w1_hwio, b1, width, group, L, Lm, scale=1.0)
    B2, b2r = _prep_conv(w2_hwio, b2, width, group, Lm, L, scale=STEP)  # fold STEP
    # TODO(synk): banded-weight footprint is O(W^2 * Cin * Cout); for large W tile
    # the band along W (or switch to per-kx matmuls + pltpu.roll) before v7x's
    # 64 MiB VMEM becomes the limit.
    assert 4 * (B1.size + B2.size) < 16 * 1024 * 1024, "banded weights too large"
    return group, B1, b1r, B2, b2r


# ----------------------------- forward -----------------------------
@partial(jax.jit, static_argnames=("group",))
def ode_block_forward(x_nchw, B1, b1r, B2, b2r, *, group):
    """ODEBlock.forward. x_nchw: (N, C, H, W) float32. Returns (N, C, H, W)."""
    N, C, H, W = x_nchw.shape
    L = B1.shape[0] // 3
    Lm = B1.shape[1]
    NB = N // group
    gwc = group * W * C

    # NCHW -> NHWC -> pack `group` batch elements along lanes -> pad lanes to L.
    x = jnp.transpose(x_nchw, (0, 2, 3, 1)).astype(jnp.float32).reshape(N, H, W * C)
    x = x.reshape(NB, group, H, W * C).transpose(0, 2, 1, 3).reshape(NB, H, gwc)
    x = jnp.pad(x, ((0, 0), (0, 0), (0, L - gwc)))

    flops = NB * NUM_STEPS * (2 * H * (3 * L) * Lm + 2 * H * (3 * Lm) * L)
    bytes_accessed = 4 * (2 * NB * H * L + 3 * L * Lm + 3 * Lm * L + L + Lm)

    out = pl.pallas_call(
        _ode_block_kernel,
        out_shape=jax.ShapeDtypeStruct((NB, H, L), jnp.float32),
        grid=(NB,),
        in_specs=[
            pl.BlockSpec((1, H, L), lambda n: (n, 0, 0)),
            pl.BlockSpec((3 * L, Lm), lambda n: (0, 0)),
            pl.BlockSpec((1, Lm), lambda n: (0, 0)),
            pl.BlockSpec((3 * Lm, L), lambda n: (0, 0)),
            pl.BlockSpec((1, L), lambda n: (0, 0)),
        ],
        out_specs=pl.BlockSpec((1, H, L), lambda n: (n, 0, 0)),
        scratch_shapes=[
            pltpu.VMEM((H, 3 * L), jnp.float32),
            pltpu.VMEM((H, 3 * Lm), jnp.float32),
        ],
        compiler_params=pltpu.CompilerParams(
            dimension_semantics=("parallel",),     # batch blocks -> both v7x TCs
            vmem_limit_bytes=32 * 1024 * 1024,
        ),
        cost_estimate=pl.CostEstimate(
            flops=flops, transcendentals=0, bytes_accessed=bytes_accessed),
    )(x, B1, b1r, B2, b2r)

    # Unpad lanes, unpack pairs, (NB, H, group*W*C) -> NHWC -> NCHW.
    out = out[:, :, :gwc].reshape(NB, H, group, W * C).transpose(0, 2, 1, 3)
    out = out.reshape(N, H, W, C)
    return jnp.transpose(out, (0, 3, 1, 2))


# ---------------- pure-JAX reference for validation ----------------
def _odefunc_ref(x_nhwc, w1, b1, w2, b2):
    dn = ('NHWC', 'HWIO', 'NHWC')
    y = lax.conv_general_dilated(x_nhwc, w1, (1, 1), 'SAME',
                                 dimension_numbers=dn) + b1
    y = jnp.maximum(y, 0.0)
    y = lax.conv_general_dilated(y, w2, (1, 1), 'SAME',
                                 dimension_numbers=dn) + b2
    return y


def ode_block_ref(x_nchw, w1, b1, w2, b2):
    x = jnp.transpose(x_nchw, (0, 2, 3, 1)).astype(jnp.float32)
    for _ in range(NUM_STEPS):
        x = x + STEP * _odefunc_ref(x, w1, b1, w2, b2)
    return jnp.transpose(x, (0, 3, 1, 2))


if __name__ == "__main__":
    key = jax.random.PRNGKey(0)
    kx, k1, k2, k3, k4, kx4 = jax.random.split(key, 6)

    # Small shapes consistent with an image-state ODE: NCHW = (2, 4, 16, 16)
    N, C, H, W = 2, 4, 16, 16
    Cmid = 8

    x = jax.random.normal(kx, (N, C, H, W), jnp.float32)
    # Deterministic synthetic parameters (scaled small so Euler stays stable).
    w1 = jax.random.normal(k1, (3, 3, C, Cmid), jnp.float32) * 0.1   # HWIO
    b1 = jax.random.normal(k2, (Cmid,), jnp.float32) * 0.01
    b2 = jax.random.normal(k4, (C,), jnp.float32) * 0.01
    w2 = jax.random.normal(k3, (3, 3, Cmid, C), jnp.float32) * 0.1   # HWIO

    # Path 1: N = 2 -> grid=(2,), one batch element per grid step (v7x TC split).
    group2, B1, b1r, B2, b2r = build_ode_block_params(w1, b1, w2, b2, width=W, batch=N)
    out = jax.block_until_ready(
        ode_block_forward(x, B1, b1r, B2, b2r, group=group2))
    ref = ode_block_ref(x, w1, b1, w2, b2)
    assert out.shape == (N, C, H, W)
    err = float(jnp.max(jnp.abs(out - ref)))
    assert jnp.allclose(out, ref, atol=2e-4, rtol=2e-4), f"max abs err {err}"

    # Path 2: N = 4 -> pairs packed along lanes (128-lane state), grid=(2,).
    N4 = 4
    x4 = jax.random.normal(kx4, (N4, C, H, W), jnp.float32)
    group4, B1p, b1p, B2p, b2p = build_ode_block_params(w1, b1, w2, b2, width=W, batch=N4)
    out4 = jax.block_until_ready(
        ode_block_forward(x4, B1p, b1p, B2p, b2p, group=group4))
    ref4 = ode_block_ref(x4, w1, b1, w2, b2)
    assert out4.shape == (N4, C, H, W)
    err4 = float(jnp.max(jnp.abs(out4 - ref4)))
    assert jnp.allclose(out4, ref4, atol=2e-4, rtol=2e-4), f"max abs err {err4}"

    print("KERNEL_OK")
</pallas_src>

<mosaic_0001>
module attributes {stable_mosaic.version = 11 : i64} {
  func.func @_ode_block_kernel(%arg0: i32, %arg1: memref<1x16x128xf32, #tpu.memory_space<vmem>>, %arg2: memref<384x128xf32, #tpu.memory_space<vmem>>, %arg3: memref<1x128xf32, #tpu.memory_space<vmem>>, %arg4: memref<384x128xf32, #tpu.memory_space<vmem>>, %arg5: memref<1x128xf32, #tpu.memory_space<vmem>>, %arg6: memref<1x16x128xf32, #tpu.memory_space<vmem>>, %arg7: memref<16x384xf32, #tpu.memory_space<vmem>>, %arg8: memref<16x384xf32, #tpu.memory_space<vmem>>) attributes {dimension_semantics = [#tpu.dimension_semantics<parallel>], iteration_bounds = array<i64: 2>, scalar_prefetch = 0 : i64, scratch_operands = 2 : i64, tpu.core_type = #tpu.core_type<tc>, window_params = [{transform_indices = @transform_0, window_bounds = array<i64: 1, 16, 128>}, {pipeline_mode = #tpu.pipeline_mode<synchronous>, transform_indices = @transform_1, window_bounds = array<i64: 384, 128>}, {pipeline_mode = #tpu.pipeline_mode<synchronous>, transform_indices = @transform_2, window_bounds = array<i64: 1, 128>}, {pipeline_mode = #tpu.pipeline_mode<synchronous>, transform_indices = @transform_3, window_bounds = array<i64: 384, 128>}, {pipeline_mode = #tpu.pipeline_mode<synchronous>, transform_indices = @transform_4, window_bounds = array<i64: 1, 128>}, {transform_indices = @transform_5, window_bounds = array<i64: 1, 16, 128>}]} {
    %cst = arith.constant 0.000000e+00 : f32
    %0 = vector.broadcast %cst : f32 to vector<16x384xf32>
    %c0 = arith.constant 0 : index
    %c0_0 = arith.constant 0 : index
    %1 = vector.load %arg7[%c0, %c0_0] : memref<16x384xf32, #tpu.memory_space<vmem>>, vector<16x384xf32>
    tpu.vector_store %arg7[%c0, %c0_0], %0 {strides = array<i32>} : memref<16x384xf32, #tpu.memory_space<vmem>>, vector<16x384xf32>,
    %cst_1 = arith.constant 0.000000e+00 : f32
    %2 = vector.broadcast %cst_1 : f32 to vector<16x384xf32>
    %c0_2 = arith.constant 0 : index
    %c0_3 = arith.constant 0 : index
    %3 = vector.load %arg8[%c0_2, %c0_3] : memref<16x384xf32, #tpu.memory_space<vmem>>, vector<16x384xf32>
    tpu.vector_store %arg8[%c0_2, %c0_3], %2 {strides = array<i32>} : memref<16x384xf32, #tpu.memory_space<vmem>>, vector<16x384xf32>,
    %c0_4 = arith.constant 0 : index
    %c0_5 = arith.constant 0 : index
    %4 = vector.load %arg3[%c0_4, %c0_5] : memref<1x128xf32, #tpu.memory_space<vmem>>, vector<1x128xf32>
    %5 = vector.shape_cast %4 : vector<1x128xf32> to vector<1x128xf32>
    %6 = vector.broadcast %5 : vector<1x128xf32> to vector<16x128xf32>
    %c0_6 = arith.constant 0 : index
    %c0_7 = arith.constant 0 : index
    %7 = vector.load %arg5[%c0_6, %c0_7] : memref<1x128xf32, #tpu.memory_space<vmem>>, vector<1x128xf32>
    %8 = vector.shape_cast %7 : vector<1x128xf32> to vector<1x128xf32>
    %9 = vector.broadcast %8 : vector<1x128xf32> to vector<16x128xf32>
    %c0_8 = arith.constant 0 : index
    %c0_9 = arith.constant 0 : index
    %c0_10 = arith.constant 0 : index
    %10 = vector.load %arg1[%c0_8, %c0_9, %c0_10] : memref<1x16x128xf32, #tpu.memory_space<vmem>>, vector<1x16x128xf32>
    %11 = vector.shape_cast %10 : vector<1x16x128xf32> to vector<16x128xf32>
    %c0_11 = arith.constant 0 : index
    %c128 = arith.constant 128 : index
    %12 = vector.load %arg7[%c0_11, %c128] : memref<16x384xf32, #tpu.memory_space<vmem>>, vector<16x128xf32>
    tpu.vector_store %arg7[%c0_11, %c128], %11 {strides = array<i32>} : memref<16x384xf32, #tpu.memory_space<vmem>>, vector<16x128xf32>,
    %13 = vector.extract_strided_slice %11 {offsets = [0, 0], sizes = [15, 128], strides = [1, 1]} : vector<16x128xf32> to vector<15x128xf32>
    %c1 = arith.constant 1 : index
    %c0_12 = arith.constant 0 : index
    %14 = vector.load %arg7[%c1, %c0_12] : memref<16x384xf32, #tpu.memory_space<vmem>>, vector<15x128xf32>
    tpu.vector_store %arg7[%c1, %c0_12], %13 {strides = array<i32>} : memref<16x384xf32, #tpu.memory_space<vmem>>, vector<15x128xf32>,
    %15 = vector.extract_strided_slice %11 {offsets = [1, 0], sizes = [15, 128], strides = [1, 1]} : vector<16x128xf32> to vector<15x128xf32>
    %c0_13 = arith.constant 0 : index
    %c256 = arith.constant 256 : index
    %16 = vector.load %arg7[%c0_13, %c256] : memref<16x384xf32, #tpu.memory_space<vmem>>, vector<15x128xf32>
    tpu.vector_store %arg7[%c0_13, %c256], %15 {strides = array<i32>} : memref<16x384xf32, #tpu.memory_space<vmem>>, vector<15x128xf32>,
    %c0_14 = arith.constant 0 : index
    %c0_15 = arith.constant 0 : index
    %17 = vector.load %arg7[%c0_14, %c0_15] : memref<16x384xf32, #tpu.memory_space<vmem>>, vector<16x384xf32>
    %c0_16 = arith.constant 0 : index
    %c0_17 = arith.constant 0 : index
    %18 = vector.load %arg2[%c0_16, %c0_17] : memref<384x128xf32, #tpu.memory_space<vmem>>, vector<384x128xf32>
    %cst_18 = arith.constant dense<0.000000e+00> : vector<16x128xf32>
    %19 = tpu.matmul %17, %18, %cst_18 {dimension_numbers = #tpu.dot_dimension_numbers<[1], [0], [0], [1], [0, 0, 1, 1], [], []>} : vector<16x384xf32>, vector<384x128xf32>, vector<16x128xf32> -> vector<16x128xf32>
    %20 = arith.addf %19, %6 : vector<16x128xf32>
    %cst_19 = arith.constant 0.000000e+00 : f32
    %21 = vector.broadcast %cst_19 : f32 to vector<16x128xf32>
    %22 = arith.maximumf %20, %21 : vector<16x128xf32>
    %c0_20 = arith.constant 0 : index
    %c128_21 = arith.constant 128 : index
    %23 = vector.load %arg8[%c0_20, %c128_21] : memref<16x384xf32, #tpu.memory_space<vmem>>, vector<16x128xf32>
    tpu.vector_store %arg8[%c0_20, %c128_21], %22 {strides = array<i32>} : memref<16x384xf32, #tpu.memory_space<vmem>>, vector<16x128xf32>,
    %24 = vector.extract_strided_slice %22 {offsets = [0, 0], sizes = [15, 128], strides = [1, 1]} : vector<16x128xf32> to vector<15x128xf32>
    %c1_22 = arith.constant 1 : index
    %c0_23 = arith.constant 0 : index
    %25 = vector.load %arg8[%c1_22, %c0_23] : memref<16x384xf32, #tpu.memory_space<vmem>>, vector<15x128xf32>
    tpu.vector_store %arg8[%c1_22, %c0_23], %24 {strides = array<i32>} : memref<16x384xf32, #tpu.memory_space<vmem>>, vector<15x128xf32>,
    %26 = vector.extract_strided_slice %22 {offsets = [1, 0], sizes = [15, 128], strides = [1, 1]} : vector<16x128xf32> to vector<15x128xf32>
    %c0_24 = arith.constant 0 : index
    %c256_25 = arith.constant 256 : index
    %27 = vector.load %arg8[%c0_24, %c256_25] : memref<16x384xf32, #tpu.memory_space<vmem>>, vector<15x128xf32>
    tpu.vector_store %arg8[%c0_24, %c256_25], %26 {strides = array<i32>} : memref<16x384xf32, #tpu.memory_space<vmem>>, vector<15x128xf32>,
    %c0_26 = arith.constant 0 : index
    %c0_27 = arith.constant 0 : index
    %28 = vector.load %arg8[%c0_26, %c0_27] : memref<16x384xf32, #tpu.memory_space<vmem>>, vector<16x384xf32>
    %c0_28 = arith.constant 0 : index
    %c0_29 = arith.constant 0 : index
    %29 = vector.load %arg4[%c0_28, %c0_29] : memref<384x128xf32, #tpu.memory_space<vmem>>, vector<384x128xf32>
    %cst_30 = arith.constant dense<0.000000e+00> : vector<16x128xf32>
    %30 = tpu.matmul %28, %29, %cst_30 {dimension_numbers = #tpu.dot_dimension_numbers<[1], [0], [0], [1], [0, 0, 1, 1], [], []>} : vector<16x384xf32>, vector<384x128xf32>, vector<16x128xf32> -> vector<16x128xf32>
    %31 = arith.addf %30, %9 : vector<16x128xf32>
    %c0_31 = arith.constant 0 : index
    %c128_32 = arith.constant 128 : index
    %32 = vector.load %arg7[%c0_31, %c128_32] : memref<16x384xf32, #tpu.memory_space<vmem>>, vector<16x128xf32>
    %33 = arith.addf %32, %31 : vector<16x128xf32>
    %c0_33 = arith.constant 0 : index
    %c128_34 = arith.constant 128 : index
    %34 = vector.load %arg7[%c0_33, %c128_34] : memref<16x384xf32, #tpu.memory_space<vmem>>, vector<16x128xf32>
    tpu.vector_store %arg7[%c0_33, %c128_34], %33 {strides = array<i32>} : memref<16x384xf32, #tpu.memory_space<vmem>>, vector<16x128xf32>,
    %35 = vector.extract_strided_slice %33 {offsets = [0, 0], sizes = [15, 128], strides = [1, 1]} : vector<16x128xf32> to vector<15x128xf32>
    %c1_35 = arith.constant 1 : index
    %c0_36 = arith.constant 0 : index
    %36 = vector.load %arg7[%c1_35, %c0_36] : memref<16x384xf32, #tpu.memory_space<vmem>>, vector<15x128xf32>
    tpu.vector_store %arg7[%c1_35, %c0_36], %35 {strides = array<i32>} : memref<16x384xf32, #tpu.memory_space<vmem>>, vector<15x128xf32>,
    %37 = vector.extract_strided_slice %33 {offsets = [1, 0], sizes = [15, 128], strides = [1, 1]} : vector<16x128xf32> to vector<15x128xf32>
    %c0_37 = arith.constant 0 : index
    %c256_38 = arith.constant 256 : index
    %38 = vector.load %arg7[%c0_37, %c256_38] : memref<16x384xf32, #tpu.memory_space<vmem>>, vector<15x128xf32>
    tpu.vector_store %arg7[%c0_37, %c256_38], %37 {strides = array<i32>} : memref<16x384xf32, #tpu.memory_space<vmem>>, vector<15x128xf32>,
    %c0_39 = arith.constant 0 : index
    %c0_40 = arith.constant 0 : index
    %39 = vector.load %arg7[%c0_39, %c0_40] : memref<16x384xf32, #tpu.memory_space<vmem>>, vector<16x384xf32>
    %c0_41 = arith.constant 0 : index
    %c0_42 = arith.constant 0 : index
    %40 = vector.load %arg2[%c0_41, %c0_42] : memref<384x128xf32, #tpu.memory_space<vmem>>, vector<384x128xf32>
    %cst_43 = arith.constant dense<0.000000e+00> : vector<16x128xf32>
    %41 = tpu.matmul %39, %40, %cst_43 {dimension_numbers = #tpu.dot_dimension_numbers<[1], [0], [0], [1], [0, 0, 1, 1], [], []>} : vector<16x384xf32>, vector<384x128xf32>, vector<16x128xf32> -> vector<16x128xf32>
    %42 = arith.addf %41, %6 : vector<16x128xf32>
    %cst_44 = arith.constant 0.000000e+00 : f32
    %43 = vector.broadcast %cst_44 : f32 to vector<16x128xf32>
    %44 = arith.maximumf %42, %43 : vector<16x128xf32>
    %c0_45 = arith.constant 0 : index
    %c128_46 = arith.constant 128 : index
    %45 = vector.load %arg8[%c0_45, %c128_46] : memref<16x384xf32, #tpu.memory_space<vmem>>, vector<16x128xf32>
    tpu.vector_store %arg8[%c0_45, %c128_46], %44 {strides = array<i32>} : memref<16x384xf32, #tpu.memory_space<vmem>>, vector<16x128xf32>,
    %46 = vector.extract_strided_slice %44 {offsets = [0, 0], sizes = [15, 128], strides = [1, 1]} : vector<16x128xf32> to vector<15x128xf32>
    %c1_47 = arith.constant 1 : index
    %c0_48 = arith.constant 0 : index
    %47 = vector.load %arg8[%c1_47, %c0_48] : memref<16x384xf32, #tpu.memory_space<vmem>>, vector<15x128xf32>
    tpu.vector_store %arg8[%c1_47, %c0_48], %46 {strides = array<i32>} : memref<16x384xf32, #tpu.memory_space<vmem>>, vector<15x128xf32>,
    %48 = vector.extract_strided_slice %44 {offsets = [1, 0], sizes = [15, 128], strides = [1, 1]} : vector<16x128xf32> to vector<15x128xf32>
    %c0_49 = arith.constant 0 : index
    %c256_50 = arith.constant 256 : index
    %49 = vector.load %arg8[%c0_49, %c256_50] : memref<16x384xf32, #tpu.memory_space<vmem>>, vector<15x128xf32>
    tpu.vector_store %arg8[%c0_49, %c256_50], %48 {strides = array<i32>} : memref<16x384xf32, #tpu.memory_space<vmem>>, vector<15x128xf32>,
    %c0_51 = arith.constant 0 : index
    %c0_52 = arith.constant 0 : index
    %50 = vector.load %arg8[%c0_51, %c0_52] : memref<16x384xf32, #tpu.memory_space<vmem>>, vector<16x384xf32>
    %c0_53 = arith.constant 0 : index
    %c0_54 = arith.constant 0 : index
    %51 = vector.load %arg4[%c0_53, %c0_54] : memref<384x128xf32, #tpu.memory_space<vmem>>, vector<384x128xf32>
    %cst_55 = arith.constant dense<0.000000e+00> : vector<16x128xf32>
    %52 = tpu.matmul %50, %51, %cst_55 {dimension_numbers = #tpu.dot_dimension_numbers<[1], [0], [0], [1], [0, 0, 1, 1], [], []>} : vector<16x384xf32>, vector<384x128xf32>, vector<16x128xf32> -> vector<16x128xf32>
    %53 = arith.addf %52, %9 : vector<16x128xf32>
    %c0_56 = arith.constant 0 : index
    %c128_57 = arith.constant 128 : index
    %54 = vector.load %arg7[%c0_56, %c128_57] : memref<16x384xf32, #tpu.memory_space<vmem>>, vector<16x128xf32>
    %55 = arith.addf %54, %53 : vector<16x128xf32>
    %c0_58 = arith.constant 0 : index
    %c128_59 = arith.constant 128 : index
    %56 = vector.load %arg7[%c0_58, %c128_59] : memref<16x384xf32, #tpu.memory_space<vmem>>, vector<16x128xf32>
    tpu.vector_store %arg7[%c0_58, %c128_59], %55 {strides = array<i32>} : memref<16x384xf32, #tpu.memory_space<vmem>>, vector<16x128xf32>,
    %57 = vector.extract_strided_slice %55 {offsets = [0, 0], sizes = [15, 128], strides = [1, 1]} : vector<16x128xf32> to vector<15x128xf32>
    %c1_60 = arith.constant 1 : index
    %c0_61 = arith.constant 0 : index
    %58 = vector.load %arg7[%c1_60, %c0_61] : memref<16x384xf32, #tpu.memory_space<vmem>>, vector<15x128xf32>
    tpu.vector_store %arg7[%c1_60, %c0_61], %57 {strides = array<i32>} : memref<16x384xf32, #tpu.memory_space<vmem>>, vector<15x128xf32>,
    %59 = vector.extract_strided_slice %55 {offsets = [1, 0], sizes = [15, 128], strides = [1, 1]} : vector<16x128xf32> to vector<15x128xf32>
    %c0_62 = arith.constant 0 : index
    %c256_63 = arith.constant 256 : index
    %60 = vector.load %arg7[%c0_62, %c256_63] : memref<16x384xf32, #tpu.memory_space<vmem>>, vector<15x128xf32>
    tpu.vector_store %arg7[%c0_62, %c256_63], %59 {strides = array<i32>} : memref<16x384xf32, #tpu.memory_space<vmem>>, vector<15x128xf32>,
    %c0_64 = arith.constant 0 : index
    %c0_65 = arith.constant 0 : index
    %61 = vector.load %arg7[%c0_64, %c0_65] : memref<16x384xf32, #tpu.memory_space<vmem>>, vector<16x384xf32>
    %c0_66 = arith.constant 0 : index
    %c0_67 = arith.constant 0 : index
    %62 = vector.load %arg2[%c0_66, %c0_67] : memref<384x128xf32, #tpu.memory_space<vmem>>, vector<384x128xf32>
    %cst_68 = arith.constant dense<0.000000e+00> : vector<16x128xf32>
    %63 = tpu.matmul %61, %62, %cst_68 {dimension_numbers = #tpu.dot_dimension_numbers<[1], [0], [0], [1], [0, 0, 1, 1], [], []>} : vector<16x384xf32>, vector<384x128xf32>, vector<16x128xf32> -> vector<16x128xf32>
    %64 = arith.addf %63, %6 : vector<16x128xf32>
    %cst_69 = arith.constant 0.000000e+00 : f32
    %65 = vector.broadcast %cst_69 : f32 to vector<16x128xf32>
    %66 = arith.maximumf %64, %65 : vector<16x128xf32>
    %c0_70 = arith.constant 0 : index
    %c128_71 = arith.constant 128 : index
    %67 = vector.load %arg8[%c0_70, %c128_71] : memref<16x384xf32, #tpu.memory_space<vmem>>, vector<16x128xf32>
    tpu.vector_store %arg8[%c0_70, %c128_71], %66 {strides = array<i32>} : memref<16x384xf32, #tpu.memory_space<vmem>>, vector<16x128xf32>,
    %68 = vector.extract_strided_slice %66 {offsets = [0, 0], sizes = [15, 128], strides = [1, 1]} : vector<16x128xf32> to vector<15x128xf32>
    %c1_72 = arith.constant 1 : index
    %c0_73 = arith.constant 0 : index
    %69 = vector.load %arg8[%c1_72, %c0_73] : memref<16x384xf32, #tpu.memory_space<vmem>>, vector<15x128xf32>
    tpu.vector_store %arg8[%c1_72, %c0_73], %68 {strides = array<i32>} : memref<16x384xf32, #tpu.memory_space<vmem>>, vector<15x128xf32>,
    %70 = vector.extract_strided_slice %66 {offsets = [1, 0], sizes = [15, 128], strides = [1, 1]} : vector<16x128xf32> to vector<15x128xf32>
    %c0_74 = arith.constant 0 : index
    %c256_75 = arith.constant 256 : index
    %71 = vector.load %arg8[%c0_74, %c256_75] : memref<16x384xf32, #tpu.memory_space<vmem>>, vector<15x128xf32>
    tpu.vector_store %arg8[%c0_74, %c256_75], %70 {strides = array<i32>} : memref<16x384xf32, #tpu.memory_space<vmem>>, vector<15x128xf32>,
    %c0_76 = arith.constant 0 : index
    %c0_77 = arith.constant 0 : index
    %72 = vector.load %arg8[%c0_76, %c0_77] : memref<16x384xf32, #tpu.memory_space<vmem>>, vector<16x384xf32>
    %c0_78 = arith.constant 0 : index
    %c0_79 = arith.constant 0 : index
    %73 = vector.load %arg4[%c0_78, %c0_79] : memref<384x128xf32, #tpu.memory_space<vmem>>, vector<384x128xf32>
    %cst_80 = arith.constant dense<0.000000e+00> : vector<16x128xf32>
    %74 = tpu.matmul %72, %73, %cst_80 {dimension_numbers = #tpu.dot_dimension_numbers<[1], [0], [0], [1], [0, 0, 1, 1], [], []>} : vector<16x384xf32>, vector<384x128xf32>, vector<16x128xf32> -> vector<16x128xf32>
    %75 = arith.addf %74, %9 : vector<16x128xf32>
    %c0_81 = arith.constant 0 : index
    %c128_82 = arith.constant 128 : index
    %76 = vector.load %arg7[%c0_81, %c128_82] : memref<16x384xf32, #tpu.memory_space<vmem>>, vector<16x128xf32>
    %77 = arith.addf %76, %75 : vector<16x128xf32>
    %c0_83 = arith.constant 0 : index
    %c128_84 = arith.constant 128 : index
    %78 = vector.load %arg7[%c0_83, %c128_84] : memref<16x384xf32, #tpu.memory_space<vmem>>, vector<16x128xf32>
    tpu.vector_store %arg7[%c0_83, %c128_84], %77 {strides = array<i32>} : memref<16x384xf32, #tpu.memory_space<vmem>>, vector<16x128xf32>,
    %79 = vector.extract_strided_slice %77 {offsets = [0, 0], sizes = [15, 128], strides = [1, 1]} : vector<16x128xf32> to vector<15x128xf32>
    %c1_85 = arith.constant 1 : index
    %c0_86 = arith.constant 0 : index
    %80 = vector.load %arg7[%c1_85, %c0_86] : memref<16x384xf32, #tpu.memory_space<vmem>>, vector<15x128xf32>
    tpu.vector_store %arg7[%c1_85, %c0_86], %79 {strides = array<i32>} : memref<16x384xf32, #tpu.memory_space<vmem>>, vector<15x128xf32>,
    %81 = vector.extract_strided_slice %77 {offsets = [1, 0], sizes = [15, 128], strides = [1, 1]} : vector<16x128xf32> to vector<15x128xf32>
    %c0_87 = arith.constant 0 : index
    %c256_88 = arith.constant 256 : index
    %82 = vector.load %arg7[%c0_87, %c256_88] : memref<16x384xf32, #tpu.memory_space<vmem>>, vector<15x128xf32>
    tpu.vector_store %arg7[%c0_87, %c256_88], %81 {strides = array<i32>} : memref<16x384xf32, #tpu.memory_space<vmem>>, vector<15x128xf32>,
    %c0_89 = arith.constant 0 : index
    %c0_90 = arith.constant 0 : index
    %83 = vector.load %arg7[%c0_89, %c0_90] : memref<16x384xf32, #tpu.memory_space<vmem>>, vector<16x384xf32>
    %c0_91 = arith.constant 0 : index
    %c0_92 = arith.constant 0 : index
    %84 = vector.load %arg2[%c0_91, %c0_92] : memref<384x128xf32, #tpu.memory_space<vmem>>, vector<384x128xf32>
    %cst_93 = arith.constant dense<0.000000e+00> : vector<16x128xf32>
    %85 = tpu.matmul %83, %84, %cst_93 {dimension_numbers = #tpu.dot_dimension_numbers<[1], [0], [0], [1], [0, 0, 1, 1], [], []>} : vector<16x384xf32>, vector<384x128xf32>, vector<16x128xf32> -> vector<16x128xf32>
    %86 = arith.addf %85, %6 : vector<16x128xf32>
    %cst_94 = arith.constant 0.000000e+00 : f32
    %87 = vector.broadcast %cst_94 : f32 to vector<16x128xf32>
    %88 = arith.maximumf %86, %87 : vector<16x128xf32>
    %c0_95 = arith.constant 0 : index
    %c128_96 = arith.constant 128 : index
    %89 = vector.load %arg8[%c0_95, %c128_96] : memref<16x384xf32, #tpu.memory_space<vmem>>, vector<16x128xf32>
    tpu.vector_store %arg8[%c0_95, %c128_96], %88 {strides = array<i32>} : memref<16x384xf32, #tpu.memory_space<vmem>>, vector<16x128xf32>,
    %90 = vector.extract_strided_slice %88 {offsets = [0, 0], sizes = [15, 128], strides = [1, 1]} : vector<16x128xf32> to vector<15x128xf32>
    %c1_97 = arith.constant 1 : index
    %c0_98 = arith.constant 0 : index
    %91 = vector.load %arg8[%c1_97, %c0_98] : memref<16x384xf32, #tpu.memory_space<vmem>>, vector<15x128xf32>
    tpu.vector_store %arg8[%c1_97, %c0_98], %90 {strides = array<i32>} : memref<16x384xf32, #tpu.memory_space<vmem>>, vector<15x128xf32>,
    %92 = vector.extract_strided_slice %88 {offsets = [1, 0], sizes = [15, 128], strides = [1, 1]} : vector<16x128xf32> to vector<15x128xf32>
    %c0_99 = arith.constant 0 : index
    %c256_100 = arith.constant 256 : index
    %93 = vector.load %arg8[%c0_99, %c256_100] : memref<16x384xf32, #tpu.memory_space<vmem>>, vector<15x128xf32>
    tpu.vector_store %arg8[%c0_99, %c256_100], %92 {strides = array<i32>} : memref<16x384xf32, #tpu.memory_space<vmem>>, vector<15x128xf32>,
    %c0_101 = arith.constant 0 : index
    %c0_102 = arith.constant 0 : index
    %94 = vector.load %arg8[%c0_101, %c0_102] : memref<16x384xf32, #tpu.memory_space<vmem>>, vector<16x384xf32>
    %c0_103 = arith.constant 0 : index
    %c0_104 = arith.constant 0 : index
    %95 = vector.load %arg4[%c0_103, %c0_104] : memref<384x128xf32, #tpu.memory_space<vmem>>, vector<384x128xf32>
    %cst_105 = arith.constant dense<0.000000e+00> : vector<16x128xf32>
    %96 = tpu.matmul %94, %95, %cst_105 {dimension_numbers = #tpu.dot_dimension_numbers<[1], [0], [0], [1], [0, 0, 1, 1], [], []>} : vector<16x384xf32>, vector<384x128xf32>, vector<16x128xf32> -> vector<16x128xf32>
    %97 = arith.addf %96, %9 : vector<16x128xf32>
    %c0_106 = arith.constant 0 : index
    %c128_107 = arith.constant 128 : index
    %98 = vector.load %arg7[%c0_106, %c128_107] : memref<16x384xf32, #tpu.memory_space<vmem>>, vector<16x128xf32>
    %99 = arith.addf %98, %97 : vector<16x128xf32>
    %c0_108 = arith.constant 0 : index
    %c128_109 = arith.constant 128 : index
    %100 = vector.load %arg7[%c0_108, %c128_109] : memref<16x384xf32, #tpu.memory_space<vmem>>, vector<16x128xf32>
    tpu.vector_store %arg7[%c0_108, %c128_109], %99 {strides = array<i32>} : memref<16x384xf32, #tpu.memory_space<vmem>>, vector<16x128xf32>,
    %101 = vector.extract_strided_slice %99 {offsets = [0, 0], sizes = [15, 128], strides = [1, 1]} : vector<16x128xf32> to vector<15x128xf32>
    %c1_110 = arith.constant 1 : index
    %c0_111 = arith.constant 0 : index
    %102 = vector.load %arg7[%c1_110, %c0_111] : memref<16x384xf32, #tpu.memory_space<vmem>>, vector<15x128xf32>
    tpu.vector_store %arg7[%c1_110, %c0_111], %101 {strides = array<i32>} : memref<16x384xf32, #tpu.memory_space<vmem>>, vector<15x128xf32>,
    %103 = vector.extract_strided_slice %99 {offsets = [1, 0], sizes = [15, 128], strides = [1, 1]} : vector<16x128xf32> to vector<15x128xf32>
    %c0_112 = arith.constant 0 : index
    %c256_113 = arith.constant 256 : index
    %104 = vector.load %arg7[%c0_112, %c256_113] : memref<16x384xf32, #tpu.memory_space<vmem>>, vector<15x128xf32>
    tpu.vector_store %arg7[%c0_112, %c256_113], %103 {strides = array<i32>} : memref<16x384xf32, #tpu.memory_space<vmem>>, vector<15x128xf32>,
    %c0_114 = arith.constant 0 : index
    %c0_115 = arith.constant 0 : index
    %105 = vector.load %arg7[%c0_114, %c0_115] : memref<16x384xf32, #tpu.memory_space<vmem>>, vector<16x384xf32>
    %c0_116 = arith.constant 0 : index
    %c0_117 = arith.constant 0 : index
    %106 = vector.load %arg2[%c0_116, %c0_117] : memref<384x128xf32, #tpu.memory_space<vmem>>, vector<384x128xf32>
    %cst_118 = arith.constant dense<0.000000e+00> : vector<16x128xf32>
    %107 = tpu.matmul %105, %106, %cst_118 {dimension_numbers = #tpu.dot_dimension_numbers<[1], [0], [0], [1], [0, 0, 1, 1], [], []>} : vector<16x384xf32>, vector<384x128xf32>, vector<16x128xf32> -> vector<16x128xf32>
    %108 = arith.addf %107, %6 : vector<16x128xf32>
    %cst_119 = arith.constant 0.000000e+00 : f32
    %109 = vector.broadcast %cst_119 : f32 to vector<16x128xf32>
    %110 = arith.maximumf %108, %109 : vector<16x128xf32>
    %c0_120 = arith.constant 0 : index
    %c128_121 = arith.constant 128 : index
    %111 = vector.load %arg8[%c0_120, %c128_121] : memref<16x384xf32, #tpu.memory_space<vmem>>, vector<16x128xf32>
    tpu.vector_store %arg8[%c0_120, %c128_121], %110 {strides = array<i32>} : memref<16x384xf32, #tpu.memory_space<vmem>>, vector<16x128xf32>,
    %112 = vector.extract_strided_slice %110 {offsets = [0, 0], sizes = [15, 128], strides = [1, 1]} : vector<16x128xf32> to vector<15x128xf32>
    %c1_122 = arith.constant 1 : index
    %c0_123 = arith.constant 0 : index
    %113 = vector.load %arg8[%c1_122, %c0_123] : memref<16x384xf32, #tpu.memory_space<vmem>>, vector<15x128xf32>
    tpu.vector_store %arg8[%c1_122, %c0_123], %112 {strides = array<i32>} : memref<16x384xf32, #tpu.memory_space<vmem>>, vector<15x128xf32>,
    %114 = vector.extract_strided_slice %110 {offsets = [1, 0], sizes = [15, 128], strides = [1, 1]} : vector<16x128xf32> to vector<15x128xf32>
    %c0_124 = arith.constant 0 : index
    %c256_125 = arith.constant 256 : index
    %115 = vector.load %arg8[%c0_124, %c256_125] : memref<16x384xf32, #tpu.memory_space<vmem>>, vector<15x128xf32>
    tpu.vector_store %arg8[%c0_124, %c256_125], %114 {strides = array<i32>} : memref<16x384xf32, #tpu.memory_space<vmem>>, vector<15x128xf32>,
    %c0_126 = arith.constant 0 : index
    %c0_127 = arith.constant 0 : index
    %116 = vector.load %arg8[%c0_126, %c0_127] : memref<16x384xf32, #tpu.memory_space<vmem>>, vector<16x384xf32>
    %c0_128 = arith.constant 0 : index
    %c0_129 = arith.constant 0 : index
    %117 = vector.load %arg4[%c0_128, %c0_129] : memref<384x128xf32, #tpu.memory_space<vmem>>, vector<384x128xf32>
    %cst_130 = arith.constant dense<0.000000e+00> : vector<16x128xf32>
    %118 = tpu.matmul %116, %117, %cst_130 {dimension_numbers = #tpu.dot_dimension_numbers<[1], [0], [0], [1], [0, 0, 1, 1], [], []>} : vector<16x384xf32>, vector<384x128xf32>, vector<16x128xf32> -> vector<16x128xf32>
    %119 = arith.addf %118, %9 : vector<16x128xf32>
    %c0_131 = arith.constant 0 : index
    %c128_132 = arith.constant 128 : index
    %120 = vector.load %arg7[%c0_131, %c128_132] : memref<16x384xf32, #tpu.memory_space<vmem>>, vector<16x128xf32>
    %121 = arith.addf %120, %119 : vector<16x128xf32>
    %c0_133 = arith.constant 0 : index
    %c128_134 = arith.constant 128 : index
    %122 = vector.load %arg7[%c0_133, %c128_134] : memref<16x384xf32, #tpu.memory_space<vmem>>, vector<16x128xf32>
    tpu.vector_store %arg7[%c0_133, %c128_134], %121 {strides = array<i32>} : memref<16x384xf32, #tpu.memory_space<vmem>>, vector<16x128xf32>,
    %123 = vector.extract_strided_slice %121 {offsets = [0, 0], sizes = [15, 128], strides = [1, 1]} : vector<16x128xf32> to vector<15x128xf32>
    %c1_135 = arith.constant 1 : index
    %c0_136 = arith.constant 0 : index
    %124 = vector.load %arg7[%c1_135, %c0_136] : memref<16x384xf32, #tpu.memory_space<vmem>>, vector<15x128xf32>
    tpu.vector_store %arg7[%c1_135, %c0_136], %123 {strides = array<i32>} : memref<16x384xf32, #tpu.memory_space<vmem>>, vector<15x128xf32>,
    %125 = vector.extract_strided_slice %121 {offsets = [1, 0], sizes = [15, 128], strides = [1, 1]} : vector<16x128xf32> to vector<15x128xf32>
    %c0_137 = arith.constant 0 : index
    %c256_138 = arith.constant 256 : index
    %126 = vector.load %arg7[%c0_137, %c256_138] : memref<16x384xf32, #tpu.memory_space<vmem>>, vector<15x128xf32>
    tpu.vector_store %arg7[%c0_137, %c256_138], %125 {strides = array<i32>} : memref<16x384xf32, #tpu.memory_space<vmem>>, vector<15x128xf32>,
    %c0_139 = arith.constant 0 : index
    %c0_140 = arith.constant 0 : index
    %127 = vector.load %arg7[%c0_139, %c0_140] : memref<16x384xf32, #tpu.memory_space<vmem>>, vector<16x384xf32>
    %c0_141 = arith.constant 0 : index
    %c0_142 = arith.constant 0 : index
    %128 = vector.load %arg2[%c0_141, %c0_142] : memref<384x128xf32, #tpu.memory_space<vmem>>, vector<384x128xf32>
    %cst_143 = arith.constant dense<0.000000e+00> : vector<16x128xf32>
    %129 = tpu.matmul %127, %128, %cst_143 {dimension_numbers = #tpu.dot_dimension_numbers<[1], [0], [0], [1], [0, 0, 1, 1], [], []>} : vector<16x384xf32>, vector<384x128xf32>, vector<16x128xf32> -> vector<16x128xf32>
    %130 = arith.addf %129, %6 : vector<16x128xf32>
    %cst_144 = arith.constant 0.000000e+00 : f32
    %131 = vector.broadcast %cst_144 : f32 to vector<16x128xf32>
    %132 = arith.maximumf %130, %131 : vector<16x128xf32>
    %c0_145 = arith.constant 0 : index
    %c128_146 = arith.constant 128 : index
    %133 = vector.load %arg8[%c0_145, %c128_146] : memref<16x384xf32, #tpu.memory_space<vmem>>, vector<16x128xf32>
    tpu.vector_store %arg8[%c0_145, %c128_146], %132 {strides = array<i32>} : memref<16x384xf32, #tpu.memory_space<vmem>>, vector<16x128xf32>,
    %134 = vector.extract_strided_slice %132 {offsets = [0, 0], sizes = [15, 128], strides = [1, 1]} : vector<16x128xf32> to vector<15x128xf32>
    %c1_147 = arith.constant 1 : index
    %c0_148 = arith.constant 0 : index
    %135 = vector.load %arg8[%c1_147, %c0_148] : memref<16x384xf32, #tpu.memory_space<vmem>>, vector<15x128xf32>
    tpu.vector_store %arg8[%c1_147, %c0_148], %134 {strides = array<i32>} : memref<16x384xf32, #tpu.memory_space<vmem>>, vector<15x128xf32>,
    %136 = vector.extract_strided_slice %132 {offsets = [1, 0], sizes = [15, 128], strides = [1, 1]} : vector<16x128xf32> to vector<15x128xf32>
    %c0_149 = arith.constant 0 : index
    %c256_150 = arith.constant 256 : index
    %137 = vector.load %arg8[%c0_149, %c256_150] : memref<16x384xf32, #tpu.memory_space<vmem>>, vector<15x128xf32>
    tpu.vector_store %arg8[%c0_149, %c256_150], %136 {strides = array<i32>} : memref<16x384xf32, #tpu.memory_space<vmem>>, vector<15x128xf32>,
    %c0_151 = arith.constant 0 : index
    %c0_152 = arith.constant 0 : index
    %138 = vector.load %arg8[%c0_151, %c0_152] : memref<16x384xf32, #tpu.memory_space<vmem>>, vector<16x384xf32>
    %c0_153 = arith.constant 0 : index
    %c0_154 = arith.constant 0 : index
    %139 = vector.load %arg4[%c0_153, %c0_154] : memref<384x128xf32, #tpu.memory_space<vmem>>, vector<384x128xf32>
    %cst_155 = arith.constant dense<0.000000e+00> : vector<16x128xf32>
    %140 = tpu.matmul %138, %139, %cst_155 {dimension_numbers = #tpu.dot_dimension_numbers<[1], [0], [0], [1], [0, 0, 1, 1], [], []>} : vector<16x384xf32>, vector<384x128xf32>, vector<16x128xf32> -> vector<16x128xf32>
    %141 = arith.addf %140, %9 : vector<16x128xf32>
    %c0_156 = arith.constant 0 : index
    %c128_157 = arith.constant 128 : index
    %142 = vector.load %arg7[%c0_156, %c128_157] : memref<16x384xf32, #tpu.memory_space<vmem>>, vector<16x128xf32>
    %143 = arith.addf %142, %141 : vector<16x128xf32>
    %c0_158 = arith.constant 0 : index
    %c128_159 = arith.constant 128 : index
    %144 = vector.load %arg7[%c0_158, %c128_159] : memref<16x384xf32, #tpu.memory_space<vmem>>, vector<16x128xf32>
    tpu.vector_store %arg7[%c0_158, %c128_159], %143 {strides = array<i32>} : memref<16x384xf32, #tpu.memory_space<vmem>>, vector<16x128xf32>,
    %145 = vector.extract_strided_slice %143 {offsets = [0, 0], sizes = [15, 128], strides = [1, 1]} : vector<16x128xf32> to vector<15x128xf32>
    %c1_160 = arith.constant 1 : index
    %c0_161 = arith.constant 0 : index
    %146 = vector.load %arg7[%c1_160, %c0_161] : memref<16x384xf32, #tpu.memory_space<vmem>>, vector<15x128xf32>
    tpu.vector_store %arg7[%c1_160, %c0_161], %145 {strides = array<i32>} : memref<16x384xf32, #tpu.memory_space<vmem>>, vector<15x128xf32>,
    %147 = vector.extract_strided_slice %143 {offsets = [1, 0], sizes = [15, 128], strides = [1, 1]} : vector<16x128xf32> to vector<15x128xf32>
    %c0_162 = arith.constant 0 : index
    %c256_163 = arith.constant 256 : index
    %148 = vector.load %arg7[%c0_162, %c256_163] : memref<16x384xf32, #tpu.memory_space<vmem>>, vector<15x128xf32>
    tpu.vector_store %arg7[%c0_162, %c256_163], %147 {strides = array<i32>} : memref<16x384xf32, #tpu.memory_space<vmem>>, vector<15x128xf32>,
    %c0_164 = arith.constant 0 : index
    %c0_165 = arith.constant 0 : index
    %149 = vector.load %arg7[%c0_164, %c0_165] : memref<16x384xf32, #tpu.memory_space<vmem>>, vector<16x384xf32>
    %c0_166 = arith.constant 0 : index
    %c0_167 = arith.constant 0 : index
    %150 = vector.load %arg2[%c0_166, %c0_167] : memref<384x128xf32, #tpu.memory_space<vmem>>, vector<384x128xf32>
    %cst_168 = arith.constant dense<0.000000e+00> : vector<16x128xf32>
    %151 = tpu.matmul %149, %150, %cst_168 {dimension_numbers = #tpu.dot_dimension_numbers<[1], [0], [0], [1], [0, 0, 1, 1], [], []>} : vector<16x384xf32>, vector<384x128xf32>, vector<16x128xf32> -> vector<16x128xf32>
    %152 = arith.addf %151, %6 : vector<16x128xf32>
    %cst_169 = arith.constant 0.000000e+00 : f32
    %153 = vector.broadcast %cst_169 : f32 to vector<16x128xf32>
    %154 = arith.maximumf %152, %153 : vector<16x128xf32>
    %c0_170 = arith.constant 0 : index
    %c128_171 = arith.constant 128 : index
    %155 = vector.load %arg8[%c0_170, %c128_171] : memref<16x384xf32, #tpu.memory_space<vmem>>, vector<16x128xf32>
    tpu.vector_store %arg8[%c0_170, %c128_171], %154 {strides = array<i32>} : memref<16x384xf32, #tpu.memory_space<vmem>>, vector<16x128xf32>,
    %156 = vector.extract_strided_slice %154 {offsets = [0, 0], sizes = [15, 128], strides = [1, 1]} : vector<16x128xf32> to vector<15x128xf32>
    %c1_172 = arith.constant 1 : index
    %c0_173 = arith.constant 0 : index
    %157 = vector.load %arg8[%c1_172, %c0_173] : memref<16x384xf32, #tpu.memory_space<vmem>>, vector<15x128xf32>
    tpu.vector_store %arg8[%c1_172, %c0_173], %156 {strides = array<i32>} : memref<16x384xf32, #tpu.memory_space<vmem>>, vector<15x128xf32>,
    %158 = vector.extract_strided_slice %154 {offsets = [1, 0], sizes = [15, 128], strides = [1, 1]} : vector<16x128xf32> to vector<15x128xf32>
    %c0_174 = arith.constant 0 : index
    %c256_175 = arith.constant 256 : index
    %159 = vector.load %arg8[%c0_174, %c256_175] : memref<16x384xf32, #tpu.memory_space<vmem>>, vector<15x128xf32>
    tpu.vector_store %arg8[%c0_174, %c256_175], %158 {strides = array<i32>} : memref<16x384xf32, #tpu.memory_space<vmem>>, vector<15x128xf32>,
    %c0_176 = arith.constant 0 : index
    %c0_177 = arith.constant 0 : index
    %160 = vector.load %arg8[%c0_176, %c0_177] : memref<16x384xf32, #tpu.memory_space<vmem>>, vector<16x384xf32>
    %c0_178 = arith.constant 0 : index
    %c0_179 = arith.constant 0 : index
    %161 = vector.load %arg4[%c0_178, %c0_179] : memref<384x128xf32, #tpu.memory_space<vmem>>, vector<384x128xf32>
    %cst_180 = arith.constant dense<0.000000e+00> : vector<16x128xf32>
    %162 = tpu.matmul %160, %161, %cst_180 {dimension_numbers = #tpu.dot_dimension_numbers<[1], [0], [0], [1], [0, 0, 1, 1], [], []>} : vector<16x384xf32>, vector<384x128xf32>, vector<16x128xf32> -> vector<16x128xf32>
    %163 = arith.addf %162, %9 : vector<16x128xf32>
    %c0_181 = arith.constant 0 : index
    %c128_182 = arith.constant 128 : index
    %164 = vector.load %arg7[%c0_181, %c128_182] : memref<16x384xf32, #tpu.memory_space<vmem>>, vector<16x128xf32>
    %165 = arith.addf %164, %163 : vector<16x128xf32>
    %c0_183 = arith.constant 0 : index
    %c128_184 = arith.constant 128 : index
    %166 = vector.load %arg7[%c0_183, %c128_184] : memref<16x384xf32, #tpu.memory_space<vmem>>, vector<16x128xf32>
    tpu.vector_store %arg7[%c0_183, %c128_184], %165 {strides = array<i32>} : memref<16x384xf32, #tpu.memory_space<vmem>>, vector<16x128xf32>,
    %167 = vector.extract_strided_slice %165 {offsets = [0, 0], sizes = [15, 128], strides = [1, 1]} : vector<16x128xf32> to vector<15x128xf32>
    %c1_185 = arith.constant 1 : index
    %c0_186 = arith.constant 0 : index
    %168 = vector.load %arg7[%c1_185, %c0_186] : memref<16x384xf32, #tpu.memory_space<vmem>>, vector<15x128xf32>
    tpu.vector_store %arg7[%c1_185, %c0_186], %167 {strides = array<i32>} : memref<16x384xf32, #tpu.memory_space<vmem>>, vector<15x128xf32>,
    %169 = vector.extract_strided_slice %165 {offsets = [1, 0], sizes = [15, 128], strides = [1, 1]} : vector<16x128xf32> to vector<15x128xf32>
    %c0_187 = arith.constant 0 : index
    %c256_188 = arith.constant 256 : index
    %170 = vector.load %arg7[%c0_187, %c256_188] : memref<16x384xf32, #tpu.memory_space<vmem>>, vector<15x128xf32>
    tpu.vector_store %arg7[%c0_187, %c256_188], %169 {strides = array<i32>} : memref<16x384xf32, #tpu.memory_space<vmem>>, vector<15x128xf32>,
    %c0_189 = arith.constant 0 : index
    %c0_190 = arith.constant 0 : index
    %171 = vector.load %arg7[%c0_189, %c0_190] : memref<16x384xf32, #tpu.memory_space<vmem>>, vector<16x384xf32>
    %c0_191 = arith.constant 0 : index
    %c0_192 = arith.constant 0 : index
    %172 = vector.load %arg2[%c0_191, %c0_192] : memref<384x128xf32, #tpu.memory_space<vmem>>, vector<384x128xf32>
    %cst_193 = arith.constant dense<0.000000e+00> : vector<16x128xf32>
    %173 = tpu.matmul %171, %172, %cst_193 {dimension_numbers = #tpu.dot_dimension_numbers<[1], [0], [0], [1], [0, 0, 1, 1], [], []>} : vector<16x384xf32>, vector<384x128xf32>, vector<16x128xf32> -> vector<16x128xf32>
    %174 = arith.addf %173, %6 : vector<16x128xf32>
    %cst_194 = arith.constant 0.000000e+00 : f32
    %175 = vector.broadcast %cst_194 : f32 to vector<16x128xf32>
    %176 = arith.maximumf %174, %175 : vector<16x128xf32>
    %c0_195 = arith.constant 0 : index
    %c128_196 = arith.constant 128 : index
    %177 = vector.load %arg8[%c0_195, %c128_196] : memref<16x384xf32, #tpu.memory_space<vmem>>, vector<16x128xf32>
    tpu.vector_store %arg8[%c0_195, %c128_196], %176 {strides = array<i32>} : memref<16x384xf32, #tpu.memory_space<vmem>>, vector<16x128xf32>,
    %178 = vector.extract_strided_slice %176 {offsets = [0, 0], sizes = [15, 128], strides = [1, 1]} : vector<16x128xf32> to vector<15x128xf32>
    %c1_197 = arith.constant 1 : index
    %c0_198 = arith.constant 0 : index
    %179 = vector.load %arg8[%c1_197, %c0_198] : memref<16x384xf32, #tpu.memory_space<vmem>>, vector<15x128xf32>
    tpu.vector_store %arg8[%c1_197, %c0_198], %178 {strides = array<i32>} : memref<16x384xf32, #tpu.memory_space<vmem>>, vector<15x128xf32>,
    %180 = vector.extract_strided_slice %176 {offsets = [1, 0], sizes = [15, 128], strides = [1, 1]} : vector<16x128xf32> to vector<15x128xf32>
    %c0_199 = arith.constant 0 : index
    %c256_200 = arith.constant 256 : index
    %181 = vector.load %arg8[%c0_199, %c256_200] : memref<16x384xf32, #tpu.memory_space<vmem>>, vector<15x128xf32>
    tpu.vector_store %arg8[%c0_199, %c256_200], %180 {strides = array<i32>} : memref<16x384xf32, #tpu.memory_space<vmem>>, vector<15x128xf32>,
    %c0_201 = arith.constant 0 : index
    %c0_202 = arith.constant 0 : index
    %182 = vector.load %arg8[%c0_201, %c0_202] : memref<16x384xf32, #tpu.memory_space<vmem>>, vector<16x384xf32>
    %c0_203 = arith.constant 0 : index
    %c0_204 = arith.constant 0 : index
    %183 = vector.load %arg4[%c0_203, %c0_204] : memref<384x128xf32, #tpu.memory_space<vmem>>, vector<384x128xf32>
    %cst_205 = arith.constant dense<0.000000e+00> : vector<16x128xf32>
    %184 = tpu.matmul %182, %183, %cst_205 {dimension_numbers = #tpu.dot_dimension_numbers<[1], [0], [0], [1], [0, 0, 1, 1], [], []>} : vector<16x384xf32>, vector<384x128xf32>, vector<16x128xf32> -> vector<16x128xf32>
    %185 = arith.addf %184, %9 : vector<16x128xf32>
    %c0_206 = arith.constant 0 : index
    %c128_207 = arith.constant 128 : index
    %186 = vector.load %arg7[%c0_206, %c128_207] : memref<16x384xf32, #tpu.memory_space<vmem>>, vector<16x128xf32>
    %187 = arith.addf %186, %185 : vector<16x128xf32>
    %c0_208 = arith.constant 0 : index
    %c128_209 = arith.constant 128 : index
    %188 = vector.load %arg7[%c0_208, %c128_209] : memref<16x384xf32, #tpu.memory_space<vmem>>, vector<16x128xf32>
    tpu.vector_store %arg7[%c0_208, %c128_209], %187 {strides = array<i32>} : memref<16x384xf32, #tpu.memory_space<vmem>>, vector<16x128xf32>,
    %189 = vector.extract_strided_slice %187 {offsets = [0, 0], sizes = [15, 128], strides = [1, 1]} : vector<16x128xf32> to vector<15x128xf32>
    %c1_210 = arith.constant 1 : index
    %c0_211 = arith.constant 0 : index
    %190 = vector.load %arg7[%c1_210, %c0_211] : memref<16x384xf32, #tpu.memory_space<vmem>>, vector<15x128xf32>
    tpu.vector_store %arg7[%c1_210, %c0_211], %189 {strides = array<i32>} : memref<16x384xf32, #tpu.memory_space<vmem>>, vector<15x128xf32>,
    %191 = vector.extract_strided_slice %187 {offsets = [1, 0], sizes = [15, 128], strides = [1, 1]} : vector<16x128xf32> to vector<15x128xf32>
    %c0_212 = arith.constant 0 : index
    %c256_213 = arith.constant 256 : index
    %192 = vector.load %arg7[%c0_212, %c256_213] : memref<16x384xf32, #tpu.memory_space<vmem>>, vector<15x128xf32>
    tpu.vector_store %arg7[%c0_212, %c256_213], %191 {strides = array<i32>} : memref<16x384xf32, #tpu.memory_space<vmem>>, vector<15x128xf32>,
    %c0_214 = arith.constant 0 : index
    %c0_215 = arith.constant 0 : index
    %193 = vector.load %arg7[%c0_214, %c0_215] : memref<16x384xf32, #tpu.memory_space<vmem>>, vector<16x384xf32>
    %c0_216 = arith.constant 0 : index
    %c0_217 = arith.constant 0 : index
    %194 = vector.load %arg2[%c0_216, %c0_217] : memref<384x128xf32, #tpu.memory_space<vmem>>, vector<384x128xf32>
    %cst_218 = arith.constant dense<0.000000e+00> : vector<16x128xf32>
    %195 = tpu.matmul %193, %194, %cst_218 {dimension_numbers = #tpu.dot_dimension_numbers<[1], [0], [0], [1], [0, 0, 1, 1], [], []>} : vector<16x384xf32>, vector<384x128xf32>, vector<16x128xf32> -> vector<16x128xf32>
    %196 = arith.addf %195, %6 : vector<16x128xf32>
    %cst_219 = arith.constant 0.000000e+00 : f32
    %197 = vector.broadcast %cst_219 : f32 to vector<16x128xf32>
    %198 = arith.maximumf %196, %197 : vector<16x128xf32>
    %c0_220 = arith.constant 0 : index
    %c128_221 = arith.constant 128 : index
    %199 = vector.load %arg8[%c0_220, %c128_221] : memref<16x384xf32, #tpu.memory_space<vmem>>, vector<16x128xf32>
    tpu.vector_store %arg8[%c0_220, %c128_221], %198 {strides = array<i32>} : memref<16x384xf32, #tpu.memory_space<vmem>>, vector<16x128xf32>,
    %200 = vector.extract_strided_slice %198 {offsets = [0, 0], sizes = [15, 128], strides = [1, 1]} : vector<16x128xf32> to vector<15x128xf32>
    %c1_222 = arith.constant 1 : index
    %c0_223 = arith.constant 0 : index
    %201 = vector.load %arg8[%c1_222, %c0_223] : memref<16x384xf32, #tpu.memory_space<vmem>>, vector<15x128xf32>
    tpu.vector_store %arg8[%c1_222, %c0_223], %200 {strides = array<i32>} : memref<16x384xf32, #tpu.memory_space<vmem>>, vector<15x128xf32>,
    %202 = vector.extract_strided_slice %198 {offsets = [1, 0], sizes = [15, 128], strides = [1, 1]} : vector<16x128xf32> to vector<15x128xf32>
    %c0_224 = arith.constant 0 : index
    %c256_225 = arith.constant 256 : index
    %203 = vector.load %arg8[%c0_224, %c256_225] : memref<16x384xf32, #tpu.memory_space<vmem>>, vector<15x128xf32>
    tpu.vector_store %arg8[%c0_224, %c256_225], %202 {strides = array<i32>} : memref<16x384xf32, #tpu.memory_space<vmem>>, vector<15x128xf32>,
    %c0_226 = arith.constant 0 : index
    %c0_227 = arith.constant 0 : index
    %204 = vector.load %arg8[%c0_226, %c0_227] : memref<16x384xf32, #tpu.memory_space<vmem>>, vector<16x384xf32>
    %c0_228 = arith.constant 0 : index
    %c0_229 = arith.constant 0 : index
    %205 = vector.load %arg4[%c0_228, %c0_229] : memref<384x128xf32, #tpu.memory_space<vmem>>, vector<384x128xf32>
    %cst_230 = arith.constant dense<0.000000e+00> : vector<16x128xf32>
    %206 = tpu.matmul %204, %205, %cst_230 {dimension_numbers = #tpu.dot_dimension_numbers<[1], [0], [0], [1], [0, 0, 1, 1], [], []>} : vector<16x384xf32>, vector<384x128xf32>, vector<16x128xf32> -> vector<16x128xf32>
    %207 = arith.addf %206, %9 : vector<16x128xf32>
    %c0_231 = arith.constant 0 : index
    %c128_232 = arith.constant 128 : index
    %208 = vector.load %arg7[%c0_231, %c128_232] : memref<16x384xf32, #tpu.memory_space<vmem>>, vector<16x128xf32>
    %209 = arith.addf %208, %207 : vector<16x128xf32>
    %c0_233 = arith.constant 0 : index
    %c128_234 = arith.constant 128 : index
    %210 = vector.load %arg7[%c0_233, %c128_234] : memref<16x384xf32, #tpu.memory_space<vmem>>, vector<16x128xf32>
    tpu.vector_store %arg7[%c0_233, %c128_234], %209 {strides = array<i32>} : memref<16x384xf32, #tpu.memory_space<vmem>>, vector<16x128xf32>,
    %211 = vector.extract_strided_slice %209 {offsets = [0, 0], sizes = [15, 128], strides = [1, 1]} : vector<16x128xf32> to vector<15x128xf32>
    %c1_235 = arith.constant 1 : index
    %c0_236 = arith.constant 0 : index
    %212 = vector.load %arg7[%c1_235, %c0_236] : memref<16x384xf32, #tpu.memory_space<vmem>>, vector<15x128xf32>
    tpu.vector_store %arg7[%c1_235, %c0_236], %211 {strides = array<i32>} : memref<16x384xf32, #tpu.memory_space<vmem>>, vector<15x128xf32>,
    %213 = vector.extract_strided_slice %209 {offsets = [1, 0], sizes = [15, 128], strides = [1, 1]} : vector<16x128xf32> to vector<15x128xf32>
    %c0_237 = arith.constant 0 : index
    %c256_238 = arith.constant 256 : index
    %214 = vector.load %arg7[%c0_237, %c256_238] : memref<16x384xf32, #tpu.memory_space<vmem>>, vector<15x128xf32>
    tpu.vector_store %arg7[%c0_237, %c256_238], %213 {strides = array<i32>} : memref<16x384xf32, #tpu.memory_space<vmem>>, vector<15x128xf32>,
    %c0_239 = arith.constant 0 : index
    %c0_240 = arith.constant 0 : index
    %215 = vector.load %arg7[%c0_239, %c0_240] : memref<16x384xf32, #tpu.memory_space<vmem>>, vector<16x384xf32>
    %c0_241 = arith.constant 0 : index
    %c0_242 = arith.constant 0 : index
    %216 = vector.load %arg2[%c0_241, %c0_242] : memref<384x128xf32, #tpu.memory_space<vmem>>, vector<384x128xf32>
    %cst_243 = arith.constant dense<0.000000e+00> : vector<16x128xf32>
    %217 = tpu.matmul %215, %216, %cst_243 {dimension_numbers = #tpu.dot_dimension_numbers<[1], [0], [0], [1], [0, 0, 1, 1], [], []>} : vector<16x384xf32>, vector<384x128xf32>, vector<16x128xf32> -> vector<16x128xf32>
    %218 = arith.addf %217, %6 : vector<16x128xf32>
    %cst_244 = arith.constant 0.000000e+00 : f32
    %219 = vector.broadcast %cst_244 : f32 to vector<16x128xf32>
    %220 = arith.maximumf %218, %219 : vector<16x128xf32>
    %c0_245 = arith.constant 0 : index
    %c128_246 = arith.constant 128 : index
    %221 = vector.load %arg8[%c0_245, %c128_246] : memref<16x384xf32, #tpu.memory_space<vmem>>, vector<16x128xf32>
    tpu.vector_store %arg8[%c0_245, %c128_246], %220 {strides = array<i32>} : memref<16x384xf32, #tpu.memory_space<vmem>>, vector<16x128xf32>,
    %222 = vector.extract_strided_slice %220 {offsets = [0, 0], sizes = [15, 128], strides = [1, 1]} : vector<16x128xf32> to vector<15x128xf32>
    %c1_247 = arith.constant 1 : index
    %c0_248 = arith.constant 0 : index
    %223 = vector.load %arg8[%c1_247, %c0_248] : memref<16x384xf32, #tpu.memory_space<vmem>>, vector<15x128xf32>
    tpu.vector_store %arg8[%c1_247, %c0_248], %222 {strides = array<i32>} : memref<16x384xf32, #tpu.memory_space<vmem>>, vector<15x128xf32>,
    %224 = vector.extract_strided_slice %220 {offsets = [1, 0], sizes = [15, 128], strides = [1, 1]} : vector<16x128xf32> to vector<15x128xf32>
    %c0_249 = arith.constant 0 : index
    %c256_250 = arith.constant 256 : index
    %225 = vector.load %arg8[%c0_249, %c256_250] : memref<16x384xf32, #tpu.memory_space<vmem>>, vector<15x128xf32>
    tpu.vector_store %arg8[%c0_249, %c256_250], %224 {strides = array<i32>} : memref<16x384xf32, #tpu.memory_space<vmem>>, vector<15x128xf32>,
    %c0_251 = arith.constant 0 : index
    %c0_252 = arith.constant 0 : index
    %226 = vector.load %arg8[%c0_251, %c0_252] : memref<16x384xf32, #tpu.memory_space<vmem>>, vector<16x384xf32>
    %c0_253 = arith.constant 0 : index
    %c0_254 = arith.constant 0 : index
    %227 = vector.load %arg4[%c0_253, %c0_254] : memref<384x128xf32, #tpu.memory_space<vmem>>, vector<384x128xf32>
    %cst_255 = arith.constant dense<0.000000e+00> : vector<16x128xf32>
    %228 = tpu.matmul %226, %227, %cst_255 {dimension_numbers = #tpu.dot_dimension_numbers<[1], [0], [0], [1], [0, 0, 1, 1], [], []>} : vector<16x384xf32>, vector<384x128xf32>, vector<16x128xf32> -> vector<16x128xf32>
    %229 = arith.addf %228, %9 : vector<16x128xf32>
    %c0_256 = arith.constant 0 : index
    %c128_257 = arith.constant 128 : index
    %230 = vector.load %arg7[%c0_256, %c128_257] : memref<16x384xf32, #tpu.memory_space<vmem>>, vector<16x128xf32>
    %231 = arith.addf %230, %229 : vector<16x128xf32>
    %c0_258 = arith.constant 0 : index
    %c128_259 = arith.constant 128 : index
    %232 = vector.load %arg7[%c0_258, %c128_259] : memref<16x384xf32, #tpu.memory_space<vmem>>, vector<16x128xf32>
    tpu.vector_store %arg7[%c0_258, %c128_259], %231 {strides = array<i32>} : memref<16x384xf32, #tpu.memory_space<vmem>>, vector<16x128xf32>,
    %233 = vector.extract_strided_slice %231 {offsets = [0, 0], sizes = [15, 128], strides = [1, 1]} : vector<16x128xf32> to vector<15x128xf32>
    %c1_260 = arith.constant 1 : index
    %c0_261 = arith.constant 0 : index
    %234 = vector.load %arg7[%c1_260, %c0_261] : memref<16x384xf32, #tpu.memory_space<vmem>>, vector<15x128xf32>
    tpu.vector_store %arg7[%c1_260, %c0_261], %233 {strides = array<i32>} : memref<16x384xf32, #tpu.memory_space<vmem>>, vector<15x128xf32>,
    %235 = vector.extract_strided_slice %231 {offsets = [1, 0], sizes = [15, 128], strides = [1, 1]} : vector<16x128xf32> to vector<15x128xf32>
    %c0_262 = arith.constant 0 : index
    %c256_263 = arith.constant 256 : index
    %236 = vector.load %arg7[%c0_262, %c256_263] : memref<16x384xf32, #tpu.memory_space<vmem>>, vector<15x128xf32>
    tpu.vector_store %arg7[%c0_262, %c256_263], %235 {strides = array<i32>} : memref<16x384xf32, #tpu.memory_space<vmem>>, vector<15x128xf32>,
    %c0_264 = arith.constant 0 : index
    %c128_265 = arith.constant 128 : index
    %237 = vector.load %arg7[%c0_264, %c128_265] : memref<16x384xf32, #tpu.memory_space<vmem>>, vector<16x128xf32>
    %c0_266 = arith.constant 0 : index
    %c0_267 = arith.constant 0 : index
    %c0_268 = arith.constant 0 : index
    %238 = vector.load %arg6[%c0_266, %c0_267, %c0_268] : memref<1x16x128xf32, #tpu.memory_space<vmem>>, vector<1x16x128xf32>
    %239 = vector.shape_cast %238 : vector<1x16x128xf32> to vector<16x128xf32>
    %240 = vector.shape_cast %237 : vector<16x128xf32> to vector<1x16x128xf32>
    tpu.vector_store %arg6[%c0_266, %c0_267, %c0_268], %240 {strides = array<i32>} : memref<1x16x128xf32, #tpu.memory_space<vmem>>, vector<1x16x128xf32>,
    return
  }
  func.func @transform_0(%arg0: i32) -> (i32, i32, i32) {
    %c0_i32 = arith.constant 0 : i32
    %c0_i32_0 = arith.constant 0 : i32
    %c0_i32_1 = arith.constant 0 : i32
    return %arg0, %c0_i32, %c0_i32_0 : i32, i32, i32
  }
  func.func @transform_1(%arg0: i32) -> (i32, i32) {
    %c0_i32 = arith.constant 0 : i32
    %c0_i32_0 = arith.constant 0 : i32
    %c0_i32_1 = arith.constant 0 : i32
    return %c0_i32, %c0_i32_0 : i32, i32
  }
  func.func @transform_2(%arg0: i32) -> (i32, i32) {
    %c0_i32 = arith.constant 0 : i32
    %c0_i32_0 = arith.constant 0 : i32
    %c0_i32_1 = arith.constant 0 : i32
    return %c0_i32, %c0_i32_0 : i32, i32
  }
  func.func @transform_3(%arg0: i32) -> (i32, i32) {
    %c0_i32 = arith.constant 0 : i32
    %c0_i32_0 = arith.constant 0 : i32
    %c0_i32_1 = arith.constant 0 : i32
    return %c0_i32, %c0_i32_0 : i32, i32
  }
  func.func @transform_4(%arg0: i32) -> (i32, i32) {
    %c0_i32 = arith.constant 0 : i32
    %c0_i32_0 = arith.constant 0 : i32
    %c0_i32_1 = arith.constant 0 : i32
    return %c0_i32, %c0_i32_0 : i32, i32
  }
  func.func @transform_5(%arg0: i32) -> (i32, i32, i32) {
    %c0_i32 = arith.constant 0 : i32
    %c0_i32_0 = arith.constant 0 : i32
    %c0_i32_1 = arith.constant 0 : i32
    return %arg0, %c0_i32, %c0_i32_0 : i32, i32, i32
  }
}

</mosaic_0001>

<bundles_post_ra>
// kernel: ode_block_forward.1
= control target key start
LH: loop header
LB: loop body
LE: loop exit
PB: predicated region body
PF: predicated region fallthrough
CT: control target
= control target key end

     0   :  { %10 = vsyncpa [#allocation5], 0  ;;  %s3355_s18 = smov 0   ;;  %s5771_s0 = inlined_call_operand.vmem [shape: f32[2,16,128], index: 0, kind: input, shape index: {}]   ;;  %s5772_s1 = inlined_call_operand.vmem [shape: f32[384,128], index: 1, kind: input, shape index: {}]   ;;  %s5773_s2 = inlined_call_operand.vmem [shape: f32[1,128], index: 2, kind: input, shape index: {}]   ;;  %s5774_s3 = inlined_call_operand.hbm [shape: f32[384,128], index: 3, kind: input, shape index: {}]   ;;  %s5775_s4 = inlined_call_operand.vmem [shape: f32[1,128], index: 4, kind: input, shape index: {}]   ;;  %s5776_s5 = inlined_call_operand.vmem [shape: f32[2,16,128], index: 5, kind: output, shape index: {}]  }
   0x1 LB: > { %s174_s21 = sshll.u32 %s5774_s3, 4  ;;  %s3364_s22 = sadd.s32 4294967295, %s3319_s18   ;;  %s3319_s18 = sphi %s3355_s18, %s16_s18   ;;  %s175_s21 = int_to_ptr.hbm [resolvable:$true] %s174_s21 }
   0x2   : > { %p3237_p0 = scmp.ge.s32.totalorder %s3319_s18, 1  ;;  %p157_p1 = scmp.lt.s32.totalorder %s3319_s18, 3 }
   0x3   : > { %p3258_p2 = scmp.eq.s32.totalorder %s3364_s22, 0  ;;  %s3321_s23 = smov [#allocation4]  }
   0x4   : > { %p158_p3 = pnand %p3237_p0, %p157_p1  ;;  %s176_s24 = sshll.u32 %s3321_s23, 4  ;;  %s177_s24 = int_to_ptr.vmem [resolvable:$true] %s176_s24 }
   0x5   : > { %s3322_s25 = smov 128   ;;  %s3323_s26 = smov 8  }
   0x6   : > { %p3254_p4 = pneg %p158_p3  ;;  %203 = sbr.rel (%p158_p3) target bundleno = 3014 (0xbc6), region = 40 }
   0x8   : > { %p3255_p5 = pnand %p3258_p2, %p3254_p4 }
   0xa   : > { %3257 = dma.hbm_to_vmem [thread:$0]  (!%p3255_p5), %s175_s21, 6144, %s177_s24, [#allocation5], %s3322_s25, %s3322_s25, %s3323_s26  }
   0xb   : > { %3314 = dma.done.wait (%p3258_p2), [#allocation5], 6144  }
   0xc   : > { %3316 = vsyncadd (%p3258_p2), [#allocation5], 4294961152  ;;  %v3324_v0 = vmov 0.0   ;;  %v3372_v1 = vld [vmem:[%s5772_s1 + $0x178] sm:$0xff]  ;;  %v3382_v3 = vld [vmem:[%s5772_s1 + $0x170] sm:$0xff]  ;;  %p232_p6 = scmp.lt.s32.totalorder %s3364_s22, 1 }
   0xd   : > { %242 = vst [vmem:[#allocation2 + $0x28] sm:$0xff] %v3324_v0  ;;  %v3377_v2 = vld [vmem:[%s5772_s1 + $0x78] sm:$0xff]  ;;  %384 = vmatpush.msra.mxu2 %v3372_v1  ;;  %v3389_v4 = vld [vmem:[%s5772_s1 + $0x70] sm:$0xff]  ;;  %v3401_v6 = vld [vmem:[%s5772_s1 + $0x168] sm:$0xff]  ;;  %vm276_vm0 = vcmask 1046528   ;;  %vm268_vm1 = vcmask 1040384  }
   0xe   : > { %247 = vst [vmem:[#allocation2 + $0x20] sm:$0xff] %v3324_v0  ;;  %338 = vmatpush.msra.mxu0 %v3377_v2  ;;  %v3394_v5 = vld [vmem:[%s5772_s1 + $0xf8] sm:$0xff]  ;;  %v3406_v7 = vld [vmem:[%s5772_s1 + $0x68] sm:$0xff]  ;;  %v3411_v8 = vld [vmem:[%s5772_s1 + $0xf0] sm:$0xff]  ;;  %s5798_s22 = smov (!%p232_p6, %s3364_s22), 1 }
   0xf   : > { %248 = vst [vmem:[#allocation3] sm:$0xff] %v3324_v0  ;;  %361 = vmatpush.msra.mxu1 %v3394_v5  ;;  %385 = vmatpush.msra.mxu2 %v3382_v3  ;;  %v3418_v9 = vld [vmem:[%s5772_s1 + $0xe8] sm:$0xff]  ;;  %v3424_v10 = vld [vmem:[%s5772_s1 + $0x160] sm:$0xff]  ;;  %v3447_v13 = vld [vmem:[%s5772_s1 + $0x158] sm:$0xff]  ;;  %s3248_s15 = sshll.u32 %s5798_s22, 4 }
  0x10   : > { %253 = vst [vmem:[#allocation3 + $0x10] sm:$0xff] %v3324_v0  ;;  %339 = vmatpush.msra.mxu0 %v3389_v4  ;;  %v3429_v11 = vld [vmem:[%s5772_s1 + $0x60] sm:$0xff]  ;;  %v3452_v14 = vld [vmem:[%s5772_s1 + $0x58] sm:$0xff]  ;;  %v3465_v16 = vld [vmem:[%s5772_s1 + $0x150] sm:$0xff]  ;;  %s236_s30 = scalar_lea.vmem %s5771_s0, %s3248_s15  ;;  %s241_s17 = scalar_lea.vmem %s5776_s5, %s3248_s15 }
  0x11   : > { %362 = vmatpush.msra.mxu1 %v3411_v8  ;;  %386 = vmatpush.msra.mxu2 %v3401_v6  ;;  %v3436_v12 = vld [vmem:[%s5772_s1 + $0xe0] sm:$0xff]  ;;  %v3459_v15 = vld [vmem:[%s5772_s1 + $0xd8] sm:$0xff]  ;;  %v3470_v17 = vld [vmem:[%s5772_s1 + $0x50] sm:$0xff] }
  0x12   : > { %340 = vmatpush.msra.mxu0 %v3406_v7  ;;  %v3477_v18 = vld [vmem:[%s5772_s1 + $0xd0] sm:$0xff]  ;;  %v3484_v19 = vld [vmem:[%s5772_s1 + $0x148] sm:$0xff]  ;;  %v3502_v22 = vld [vmem:[%s5772_s1 + $0x140] sm:$0xff] }
  0x13   : > { %363 = vmatpush.msra.mxu1 %v3418_v9  ;;  %387 = vmatpush.msra.mxu2 %v3424_v10  ;;  %v3489_v20 = vld [vmem:[%s5772_s1 + $0x48] sm:$0xff]  ;;  %v3507_v23 = vld [vmem:[%s5772_s1 + $0x40] sm:$0xff]  ;;  %v3525_v25 = vld [vmem:[%s5772_s1 + $0x138] sm:$0xff] }
  0x14   : > { %341 = vmatpush.msra.mxu0 %v3429_v11  ;;  %v3496_v21 = vld [vmem:[%s5772_s1 + $0xc8] sm:$0xff]  ;;  %v3519_v24 = vld [vmem:[%s5772_s1 + $0xc0] sm:$0xff]  ;;  %v3530_v26 = vld [vmem:[%s5772_s1 + $0x38] sm:$0xff] }
  0x15   : > { %364 = vmatpush.msra.mxu1 %v3436_v12  ;;  %388 = vmatpush.msra.mxu2 %v3447_v13  ;;  %v3537_v27 = vld [vmem:[%s5772_s1 + $0xb8] sm:$0xff]  ;;  %v3539_v28 = vld [vmem:[%s236_s30] sm:$0xff]  ;;  %v3541_v29 = vld [vmem:[%s236_s30 + $0x8] sm:$0xff] }
  0x16   : > { %342 = vmatpush.msra.mxu0 %v3452_v14  ;;  %v3547_v30 = vld [vmem:[%s5772_s1 + $0x130] sm:$0xff]  ;;  %v5777_v32 = vrot.slane %v3539_v28, 7  ;;  %v278_v33 = vrot.slane %v3541_v29, 1  ;;  %v3563_v35 = vld [vmem:[#allocation4 + $0x78] sm:$0xff]  ;;  %v3569_v36 = vld [vmem:[%s5772_s1 + $0x128] sm:$0xff]  ;;  %v277_v52 = vrot.slane %v3539_v28, 1 }
  0x17   : > { %365 = vmatpush.msra.mxu1 %v3459_v15  ;;  %389 = vmatpush.msra.mxu2 %v3465_v16  ;;  %v3552_v31 = vld [vmem:[%s5772_s1 + $0x30] sm:$0xff]  ;;  %v3574_v37 = vld [vmem:[%s5772_s1 + $0x28] sm:$0xff]  ;;  %v3594_v41 = vld [vmem:[%s5772_s1 + $0x120] sm:$0xff] }
  0x18   : > { %343 = vmatpush.msra.mxu0 %v3470_v17  ;;  %v3561_v34 = vld [vmem:[%s5772_s1 + $0xb0] sm:$0xff]  ;;  %274 = vst [vmem:[#allocation2 + $0x28] sm:$0xfe] %v5777_v32  ;;  %481 = vmatpush.msra.mxu3 %v3563_v35  ;;  %v3586_v39 = vld [vmem:[%s5772_s1 + $0xa8] sm:$0xff]  ;;  %v3599_v42 = vld [vmem:[%s5772_s1 + $0x20] sm:$0xff]  ;;  %v279_v59 = vsel %vm276_vm0, %v277_v52, %v278_v33 }
  0x19   : > { %366 = vmatpush.msra.mxu1 %v3477_v18  ;;  %390 = vmatpush.msra.mxu2 %v3484_v19  ;;  %v3579_v38 = vld [vmem:[#allocation4 + $0x70] sm:$0xff]  ;;  %283 = vst [vmem:[#allocation2 + $0x20] sm:$0x7f] %v278_v33  ;;  %v3588_v40 = vld [vmem:[#allocation4 + $0x68] sm:$0xff]  ;;  %v3607_v43 = vld [vmem:[%s5772_s1 + $0x118] sm:$0xff]  ;;  %v270_v33 = vrot.slane %v3541_v29, 7 }
  0x1a   : > { %344 = vmatpush.msra.mxu0 %v3489_v20  ;;  %482 = vmatpush.msra.mxu3 %v3579_v38  ;;  %v3612_v44 = vld [vmem:[%s5772_s1 + $0xa0] sm:$0xff]  ;;  %v3620_v46 = vld [vmem:[%s5772_s1 + $0x18] sm:$0xff]  ;;  %v3636_v49 = vld [vmem:[%s5772_s1 + $0x110] sm:$0xff] }
  0x1b   : > { %367 = vmatpush.msra.mxu1 %v3496_v21  ;;  %391 = vmatpush.msra.mxu2 %v3502_v22  ;;  %v3614_v45 = vld [vmem:[#allocation4 + $0x60] sm:$0xff]  ;;  %v3628_v47 = vld [vmem:[%s5772_s1 + $0x98] sm:$0xff]  ;;  %v3641_v50 = vld [vmem:[%s5772_s1 + $0x10] sm:$0xff] }
  0x1c   : > { %345 = vmatpush.msra.mxu0 %v3507_v23  ;;  %483 = vmatpush.msra.mxu3 %v3588_v40  ;;  %v3630_v48 = vld [vmem:[#allocation4 + $0x58] sm:$0xff]  ;;  %v3649_v51 = vld [vmem:[%s5772_s1 + $0x90] sm:$0xff]  ;;  %v3658_v54 = vld [vmem:[%s5772_s1 + $0x108] sm:$0xff] }
  0x1d   : > { %368 = vmatpush.msra.mxu1 %v3519_v24  ;;  %392 = vmatpush.msra.mxu2 %v3525_v25  ;;  %5784 = vst [vmem:[#allocation7_spill] sm:$0xff] %v3649_v51  ;;  %v3652_v53 = vld [vmem:[#allocation4 + $0x50] sm:$0xff]  ;;  %v291_v55 = vld [vmem:[%s5772_s1 + $0x8] sm:$0xff]  ;;  %v3675_v57 = vld [vmem:[%s5772_s1 + $0x100] sm:$0xff] }
  0x1e   : > { %346 = vmatpush.msra.mxu0 %v3530_v26  ;;  %484 = vmatpush.msra.mxu3 %v3614_v45  ;;  %v3669_v56 = vld [vmem:[%s5772_s1 + $0x88] sm:$0xff]  ;;  %v290_v58 = vld [vmem:[%s5772_s1] sm:$0xff]  ;;  %v464_v62 = vld [vmem:[#allocation4 + $0xf8] sm:$0xff] }
  0x1f   : > { %369 = vmatpush.msra.mxu1 %v3537_v27  ;;  %393 = vmatpush.msra.mxu2 %v3547_v30  ;;  %5785 = vst [vmem:[#allocation8_spill] sm:$0xff] %v3669_v56  ;;  %v284_v60 = vld [vmem:[#allocation2 + $0x28] sm:$0xff]  ;;  %v3687_v61 = vld [vmem:[%s5772_s1 + $0x80] sm:$0xff]  ;;  %v463_v63 = vld [vmem:[#allocation4 + $0xf0] sm:$0xff] }
  0x20   : > { %347 = vmatpush.msra.mxu0 %v3552_v31  ;;  %485 = vmatpush.msra.mxu3 %v3630_v48  ;;  %5786 = vst [vmem:[#allocation9_spill] sm:$0xff] %v3687_v61  ;;  %v3690_v0 = vld [vmem:[#allocation4 + $0x178] sm:$0xff]  ;;  %v462_v52 = vld [vmem:[#allocation4 + $0xe8] sm:$0xff]  ;;  %v3695_v32 = vld [vmem:[#allocation4 + $0x170] sm:$0xff] }
  0x21   : > { %370 = vmatpush.msra.mxu1 %v3561_v34  ;;  %394 = vmatpush.msra.mxu2 %v3569_v36 }
  0x22   : > { %348 = vmatpush.msra.mxu0 %v3574_v37  ;;  %486 = vmatpush.msra.mxu3 %v3652_v53 }
  0x23   : > { %371 = vmatpush.msra.mxu1 %v3586_v39  ;;  %395 = vmatpush.msra.mxu2 %v3594_v41 }
  0x24   : > { %349 = vmatpush.msra.mxu0 %v3599_v42 }
  0x25   : > { %372 = vmatpush.msra.mxu1 %v3612_v44  ;;  %396 = vmatpush.msra.mxu2 %v3607_v43 }
  0x26   : > { %350 = vmatpush.msra.mxu0 %v3620_v46 }
  0x27   : > { %373 = vmatpush.msra.mxu1 %v3628_v47  ;;  %397 = vmatpush.msra.mxu2 %v3636_v49 }
  0x28   : > { %351 = vmatpush.msra.mxu0 %v3641_v50 }
  0x29   : > { %374 = vmatpush.msra.mxu1 %v3649_v51  ;;  %398 = vmatpush.msra.mxu2 %v3658_v54  ;;  %v460_v51 = vld [vmem:[#allocation4 + $0xd8] sm:$0xff] }
  0x2a   : > { %352 = vmatpush.msra.mxu0 %v291_v55 }
  0x2b   : > { %375 = vmatpush.msra.mxu1 %v3669_v56  ;;  %399 = vmatpush.msra.mxu2 %v3675_v57 }
  0x2c   : > { %353 = vmatpush.msra.mxu0 %v290_v58  ;;  %400 = vmatmul.f32.vlgmr.msra.gmra.mxu2 %v279_v59  ;;  %v461_v59 = vld [vmem:[#allocation4 + $0xe0] sm:$0xff] }
  0x2d   : > { %354 = vmatmul.f32.vlgmr.msra.gmra.mxu0 %v284_v60  ;;  %376 = vmatpush.msra.mxu1 %v3687_v61  ;;  %v289_v60 = vld [vmem:[#allocation2 + $0x20] sm:$0xff]  ;;  %v5787_v61 = vrot.slane %v3539_v28, 7 }
  0x2e   : > { %504 = vmatpush.msrb.mxu0 %v464_v62  ;;  %377 = vmatmul.f32.vlgmr.msra.gmra.mxu1 %v3539_v28 }
  0x2f   : > { %626 = vmatpush.msrb.mxu2 %v3377_v2  ;;  %527 = vmatpush.msrb.mxu1 %v3690_v0  ;;  %v271_v56 = vsel %vm268_vm1, %v5787_v61, %v270_v33  ;;  %v459_v2 = vld [vmem:[#allocation4 + $0xd0] sm:$0xff]  ;;  %v3744_v61 = vld [vmem:[#allocation4 + $0x138] sm:$0xff] }
  0x30   : > { %505 = vmatpush.msrb.mxu0 %v463_v63  ;;  %v3750_v33 = vld [vmem:[#allocation4 + $0x130] sm:$0xff] }
  0x31   : > { %627 = vmatpush.msrb.mxu2 %v3389_v4  ;;  %528 = vmatpush.msrb.mxu1 %v3695_v32  ;;  %v458_v4 = vld [vmem:[#allocation4 + $0xc8] sm:$0xff] }
  0x32   : > { %506 = vmatpush.msrb.mxu0 %v462_v52 }
  0x33   : > { %628 = vmatpush.msrb.mxu2 %v3406_v7  ;;  %v457_v7 = vld [vmem:[#allocation4 + $0xc0] sm:$0xff] }
  0x34   : > { %507 = vmatpush.msrb.mxu0 %v461_v59  ;;  %403 = vmatmul.f32.gmra.mxu2 %v289_v60  ;;  %v3756_v60 = vld [vmem:[#allocation4 + $0x128] sm:$0xff] }
  0x35   : > { %357 = vmatmul.f32.gmra.mxu0 %v271_v56  ;;  %629 = vmatpush.msrb.mxu2 %v3429_v11  ;;  %v3717_v11 = vld [vmem:[#allocation4 + $0x168] sm:$0xff]  ;;  %v3740_v56 = vld [vmem:[#allocation4 + $0x38] sm:$0xff] }
  0x36   : > { %508 = vmatpush.msrb.mxu0 %v460_v51  ;;  %380 = vmatmul.f32.gmra.mxu1 %v3541_v29 }
  0x37   : > { %630 = vmatpush.msrb.mxu2 %v3452_v14  ;;  %529 = vmatpush.msrb.mxu1 %v3717_v11  ;;  %v456_v14 = vld [vmem:[#allocation4 + $0xb8] sm:$0xff] }
  0x38   : > { %509 = vmatpush.msrb.mxu0 %v459_v2 }
  0x39   : > { %631 = vmatpush.msrb.mxu2 %v3470_v17  ;;  %v3720_v17 = vld [vmem:[#allocation4 + $0x160] sm:$0xff] }
  0x3a   : > { %510 = vmatpush.msrb.mxu0 %v458_v4  ;;  %530 = vmatpush.msrb.mxu1 %v3720_v17 }
  0x3b   : > { %632 = vmatpush.msrb.mxu2 %v3489_v20  ;;  %v455_v20 = vld [vmem:[#allocation4 + $0xb0] sm:$0xff] }
  0x3c   : > { %511 = vmatpush.msrb.mxu0 %v457_v7 }
  0x3d   : > { %633 = vmatpush.msrb.mxu2 %v3507_v23  ;;  %v3723_v23 = vld [vmem:[#allocation4 + $0x158] sm:$0xff] }
  0x3e   : > { %512 = vmatpush.msrb.mxu0 %v456_v14  ;;  %531 = vmatpush.msrb.mxu1 %v3723_v23 }
  0x3f   : > { %634 = vmatpush.msrb.mxu2 %v3530_v26  ;;  %v454_v26 = vld [vmem:[#allocation4 + $0xa8] sm:$0xff] }
  0x40   : > { %513 = vmatpush.msrb.mxu0 %v455_v20 }
  0x41   : > { %635 = vmatpush.msrb.mxu2 %v3552_v31  ;;  %v3726_v31 = vld [vmem:[#allocation4 + $0x150] sm:$0xff] }
  0x42   : > { %514 = vmatpush.msrb.mxu0 %v454_v26  ;;  %532 = vmatpush.msrb.mxu1 %v3726_v31 }
  0x43   : > { %636 = vmatpush.msrb.mxu2 %v3574_v37  ;;  %v3728_v37 = vld [vmem:[#allocation4 + $0x48] sm:$0xff] }
  0x44   : > { %487 = vmatpush.msra.mxu3 %v3728_v37 }
  0x45   : > { %637 = vmatpush.msrb.mxu2 %v3599_v42  ;;  %v453_v42 = vld [vmem:[#allocation4 + $0xa0] sm:$0xff] }
  0x46   : > { %515 = vmatpush.msrb.mxu0 %v453_v42 }
  0x47   : > { %638 = vmatpush.msrb.mxu2 %v3620_v46  ;;  %v3732_v46 = vld [vmem:[#allocation4 + $0x148] sm:$0xff] }
  0x48   : > { %533 = vmatpush.msrb.mxu1 %v3732_v46 }
  0x49   : > { %639 = vmatpush.msrb.mxu2 %v3641_v50  ;;  %v3734_v50 = vld [vmem:[#allocation4 + $0x40] sm:$0xff] }
  0x4a   : > { %488 = vmatpush.msra.mxu3 %v3734_v50 }
  0x4b   : > { %640 = vmatpush.msrb.mxu2 %v291_v55  ;;  %v3738_v55 = vld [vmem:[#allocation4 + $0x140] sm:$0xff] }
  0x4c   : > { %534 = vmatpush.msrb.mxu1 %v3738_v55  ;;  %489 = vmatpush.msra.mxu3 %v3740_v56 }
  0x4d   : > { %641 = vmatpush.msrb.mxu2 %v290_v58  ;;  %v451_v58 = vld [vmem:[#allocation4 + $0x90] sm:$0xff] }
  0x4e   : > { %535 = vmatpush.msrb.mxu1 %v3744_v61 }
  0x4f   : > { %792 = vmatpush.msra.mxu2 %v464_v62  ;;  %v3746_v62 = vld [vmem:[#allocation4 + $0x30] sm:$0xff] }
  0x50   : > { %490 = vmatpush.msra.mxu3 %v3746_v62  ;;  %536 = vmatpush.msrb.mxu1 %v3750_v33 }
  0x51   : > { %793 = vmatpush.msra.mxu2 %v463_v63  ;;  %v450_v63 = vld [vmem:[#allocation4 + $0x88] sm:$0xff] }
  0x52   : > { %537 = vmatpush.msrb.mxu1 %v3756_v60 }
  0x53   : > { %794 = vmatpush.msra.mxu2 %v462_v52  ;;  %v3752_v52 = vld [vmem:[#allocation4 + $0x28] sm:$0xff] }
  0x54   : > { %491 = vmatpush.msra.mxu3 %v3752_v52 }
  0x55   : > { %795 = vmatpush.msra.mxu2 %v461_v59  ;;  %v449_v59 = vld [vmem:[#allocation4 + $0x80] sm:$0xff] }
  0x57   : > { %796 = vmatpush.msra.mxu2 %v460_v51  ;;  %v452_v51 = vld [vmem:[#allocation4 + $0x98] sm:$0xff] }
  0x58   : > { %516 = vmatpush.msrb.mxu0 %v452_v51 }
  0x59   : > { %797 = vmatpush.msra.mxu2 %v459_v2  ;;  %v3758_v2 = vld [vmem:[#allocation4 + $0x20] sm:$0xff] }
  0x5a   : > { %517 = vmatpush.msrb.mxu0 %v451_v58  ;;  %492 = vmatpush.msra.mxu3 %v3758_v2 }
  0x5b   : > { %798 = vmatpush.msra.mxu2 %v458_v4  ;;  %v3763_v4 = vld [vmem:[#allocation4 + $0x120] sm:$0xff] }
  0x5c   : > { %518 = vmatpush.msrb.mxu0 %v450_v63  ;;  %538 = vmatpush.msrb.mxu1 %v3763_v4 }
  0x5d   : > { %799 = vmatpush.msra.mxu2 %v457_v7  ;;  %v3765_v7 = vld [vmem:[#allocation4 + $0x18] sm:$0xff] }
  0x5e   : > { %519 = vmatpush.msrb.mxu0 %v449_v59  ;;  %493 = vmatpush.msra.mxu3 %v3765_v7 }
  0x5f   : > { %800 = vmatpush.msra.mxu2 %v456_v14  ;;  %v3770_v14 = vld [vmem:[#allocation4 + $0x118] sm:$0xff] }
  0x60   : > { %672 = vmatpush.msra.mxu0 %v3372_v1  ;;  %539 = vmatpush.msrb.mxu1 %v3770_v14  ;;  %v3777_v1 = vld [vmem:[#allocation4 + $0x110] sm:$0xff] }
  0x61   : > { %801 = vmatpush.msra.mxu2 %v455_v20  ;;  %v3772_v20 = vld [vmem:[#allocation4 + $0x10] sm:$0xff] }
  0x62   : > { %673 = vmatpush.msra.mxu0 %v3382_v3  ;;  %494 = vmatpush.msra.mxu3 %v3772_v20  ;;  %v3784_v3 = vld [vmem:[#allocation4 + $0x108] sm:$0xff] }
  0x63   : > { %802 = vmatpush.msra.mxu2 %v454_v26  ;;  %v3779_v26 = vld [vmem:[#allocation4 + $0x8] sm:$0xff]  ;;  %540 = vmatpush.msrb.mxu1 %v3777_v1 }
  0x64   : > { %674 = vmatpush.msra.mxu0 %v3401_v6  ;;  %495 = vmatpush.msra.mxu3 %v3779_v26  ;;  %v3791_v6 = vld [vmem:[#allocation4 + $0x100] sm:$0xff] }
  0x65   : > { %803 = vmatpush.msra.mxu2 %v453_v42  ;;  %v3786_v42 = vld [vmem:[#allocation4] sm:$0xff]  ;;  %541 = vmatpush.msrb.mxu1 %v3784_v3 }
  0x66   : > { %675 = vmatpush.msra.mxu0 %v3424_v10  ;;  %496 = vmatpush.msra.mxu3 %v3786_v42 }
  0x67   : > { %804 = vmatpush.msra.mxu2 %v452_v51  ;;  %542 = vmatpush.msrb.mxu1 %v3791_v6 }
  0x68   : > { %676 = vmatpush.msra.mxu0 %v3447_v13  ;;  %649 = vmatpush.msrb.mxu3 %v3394_v5  ;;  %v3809_v5 = vld [vmem:[%s5773_s2] ss:$0 sm:$0xff] }
  0x69   : > { %805 = vmatpush.msra.mxu2 %v451_v58  ;;  %769 = vmatpush.msra.mxu1 %v3563_v35  ;;  %v5789_v35 = vld [vmem:[#allocation8_spill] sm:$0xff] }
  0x6a   : > { %677 = vmatpush.msra.mxu0 %v3465_v16  ;;  %650 = vmatpush.msrb.mxu3 %v3411_v8 }
  0x6b   : > { %806 = vmatpush.msra.mxu2 %v450_v63  ;;  %770 = vmatpush.msra.mxu1 %v3579_v38 }
  0x6c   : > { %678 = vmatpush.msra.mxu0 %v3484_v19  ;;  %651 = vmatpush.msrb.mxu3 %v3418_v9 }
  0x6d   : > { %807 = vmatpush.msra.mxu2 %v449_v59  ;;  %771 = vmatpush.msra.mxu1 %v3588_v40 }
  0x6e   : > { %679 = vmatpush.msra.mxu0 %v3502_v22  ;;  %652 = vmatpush.msrb.mxu3 %v3436_v12 }
  0x6f   : > { %772 = vmatpush.msra.mxu1 %v3614_v45 }
  0x70   : > { %680 = vmatpush.msra.mxu0 %v3525_v25  ;;  %653 = vmatpush.msrb.mxu3 %v3459_v15 }
  0x71   : > { %773 = vmatpush.msra.mxu1 %v3630_v48 }
  0x72   : > { %681 = vmatpush.msra.mxu0 %v3547_v30  ;;  %654 = vmatpush.msrb.mxu3 %v3477_v18  ;;  %v5788_v30 = vld [vmem:[#allocation7_spill] sm:$0xff] }
  0x73   : > { %774 = vmatpush.msra.mxu1 %v3652_v53 }
  0x74   : > { %682 = vmatpush.msra.mxu0 %v3569_v36  ;;  %655 = vmatpush.msrb.mxu3 %v3496_v21 }
  0x75   : > { %775 = vmatpush.msra.mxu1 %v3728_v37 }
  0x76   : > { %683 = vmatpush.msra.mxu0 %v3594_v41  ;;  %656 = vmatpush.msrb.mxu3 %v3519_v24 }
  0x77   : > { %776 = vmatpush.msra.mxu1 %v3734_v50 }
  0x78   : > { %684 = vmatpush.msra.mxu0 %v3607_v43  ;;  %657 = vmatpush.msrb.mxu3 %v3537_v27 }
  0x79   : > { %777 = vmatpush.msra.mxu1 %v3740_v56 }
  0x7a   : > { %685 = vmatpush.msra.mxu0 %v3636_v49  ;;  %658 = vmatpush.msrb.mxu3 %v3561_v34 }
  0x7b   : > { %778 = vmatpush.msra.mxu1 %v3746_v62 }
  0x7c   : > { %686 = vmatpush.msra.mxu0 %v3658_v54  ;;  %659 = vmatpush.msrb.mxu3 %v3586_v39  ;;  %v5790_v39 = vld [vmem:[#allocation9_spill] sm:$0xff] }
  0x7d   : > { %779 = vmatpush.msra.mxu1 %v3752_v52 }
  0x7e   : > { %687 = vmatpush.msra.mxu0 %v3675_v57  ;;  %660 = vmatpush.msrb.mxu3 %v3612_v44 }
  0x7f   : > { %780 = vmatpush.msra.mxu1 %v3758_v2 }
  0x80   : > { %661 = vmatpush.msrb.mxu3 %v3628_v47 }
  0x81   : > { %781 = vmatpush.msra.mxu1 %v3765_v7 }
  0x82   : > { %662 = vmatpush.msrb.mxu3 %v5788_v30  ;;  %v3932_v30 = vld [vmem:[%s5772_s1 + $0x178] sm:$0xff] }
  0x83   : > { %782 = vmatpush.msra.mxu1 %v3772_v20 }
  0x84   : > { %663 = vmatpush.msrb.mxu3 %v5789_v35  ;;  %v3943_v35 = vld [vmem:[%s5772_s1 + $0xc8] sm:$0xff] }
  0x85   : > { %783 = vmatpush.msra.mxu1 %v3779_v26 }
  0x86   : > { %664 = vmatpush.msrb.mxu3 %v5790_v39  ;;  %v3961_v39 = vld [vmem:[%s5772_s1 + $0xc0] sm:$0xff] }
  0x87   : > { %784 = vmatpush.msra.mxu1 %v3786_v42 }
  0xaa   : > { %v355_v8 = vpop.f32.mrf.mxu0 }
  0xab   : > { %v356_v9 = vadd.f32 %v3809_v5, %v355_v8  ;;  %v378_v10 = vpop.f32.mrf.mxu1 }
  0xad   : > { %v379_v12 = vadd.f32 %v378_v10, %v356_v9 }
  0xaf   : > { %v401_v13 = vpop.f32.mrf.mxu2 }
  0xb0   : > { %v402_v15 = vadd.f32 %v401_v13, %v379_v12 }
  0xb2   : > { %v358_v16 = vpop.f32.mrf.mxu0  ;;  %v407_v18 = vmax.f32 %v402_v15, 0.0 }
  0xb3   : > { %v359_v19 = vadd.f32 %v3809_v5, %v358_v16  ;;  %v381_v21 = vpop.f32.mrf.mxu1 }
  0xb4   : > { %v413_v22 = vrot.slane %v407_v18, 7  ;;  %520 = vmatmul.f32.vlgmr.msrb.gmra.mxu0 %v407_v18  ;;  %v420_v36 = vrot.slane %v407_v18, 1 }
  0xb5   : > { %v382_v24 = vadd.f32 %v381_v21, %v359_v19  ;;  %v3896_v19 = vld [vmem:[%s5772_s1 + $0xf0] sm:$0xff]  ;;  %v3902_v21 = vld [vmem:[%s5772_s1 + $0xe8] sm:$0xff] }
  0xb6   : > { %418 = vst [vmem:[#allocation3] sm:$0xfe] %v413_v22 }
  0xb7   : > { %v404_v25 = vpop.f32.mrf.mxu2 }
  0xb8   : > { %v405_v27 = vadd.f32 %v404_v25, %v382_v24  ;;  %v3914_v24 = vld [vmem:[%s5772_s1 + $0xd8] sm:$0xff] }
  0xb9   : > { %v3920_v25 = vld [vmem:[%s5772_s1 + $0x78] sm:$0xff] }
  0xba   : > { %v408_v34 = vmax.f32 %v405_v27, 0.0  ;;  %v3925_v27 = vld [vmem:[%s5772_s1 + $0xd0] sm:$0xff]  ;;  %914 = vmatpush.msrb.mxu0 %v3920_v25 }
  0xbc   : > { %v421_v38 = vrot.slane %v408_v34, 1  ;;  %523 = vmatmul.f32.gmra.mxu0 %v408_v34  ;;  %v414_v43 = vrot.slane %v408_v34, 7  ;;  %v3937_v34 = vld [vmem:[%s5772_s1 + $0x70] sm:$0xff] }
  0xbd   : > { %v427_v40 = vld [vmem:[#allocation3] sm:$0xff]  ;;  %915 = vmatpush.msrb.mxu0 %v3937_v34 }
  0xbe   : > { %v422_v41 = vsel %vm276_vm0, %v420_v36, %v421_v38  ;;  %426 = vst [vmem:[#allocation3 + $0x10] sm:$0x7f] %v421_v38  ;;  %497 = vmatmul.f32.vlgmr.msra.gmra.mxu3 %v427_v40  ;;  %v415_v44 = vsel %vm268_vm1, %v413_v22, %v414_v43  ;;  %v3908_v22 = vld [vmem:[%s5772_s1 + $0xe0] sm:$0xff]  ;;  %v3950_v36 = vld [vmem:[%s5772_s1 + $0x170] sm:$0xff]  ;;  %v3955_v38 = vld [vmem:[%s5772_s1 + $0x68] sm:$0xff] }
  0xbf   : > { %543 = vmatmul.f32.vlgmr.msrb.gmra.mxu1 %v422_v41  ;;  %815 = vmatpush.msra.mxu3 %v3690_v0  ;;  %v3968_v40 = vld [vmem:[%s5772_s1 + $0x168] sm:$0xff]  ;;  %v3973_v41 = vld [vmem:[%s5772_s1 + $0x60] sm:$0xff]  ;;  %v3979_v43 = vld [vmem:[%s5772_s1 + $0xb8] sm:$0xff] }
  0xc0   : > { %916 = vmatpush.msrb.mxu0 %v3955_v38 }
  0xc1   : > { %816 = vmatpush.msra.mxu3 %v3695_v32  ;;  %v3865_v32 = vld [vmem:[%s5775_s4] ss:$0 sm:$0xff] }
  0xc2   : > { %917 = vmatpush.msrb.mxu0 %v3973_v41 }
  0xc3   : > { %817 = vmatpush.msra.mxu3 %v3717_v11 }
  0xc5   : > { %v432_v45 = vld [vmem:[#allocation3 + $0x10] sm:$0xff]  ;;  %818 = vmatpush.msra.mxu3 %v3720_v17 }
  0xc6   : > { %500 = vmatmul.f32.gmra.mxu3 %v415_v44  ;;  %v3986_v44 = vld [vmem:[%s5772_s1 + $0x160] sm:$0xff] }
  0xc7   : > { %546 = vmatmul.f32.gmra.mxu1 %v432_v45  ;;  %819 = vmatpush.msra.mxu3 %v3723_v23  ;;  %v3991_v45 = vld [vmem:[%s5772_s1 + $0x58] sm:$0xff] }
  0xc8   : > { %918 = vmatpush.msrb.mxu0 %v3991_v45 }
  0xc9   : > { %820 = vmatpush.msra.mxu3 %v3726_v31 }
  0xcb   : > { %821 = vmatpush.msra.mxu3 %v3732_v46 }
  0xcd   : > { %822 = vmatpush.msra.mxu3 %v3738_v55 }
  0xcf   : > { %823 = vmatpush.msra.mxu3 %v3744_v61 }
  0xd1   : > { %824 = vmatpush.msra.mxu3 %v3750_v33 }
  0xd3   : > { %825 = vmatpush.msra.mxu3 %v3756_v60 }
  0xd5   : > { %826 = vmatpush.msra.mxu3 %v3763_v4 }
  0xd7   : > { %827 = vmatpush.msra.mxu3 %v3770_v14 }
  0xd9   : > { %828 = vmatpush.msra.mxu3 %v3777_v1 }
  0xdb   : > { %829 = vmatpush.msra.mxu3 %v3784_v3 }
  0xdd   : > { %830 = vmatpush.msra.mxu3 %v3791_v6 }
 0x131   : > { %v521_v49 = vpop.f32.mrf.mxu0 }
 0x139   : > { %v524_v31 = vpop.f32.mrf.mxu0 }
 0x13c   : > { %v544_v53 = vpop.f32.mrf.mxu1 }
 0x141   : > { %v498_v47 = vpop.f32.mrf.mxu3 }
 0x142   : > { %v499_v48 = vadd.f32 %v3865_v32, %v498_v47  ;;  %v3997_v47 = vld [vmem:[%s5772_s1 + $0xb0] sm:$0xff] }
 0x144   : > { %v522_v54 = vadd.f32 %v521_v49, %v499_v48  ;;  %v547_v37 = vpop.f32.mrf.mxu1  ;;  %v4004_v48 = vld [vmem:[%s5772_s1 + $0x158] sm:$0xff]  ;;  %v4009_v49 = vld [vmem:[%s5772_s1 + $0x50] sm:$0xff] }
 0x145   : > { %919 = vmatpush.msrb.mxu0 %v4009_v49 }
 0x146   : > { %v545_v57 = vadd.f32 %v544_v53, %v522_v54  ;;  %v4015_v53 = vld [vmem:[%s5772_s1 + $0xa8] sm:$0xff]  ;;  %v4022_v54 = vld [vmem:[%s5772_s1 + $0x150] sm:$0xff] }
 0x148   : > { %v3869_v0 = vadd.f32 %v545_v57, %v3539_v28  ;;  %v875_v57 = vld [vmem:[%s5772_s1 + $0x48] sm:$0xff] }
 0x149   : > { %v501_v11 = vpop.f32.mrf.mxu3  ;;  %920 = vmatpush.msrb.mxu0 %v875_v57 }
 0x14a   : > { %v558_v17 = vrot.slane %v3869_v0, 7  ;;  %v502_v23 = vadd.f32 %v3865_v32, %v501_v11  ;;  %665 = vmatmul.f32.vlgmr.msrb.gmra.mxu3 %v3869_v0  ;;  %v565_v55 = vrot.slane %v3869_v0, 1  ;;  %v4031_v11 = vld [vmem:[%s5772_s1 + $0xa0] sm:$0xff] }
 0x14c   : > { %563 = vst [vmem:[#allocation2 + $0x28] sm:$0xfe] %v558_v17  ;;  %v525_v46 = vadd.f32 %v524_v31, %v502_v23  ;;  %v874_v23 = vld [vmem:[%s5772_s1 + $0x40] sm:$0xff]  ;;  %v4046_v31 = vld [vmem:[%s5772_s1 + $0x98] sm:$0xff] }
 0x14d   : > { %921 = vmatpush.msrb.mxu0 %v874_v23 }
 0x14e   : > { %v548_v50 = vadd.f32 %v547_v37, %v525_v46  ;;  %v4052_v37 = vld [vmem:[%s5772_s1 + $0x140] sm:$0xff]  ;;  %v873_v46 = vld [vmem:[%s5772_s1 + $0x38] sm:$0xff] }
 0x14f   : > { %922 = vmatpush.msrb.mxu0 %v873_v46 }
 0x150   : > { %v3875_v51 = vadd.f32 %v548_v50, %v3541_v29  ;;  %v3886_v29 = vld [vmem:[%s5772_s1 + $0xf8] sm:$0xff]  ;;  %v4061_v50 = vld [vmem:[%s5772_s1 + $0x90] sm:$0xff] }
 0x151   : > { %937 = vmatpush.msrb.mxu1 %v3886_v29 }
 0x152   : > { %v566_v28 = vrot.slane %v3875_v51, 1  ;;  %668 = vmatmul.f32.gmra.mxu3 %v3875_v51  ;;  %v559_v61 = vrot.slane %v3875_v51, 7 }
 0x153   : > { %v572_v56 = vld [vmem:[#allocation2 + $0x28] sm:$0xff]  ;;  %938 = vmatpush.msrb.mxu1 %v3896_v19 }
 0x154   : > { %v567_v58 = vsel %vm276_vm0, %v565_v55, %v566_v28  ;;  %571 = vst [vmem:[#allocation2 + $0x20] sm:$0x7f] %v566_v28  ;;  %642 = vmatmul.f32.vlgmr.msrb.gmra.mxu2 %v572_v56  ;;  %v560_v62 = vsel %vm268_vm1, %v558_v17, %v559_v61  ;;  %v4037_v17 = vld [vmem:[%s5772_s1 + $0x148] sm:$0xff]  ;;  %v4067_v55 = vld [vmem:[%s5772_s1 + $0x138] sm:$0xff]  ;;  %v872_v28 = vld [vmem:[%s5772_s1 + $0x30] sm:$0xff] }
 0x155   : > { %688 = vmatmul.f32.vlgmr.msra.gmra.mxu0 %v567_v58  ;;  %939 = vmatpush.msrb.mxu1 %v3902_v21  ;;  %v4076_v56 = vld [vmem:[%s5772_s1 + $0x88] sm:$0xff]  ;;  %v4082_v58 = vld [vmem:[%s5772_s1 + $0x130] sm:$0xff] }
 0x156   : > { %960 = vmatpush.msrb.mxu2 %v3932_v30  ;;  %923 = vmatpush.msrb.mxu0 %v872_v28  ;;  %v871_v61 = vld [vmem:[%s5772_s1 + $0x28] sm:$0xff] }
 0x157   : > { %940 = vmatpush.msrb.mxu1 %v3908_v22 }
 0x158   : > { %961 = vmatpush.msrb.mxu2 %v3950_v36  ;;  %924 = vmatpush.msrb.mxu0 %v871_v61 }
 0x159   : > { %941 = vmatpush.msrb.mxu1 %v3914_v24 }
 0x15a   : > { %962 = vmatpush.msrb.mxu2 %v3968_v40 }
 0x15b   : > { %v577_v63 = vld [vmem:[#allocation2 + $0x20] sm:$0xff]  ;;  %942 = vmatpush.msrb.mxu1 %v3925_v27 }
 0x15c   : > { %645 = vmatmul.f32.gmra.mxu2 %v560_v62  ;;  %v4091_v62 = vld [vmem:[%s5772_s1 + $0x80] sm:$0xff] }
 0x15d   : > { %691 = vmatmul.f32.gmra.mxu0 %v577_v63  ;;  %943 = vmatpush.msrb.mxu1 %v3943_v35  ;;  %v4097_v63 = vld [vmem:[%s5772_s1 + $0x128] sm:$0xff] }
 0x15e   : > { %963 = vmatpush.msrb.mxu2 %v3986_v44 }
 0x15f   : > { %944 = vmatpush.msrb.mxu1 %v3961_v39 }
 0x160   : > { %964 = vmatpush.msrb.mxu2 %v4004_v48 }
 0x161   : > { %945 = vmatpush.msrb.mxu1 %v3979_v43 }
 0x162   : > { %965 = vmatpush.msrb.mxu2 %v4022_v54 }
 0x163   : > { %946 = vmatpush.msrb.mxu1 %v3997_v47 }
 0x164   : > { %966 = vmatpush.msrb.mxu2 %v4037_v17 }
 0x165   : > { %947 = vmatpush.msrb.mxu1 %v4015_v53 }
 0x166   : > { %967 = vmatpush.msrb.mxu2 %v4052_v37 }
 0x167   : > { %948 = vmatpush.msrb.mxu1 %v4031_v11 }
 0x168   : > { %968 = vmatpush.msrb.mxu2 %v4067_v55 }
 0x169   : > { %949 = vmatpush.msrb.mxu1 %v4046_v31 }
 0x16a   : > { %969 = vmatpush.msrb.mxu2 %v4082_v58 }
 0x16b   : > { %950 = vmatpush.msrb.mxu1 %v4061_v50 }
 0x16c   : > { %970 = vmatpush.msrb.mxu2 %v4097_v63 }
 0x16d   : > { %951 = vmatpush.msrb.mxu1 %v4076_v56 }
 0x16f   : > { %952 = vmatpush.msrb.mxu1 %v4091_v62 }
 0x1cd   : > { %v666_v33 = vpop.f32.mrf.mxu3 }
 0x1d2   : > { %v689_v60 = vpop.f32.mrf.mxu0 }
 0x1d5   : > { %v669_v26 = vpop.f32.mrf.mxu3 }
 0x1d7   : > { %v643_v52 = vpop.f32.mrf.mxu2 }
 0x1d8   : > { %v644_v59 = vadd.f32 %v3809_v5, %v643_v52  ;;  %v4106_v52 = vld [vmem:[%s5772_s1 + $0x120] sm:$0xff] }
 0x1d9   : > { %971 = vmatpush.msrb.mxu2 %v4106_v52 }
 0x1da   : > { %v667_v2 = vadd.f32 %v666_v33, %v644_v59  ;;  %v692_v42 = vpop.f32.mrf.mxu0  ;;  %v870_v33 = vld [vmem:[%s5772_s1 + $0x20] sm:$0xff]  ;;  %v869_v59 = vld [vmem:[%s5772_s1 + $0x18] sm:$0xff] }
 0x1db   : > { %925 = vmatpush.msrb.mxu0 %v870_v33 }
 0x1dc   : > { %v690_v4 = vadd.f32 %v689_v60, %v667_v2  ;;  %v4115_v60 = vld [vmem:[%s5772_s1 + $0x118] sm:$0xff]  ;;  %v868_v2 = vld [vmem:[%s5772_s1 + $0x10] sm:$0xff] }
 0x1dd   : > { %926 = vmatpush.msrb.mxu0 %v869_v59  ;;  %972 = vmatpush.msrb.mxu2 %v4115_v60 }
 0x1de   : > { %v695_v7 = vmax.f32 %v690_v4, 0.0  ;;  %v4124_v4 = vld [vmem:[%s5772_s1 + $0x110] sm:$0xff] }
 0x1df   : > { %v646_v14 = vpop.f32.mrf.mxu2  ;;  %927 = vmatpush.msrb.mxu0 %v868_v2  ;;  %973 = vmatpush.msrb.mxu2 %v4124_v4 }
 0x1e0   : > { %v701_v20 = vrot.slane %v695_v7, 7  ;;  %v647_v1 = vadd.f32 %v3809_v5, %v646_v14  ;;  %808 = vmatmul.f32.vlgmr.msra.gmra.mxu2 %v695_v7  ;;  %v708_v9 = vrot.slane %v695_v7, 1  ;;  %v867_v7 = vld [vmem:[%s5772_s1 + $0x8] sm:$0xff] }
 0x1e1   : > { %928 = vmatpush.msrb.mxu0 %v867_v7  ;;  %v4133_v14 = vld [vmem:[%s5772_s1 + $0x108] sm:$0xff] }
 0x1e2   : > { %706 = vst [vmem:[#allocation3] sm:$0xfe] %v701_v20  ;;  %v670_v3 = vadd.f32 %v669_v26, %v647_v1  ;;  %974 = vmatpush.msrb.mxu2 %v4133_v14  ;;  %v4142_v1 = vld [vmem:[%s5772_s1 + $0x100] sm:$0xff]  ;;  %v1040_v26 = vld [vmem:[#allocation4 + $0xf8] sm:$0xff] }
 0x1e4   : > { %v693_v6 = vadd.f32 %v692_v42, %v670_v3  ;;  %975 = vmatpush.msrb.mxu2 %v4142_v1 }
 0x1e6   : > { %v696_v8 = vmax.f32 %v693_v6, 0.0  ;;  %1202 = vmatpush.msra.mxu2 %v3920_v25 }
 0x1e8   : > { %v709_v10 = vrot.slane %v696_v8, 1  ;;  %811 = vmatmul.f32.gmra.mxu2 %v696_v8  ;;  %v702_v15 = vrot.slane %v696_v8, 7 }
 0x1e9   : > { %v715_v12 = vld [vmem:[#allocation3] sm:$0xff]  ;;  %1203 = vmatpush.msra.mxu2 %v3937_v34 }
 0x1ea   : > { %v710_v13 = vsel %vm276_vm0, %v708_v9, %v709_v10  ;;  %714 = vst [vmem:[#allocation3 + $0x10] sm:$0x7f] %v709_v10  ;;  %785 = vmatmul.f32.vlgmr.msra.gmra.mxu1 %v715_v12  ;;  %v703_v16 = vsel %vm268_vm1, %v701_v20, %v702_v15  ;;  %v866_v20 = vld [vmem:[%s5772_s1] sm:$0xff] }
 0x1eb   : > { %831 = vmatmul.f32.vlgmr.msra.gmra.mxu3 %v710_v13  ;;  %929 = vmatpush.msrb.mxu0 %v866_v20 }
 0x1ec   : > { %1204 = vmatpush.msra.mxu2 %v3955_v38 }
 0x1ed   : > { %1080 = vmatpush.msra.mxu0 %v1040_v26 }
 0x1ee   : > { %1205 = vmatpush.msra.mxu2 %v3973_v41 }
 0x1f0   : > { %1206 = vmatpush.msra.mxu2 %v3991_v45 }
 0x1f1   : > { %v720_v18 = vld [vmem:[#allocation3 + $0x10] sm:$0xff] }
 0x1f2   : > { %788 = vmatmul.f32.gmra.mxu1 %v703_v16  ;;  %1207 = vmatpush.msra.mxu2 %v4009_v49 }
 0x1f3   : > { %834 = vmatmul.f32.gmra.mxu3 %v720_v18 }
 0x1f4   : > { %1208 = vmatpush.msra.mxu2 %v875_v57 }
 0x1f6   : > { %1209 = vmatpush.msra.mxu2 %v874_v23 }
 0x1f8   : > { %1210 = vmatpush.msra.mxu2 %v873_v46 }
 0x1fa   : > { %1211 = vmatpush.msra.mxu2 %v872_v28  ;;  %v1039_v28 = vld [vmem:[#allocation4 + $0xf0] sm:$0xff] }
 0x1fb   : > { %1081 = vmatpush.msra.mxu0 %v1039_v28 }
 0x1fc   : > { %1212 = vmatpush.msra.mxu2 %v871_v61  ;;  %v1038_v61 = vld [vmem:[#allocation4 + $0xe8] sm:$0xff] }
 0x1fd   : > { %1082 = vmatpush.msra.mxu0 %v1038_v61 }
 0x1fe   : > { %1213 = vmatpush.msra.mxu2 %v870_v33  ;;  %v1037_v33 = vld [vmem:[#allocation4 + $0xe0] sm:$0xff] }
 0x1ff   : > { %1083 = vmatpush.msra.mxu0 %v1037_v33 }
 0x200   : > { %1214 = vmatpush.msra.mxu2 %v869_v59  ;;  %v1036_v59 = vld [vmem:[#allocation4 + $0xd8] sm:$0xff] }
 0x201   : > { %1084 = vmatpush.msra.mxu0 %v1036_v59 }
 0x202   : > { %1215 = vmatpush.msra.mxu2 %v868_v2  ;;  %v4167_v2 = vld [vmem:[#allocation4 + $0x78] sm:$0xff] }
 0x203   : > { %1057 = vmatpush.msrb.mxu3 %v4167_v2 }
 0x204   : > { %1216 = vmatpush.msra.mxu2 %v867_v7  ;;  %v1035_v7 = vld [vmem:[#allocation4 + $0xd0] sm:$0xff] }
 0x205   : > { %1085 = vmatpush.msra.mxu0 %v1035_v7 }
 0x206   : > { %1217 = vmatpush.msra.mxu2 %v866_v20  ;;  %v4170_v20 = vld [vmem:[#allocation4 + $0x178] sm:$0xff] }
 0x207   : > { %1103 = vmatpush.msra.mxu1 %v4170_v20 }
 0x263   : > { %v809_v6 = vpop.f32.mrf.mxu2 }
 0x267   : > { %v786_v3 = vpop.f32.mrf.mxu1 }
 0x268   : > { %v787_v42 = vadd.f32 %v3865_v32, %v786_v3  ;;  %v1034_v3 = vld [vmem:[#allocation4 + $0xc8] sm:$0xff] }
 0x269   : > { %1086 = vmatpush.msra.mxu0 %v1034_v3 }
 0x26a   : > { %v810_v8 = vadd.f32 %v809_v6, %v787_v42  ;;  %v4176_v42 = vld [vmem:[#allocation4 + $0x170] sm:$0xff]  ;;  %v4178_v6 = vld [vmem:[#allocation4 + $0x68] sm:$0xff] }
 0x26b   : > { %v812_v18 = vpop.f32.mrf.mxu2  ;;  %1104 = vmatpush.msra.mxu1 %v4176_v42 }
 0x26e   : > { %v832_v9 = vpop.f32.mrf.mxu3 }
 0x26f   : > { %v789_v10 = vpop.f32.mrf.mxu1  ;;  %v833_v12 = vadd.f32 %v832_v9, %v810_v8  ;;  %v1033_v8 = vld [vmem:[#allocation4 + $0xc0] sm:$0xff]  ;;  %v4182_v9 = vld [vmem:[#allocation4 + $0x168] sm:$0xff] }
 0x270   : > { %v790_v13 = vadd.f32 %v3865_v32, %v789_v10  ;;  %1087 = vmatpush.msra.mxu0 %v1033_v8  ;;  %v4184_v10 = vld [vmem:[#allocation4 + $0x60] sm:$0xff]  ;;  %1105 = vmatpush.msra.mxu1 %v4182_v9 }
 0x271   : > { %v4154_v15 = vadd.f32 %v833_v12, %v3869_v0  ;;  %v1032_v12 = vld [vmem:[#allocation4 + $0xb8] sm:$0xff] }
 0x272   : > { %v813_v25 = vadd.f32 %v812_v18, %v790_v13  ;;  %1088 = vmatpush.msra.mxu0 %v1032_v12  ;;  %v4188_v13 = vld [vmem:[#allocation4 + $0x160] sm:$0xff]  ;;  %v1031_v18 = vld [vmem:[#allocation4 + $0xb0] sm:$0xff] }
 0x273   : > { %v846_v16 = vrot.slane %v4154_v15, 7  ;;  %953 = vmatmul.f32.vlgmr.msrb.gmra.mxu1 %v4154_v15  ;;  %v853_v0 = vrot.slane %v4154_v15, 1 }
 0x274   : > { %1106 = vmatpush.msra.mxu1 %v4188_v13  ;;  %1089 = vmatpush.msra.mxu0 %v1031_v18 }
 0x275   : > { %851 = vst [vmem:[#allocation2 + $0x28] sm:$0xfe] %v846_v16 }
 0x276   : > { %v835_v34 = vpop.f32.mrf.mxu3 }
 0x277   : > { %v836_v38 = vadd.f32 %v835_v34, %v813_v25  ;;  %v4194_v25 = vld [vmem:[#allocation4 + $0x158] sm:$0xff]  ;;  %v4196_v34 = vld [vmem:[#allocation4 + $0x50] sm:$0xff] }
 0x278   : > { %1107 = vmatpush.msra.mxu1 %v4194_v25 }
 0x279   : > { %v4159_v41 = vadd.f32 %v836_v38, %v3875_v51  ;;  %v1030_v38 = vld [vmem:[#allocation4 + $0xa8] sm:$0xff] }
 0x27a   : > { %1090 = vmatpush.msra.mxu0 %v1030_v38 }
 0x27b   : > { %5791 = vst [vmem:[#allocation7_spill] sm:$0xff] %v4159_v41  ;;  %v854_v45 = vrot.slane %v4159_v41, 1  ;;  %956 = vmatmul.f32.gmra.mxu1 %v4159_v41  ;;  %v847_v23 = vrot.slane %v4159_v41, 7  ;;  %v4260_v41 = vld [vmem:[#allocation4] sm:$0xff] }
 0x27c   : > { %v860_v49 = vld [vmem:[#allocation2 + $0x28] sm:$0xff] }
 0x27d   : > { %v855_v57 = vsel %vm276_vm0, %v853_v0, %v854_v45  ;;  %859 = vst [vmem:[#allocation2 + $0x20] sm:$0x7f] %v854_v45  ;;  %930 = vmatmul.f32.vlgmr.msrb.gmra.mxu0 %v860_v49  ;;  %v848_v51 = vsel %vm268_vm1, %v846_v16, %v847_v23  ;;  %v4190_v16 = vld [vmem:[#allocation4 + $0x58] sm:$0xff]  ;;  %v4200_v0 = vld [vmem:[#allocation4 + $0x150] sm:$0xff]  ;;  %v4202_v45 = vld [vmem:[#allocation4 + $0x48] sm:$0xff] }
 0x27e   : > { %976 = vmatmul.f32.vlgmr.msrb.gmra.mxu2 %v855_v57  ;;  %1108 = vmatpush.msra.mxu1 %v4200_v0  ;;  %v1029_v49 = vld [vmem:[#allocation4 + $0xa0] sm:$0xff]  ;;  %v4206_v57 = vld [vmem:[#allocation4 + $0x148] sm:$0xff] }
 0x27f   : > { %1368 = vmatpush.msrb.mxu2 %v1040_v26  ;;  %v4172_v26 = vld [vmem:[#allocation4 + $0x70] sm:$0xff]  ;;  %1091 = vmatpush.msra.mxu0 %v1029_v49  ;;  %v4208_v23 = vld [vmem:[#allocation4 + $0x40] sm:$0xff] }
 0x280   : > { %1058 = vmatpush.msrb.mxu3 %v4172_v26  ;;  %1109 = vmatpush.msra.mxu1 %v4206_v57 }
 0x281   : > { %1369 = vmatpush.msrb.mxu2 %v1039_v28  ;;  %v4214_v28 = vld [vmem:[#allocation4 + $0x38] sm:$0xff] }
 0x282   : > { %1059 = vmatpush.msrb.mxu3 %v4178_v6 }
 0x283   : > { %1370 = vmatpush.msrb.mxu2 %v1038_v61  ;;  %v1027_v61 = vld [vmem:[#allocation4 + $0x90] sm:$0xff] }
 0x284   : > { %v865_v46 = vld [vmem:[#allocation2 + $0x20] sm:$0xff]  ;;  %1060 = vmatpush.msrb.mxu3 %v4184_v10 }
 0x285   : > { %933 = vmatmul.f32.gmra.mxu0 %v848_v51  ;;  %1371 = vmatpush.msrb.mxu2 %v1037_v33  ;;  %v1028_v51 = vld [vmem:[#allocation4 + $0x98] sm:$0xff] }
 0x286   : > { %979 = vmatmul.f32.gmra.mxu2 %v865_v46  ;;  %1061 = vmatpush.msrb.mxu3 %v4190_v16  ;;  %v4212_v46 = vld [vmem:[#allocation4 + $0x140] sm:$0xff]  ;;  %v4218_v33 = vld [vmem:[#allocation4 + $0x138] sm:$0xff] }
 0x287   : > { %1372 = vmatpush.msrb.mxu2 %v1036_v59  ;;  %1092 = vmatpush.msra.mxu0 %v1028_v51  ;;  %v4220_v59 = vld [vmem:[#allocation4 + $0x30] sm:$0xff] }
 0x288   : > { %1062 = vmatpush.msrb.mxu3 %v4196_v34  ;;  %1110 = vmatpush.msra.mxu1 %v4212_v46 }
 0x289   : > { %1373 = vmatpush.msrb.mxu2 %v1035_v7  ;;  %1093 = vmatpush.msra.mxu0 %v1027_v61  ;;  %v1026_v7 = vld [vmem:[#allocation4 + $0x88] sm:$0xff] }
 0x28a   : > { %1063 = vmatpush.msrb.mxu3 %v4202_v45  ;;  %1111 = vmatpush.msra.mxu1 %v4218_v33 }
 0x28b   : > { %1374 = vmatpush.msrb.mxu2 %v1034_v3  ;;  %1094 = vmatpush.msra.mxu0 %v1026_v7  ;;  %v4224_v3 = vld [vmem:[#allocation4 + $0x130] sm:$0xff] }
 0x28c   : > { %1064 = vmatpush.msrb.mxu3 %v4208_v23  ;;  %1112 = vmatpush.msra.mxu1 %v4224_v3 }
 0x28d   : > { %1375 = vmatpush.msrb.mxu2 %v1033_v8  ;;  %v4226_v8 = vld [vmem:[#allocation4 + $0x28] sm:$0xff] }
 0x28e   : > { %1065 = vmatpush.msrb.mxu3 %v4214_v28 }
 0x28f   : > { %1376 = vmatpush.msrb.mxu2 %v1032_v12  ;;  %v1025_v12 = vld [vmem:[#allocation4 + $0x80] sm:$0xff] }
 0x290   : > { %1066 = vmatpush.msrb.mxu3 %v4220_v59  ;;  %1095 = vmatpush.msra.mxu0 %v1025_v12 }
 0x291   : > { %1377 = vmatpush.msrb.mxu2 %v1031_v18  ;;  %v4230_v18 = vld [vmem:[#allocation4 + $0x128] sm:$0xff] }
 0x292   : > { %1067 = vmatpush.msrb.mxu3 %v4226_v8  ;;  %1113 = vmatpush.msra.mxu1 %v4230_v18 }
 0x293   : > { %1378 = vmatpush.msrb.mxu2 %v1030_v38  ;;  %v4232_v38 = vld [vmem:[#allocation4 + $0x20] sm:$0xff]  ;;  %1248 = vmatpush.msrb.mxu0 %v3932_v30  ;;  %v4251_v30 = vld [vmem:[#allocation4 + $0x110] sm:$0xff] }
 0x294   : > { %1068 = vmatpush.msrb.mxu3 %v4232_v38 }
 0x295   : > { %1379 = vmatpush.msrb.mxu2 %v1029_v49  ;;  %v4237_v49 = vld [vmem:[#allocation4 + $0x120] sm:$0xff]  ;;  %1249 = vmatpush.msrb.mxu0 %v3950_v36  ;;  %v4258_v36 = vld [vmem:[#allocation4 + $0x108] sm:$0xff] }
 0x296   : > { %1114 = vmatpush.msra.mxu1 %v4237_v49 }
 0x297   : > { %1380 = vmatpush.msrb.mxu2 %v1028_v51  ;;  %v4239_v51 = vld [vmem:[#allocation4 + $0x18] sm:$0xff]  ;;  %1250 = vmatpush.msrb.mxu0 %v3968_v40  ;;  %v4265_v40 = vld [vmem:[#allocation4 + $0x100] sm:$0xff] }
 0x298   : > { %1069 = vmatpush.msrb.mxu3 %v4239_v51 }
 0x299   : > { %1381 = vmatpush.msrb.mxu2 %v1027_v61  ;;  %v4244_v61 = vld [vmem:[#allocation4 + $0x118] sm:$0xff]  ;;  %1251 = vmatpush.msrb.mxu0 %v3986_v44 }
 0x29a   : > { %1115 = vmatpush.msra.mxu1 %v4244_v61 }
 0x29b   : > { %1382 = vmatpush.msrb.mxu2 %v1026_v7  ;;  %v4246_v7 = vld [vmem:[#allocation4 + $0x10] sm:$0xff]  ;;  %1252 = vmatpush.msrb.mxu0 %v4004_v48 }
 0x29c   : > { %1070 = vmatpush.msrb.mxu3 %v4246_v7  ;;  %1116 = vmatpush.msra.mxu1 %v4251_v30 }
 0x29d   : > { %1383 = vmatpush.msrb.mxu2 %v1025_v12  ;;  %v4253_v12 = vld [vmem:[#allocation4 + $0x8] sm:$0xff]  ;;  %1253 = vmatpush.msrb.mxu0 %v4022_v54 }
 0x29e   : > { %1071 = vmatpush.msrb.mxu3 %v4253_v12  ;;  %1117 = vmatpush.msra.mxu1 %v4258_v36 }
 0x29f   : > { %1254 = vmatpush.msrb.mxu0 %v4037_v17 }
 0x2a0   : > { %1072 = vmatpush.msrb.mxu3 %v4260_v41  ;;  %1118 = vmatpush.msra.mxu1 %v4265_v40 }
 0x2a1   : > { %1255 = vmatpush.msrb.mxu0 %v4052_v37 }
 0x2a2   : > { %1225 = vmatpush.msra.mxu3 %v3886_v29  ;;  %1345 = vmatpush.msrb.mxu1 %v4167_v2 }
 0x2a3   : > { %1256 = vmatpush.msrb.mxu0 %v4067_v55 }
 0x2a4   : > { %1226 = vmatpush.msra.mxu3 %v3896_v19  ;;  %1346 = vmatpush.msrb.mxu1 %v4172_v26 }
 0x2a5   : > { %1257 = vmatpush.msrb.mxu0 %v4082_v58 }
 0x2a6   : > { %1227 = vmatpush.msra.mxu3 %v3902_v21  ;;  %1347 = vmatpush.msrb.mxu1 %v4178_v6 }
 0x2a7   : > { %1258 = vmatpush.msrb.mxu0 %v4097_v63 }
 0x2a8   : > { %1228 = vmatpush.msra.mxu3 %v3908_v22  ;;  %1348 = vmatpush.msrb.mxu1 %v4184_v10 }
 0x2a9   : > { %1259 = vmatpush.msrb.mxu0 %v4106_v52 }
 0x2aa   : > { %1229 = vmatpush.msra.mxu3 %v3914_v24  ;;  %1349 = vmatpush.msrb.mxu1 %v4190_v16 }
 0x2ab   : > { %1260 = vmatpush.msrb.mxu0 %v4115_v60 }
 0x2ac   : > { %1230 = vmatpush.msra.mxu3 %v3925_v27  ;;  %1350 = vmatpush.msrb.mxu1 %v4196_v34 }
 0x2ad   : > { %1261 = vmatpush.msrb.mxu0 %v4124_v4 }
 0x2ae   : > { %1231 = vmatpush.msra.mxu3 %v3943_v35  ;;  %1351 = vmatpush.msrb.mxu1 %v4202_v45  ;;  %v4350_v45 = vld [vmem:[%s5772_s1 + $0xf8] sm:$0xff] }
 0x2af   : > { %1262 = vmatpush.msrb.mxu0 %v4133_v14 }
 0x2b0   : > { %1232 = vmatpush.msra.mxu3 %v3961_v39  ;;  %1352 = vmatpush.msrb.mxu1 %v4208_v23 }
 0x2b1   : > { %1263 = vmatpush.msrb.mxu0 %v4142_v1 }
 0x2b2   : > { %1233 = vmatpush.msra.mxu3 %v3979_v43  ;;  %1353 = vmatpush.msrb.mxu1 %v4214_v28 }
 0x2b4   : > { %1234 = vmatpush.msra.mxu3 %v3997_v47  ;;  %1354 = vmatpush.msrb.mxu1 %v4220_v59 }
 0x2b6   : > { %1235 = vmatpush.msra.mxu3 %v4015_v53  ;;  %1355 = vmatpush.msrb.mxu1 %v4226_v8 }
 0x2b8   : > { %1236 = vmatpush.msra.mxu3 %v4031_v11  ;;  %1356 = vmatpush.msrb.mxu1 %v4232_v38 }
 0x2ba   : > { %1237 = vmatpush.msra.mxu3 %v4046_v31  ;;  %1357 = vmatpush.msrb.mxu1 %v4239_v51 }
 0x2bc   : > { %1238 = vmatpush.msra.mxu3 %v4061_v50  ;;  %1358 = vmatpush.msrb.mxu1 %v4246_v7 }
 0x2be   : > { %1239 = vmatpush.msra.mxu3 %v4076_v56  ;;  %1359 = vmatpush.msrb.mxu1 %v4253_v12 }
 0x2c0   : > { %1240 = vmatpush.msra.mxu3 %v4091_v62  ;;  %1360 = vmatpush.msrb.mxu1 %v4260_v41 }
 0x2f0   : > { %v954_v21 = vpop.f32.mrf.mxu1 }
 0x2f8   : > { %v957_v48 = vpop.f32.mrf.mxu1 }
 0x2fa   : > { %v931_v29 = vpop.f32.mrf.mxu0 }
 0x2fb   : > { %v932_v19 = vadd.f32 %v3809_v5, %v931_v29 }
 0x2fd   : > { %v955_v22 = vadd.f32 %v954_v21, %v932_v19 }
 0x301   : > { %v977_v24 = vpop.f32.mrf.mxu2 }
 0x302   : > { %v934_v27 = vpop.f32.mrf.mxu0  ;;  %v978_v35 = vadd.f32 %v977_v24, %v955_v22 }
 0x303   : > { %v935_v39 = vadd.f32 %v3809_v5, %v934_v27  ;;  %v4365_v27 = vld [vmem:[%s5772_s1 + $0xf0] sm:$0xff] }
 0x304   : > { %v983_v44 = vmax.f32 %v978_v35, 0.0  ;;  %v4371_v35 = vld [vmem:[%s5772_s1 + $0xe8] sm:$0xff] }
 0x305   : > { %v958_v47 = vadd.f32 %v957_v48, %v935_v39  ;;  %v4377_v39 = vld [vmem:[%s5772_s1 + $0xe0] sm:$0xff]  ;;  %v4394_v48 = vld [vmem:[%s5772_s1 + $0xd0] sm:$0xff] }
 0x306   : > { %v989_v43 = vrot.slane %v983_v44, 7  ;;  %1096 = vmatmul.f32.vlgmr.msra.gmra.mxu0 %v983_v44  ;;  %v996_v11 = vrot.slane %v983_v44, 1  ;;  %v4383_v44 = vld [vmem:[%s5772_s1 + $0xd8] sm:$0xff] }
 0x308   : > { %994 = vst [vmem:[#allocation3] sm:$0xfe] %v989_v43 }
 0x309   : > { %v980_v54 = vpop.f32.mrf.mxu2 }
 0x30a   : > { %v981_v5 = vadd.f32 %v980_v54, %v958_v47  ;;  %v4401_v47 = vld [vmem:[%s5772_s1 + $0x178] sm:$0xff]  ;;  %v4406_v54 = vld [vmem:[%s5772_s1 + $0x70] sm:$0xff] }
 0x30c   : > { %v984_v53 = vmax.f32 %v981_v5, 0.0  ;;  %v4412_v5 = vld [vmem:[%s5772_s1 + $0xc8] sm:$0xff] }
 0x30e   : > { %v997_v17 = vrot.slane %v984_v53, 1  ;;  %1099 = vmatmul.f32.gmra.mxu0 %v984_v53  ;;  %v990_v50 = vrot.slane %v984_v53, 7  ;;  %v4419_v53 = vld [vmem:[%s5772_s1 + $0x170] sm:$0xff] }
 0x30f   : > { %v1003_v37 = vld [vmem:[#allocation3] sm:$0xff] }
 0x310   : > { %v998_v31 = vsel %vm276_vm0, %v996_v11, %v997_v17  ;;  %1002 = vst [vmem:[#allocation3 + $0x10] sm:$0x7f] %v997_v17  ;;  %1073 = vmatmul.f32.vlgmr.msrb.gmra.mxu3 %v1003_v37  ;;  %v991_v55 = vsel %vm268_vm1, %v989_v43, %v990_v50  ;;  %v4389_v43 = vld [vmem:[%s5772_s1 + $0x78] sm:$0xff]  ;;  %v4424_v11 = vld [vmem:[%s5772_s1 + $0x68] sm:$0xff]  ;;  %v4430_v17 = vld [vmem:[%s5772_s1 + $0xc0] sm:$0xff] }
 0x311   : > { %1119 = vmatmul.f32.vlgmr.msra.gmra.mxu1 %v998_v31  ;;  %1391 = vmatpush.msrb.mxu3 %v4170_v20  ;;  %v4437_v37 = vld [vmem:[%s5772_s1 + $0x168] sm:$0xff]  ;;  %v4442_v31 = vld [vmem:[%s5772_s1 + $0x60] sm:$0xff]  ;;  %v4448_v50 = vld [vmem:[%s5772_s1 + $0xb8] sm:$0xff] }
 0x312   : > { %1513 = vmatpush.msra.mxu1 %v4350_v45  ;;  %1490 = vmatpush.msra.mxu0 %v4389_v43 }
 0x313   : > { %1392 = vmatpush.msrb.mxu3 %v4176_v42 }
 0x314   : > { %1514 = vmatpush.msra.mxu1 %v4365_v27  ;;  %1491 = vmatpush.msra.mxu0 %v4406_v54 }
 0x315   : > { %1393 = vmatpush.msrb.mxu3 %v4182_v9  ;;  %v5792_v9 = vld [vmem:[#allocation7_spill] sm:$0xff] }
 0x316   : > { %1515 = vmatpush.msra.mxu1 %v4371_v35  ;;  %1492 = vmatpush.msra.mxu0 %v4424_v11 }
 0x317   : > { %v1008_v56 = vld [vmem:[#allocation3 + $0x10] sm:$0xff]  ;;  %1394 = vmatpush.msrb.mxu3 %v4188_v13 }
 0x318   : > { %1076 = vmatmul.f32.gmra.mxu3 %v991_v55  ;;  %1516 = vmatpush.msra.mxu1 %v4377_v39  ;;  %v4455_v55 = vld [vmem:[%s5772_s1 + $0x160] sm:$0xff] }
 0x319   : > { %1122 = vmatmul.f32.gmra.mxu1 %v1008_v56  ;;  %1395 = vmatpush.msrb.mxu3 %v4194_v25  ;;  %v4460_v56 = vld [vmem:[%s5772_s1 + $0x58] sm:$0xff] }
 0x31a   : > { %1517 = vmatpush.msra.mxu1 %v4383_v44  ;;  %1493 = vmatpush.msra.mxu0 %v4442_v31 }
 0x31b   : > { %1396 = vmatpush.msrb.mxu3 %v4200_v0 }
 0x31c   : > { %1518 = vmatpush.msra.mxu1 %v4394_v48  ;;  %1494 = vmatpush.msra.mxu0 %v4460_v56 }
 0x31d   : > { %1397 = vmatpush.msrb.mxu3 %v4206_v57 }
 0x31e   : > { %1519 = vmatpush.msra.mxu1 %v4412_v5 }
 0x31f   : > { %1398 = vmatpush.msrb.mxu3 %v4212_v46  ;;  %v4356_v46 = vld [vmem:[%s5773_s2] ss:$0 sm:$0xff] }
 0x320   : > { %1520 = vmatpush.msra.mxu1 %v4430_v17 }
 0x321   : > { %1399 = vmatpush.msrb.mxu3 %v4218_v33 }
 0x322   : > { %1521 = vmatpush.msra.mxu1 %v4448_v50 }
 0x323   : > { %1400 = vmatpush.msrb.mxu3 %v4224_v3 }
 0x325   : > { %1401 = vmatpush.msrb.mxu3 %v4230_v18 }
 0x327   : > { %1402 = vmatpush.msrb.mxu3 %v4237_v49 }
 0x329   : > { %1403 = vmatpush.msrb.mxu3 %v4244_v61 }
 0x32b   : > { %1404 = vmatpush.msrb.mxu3 %v4251_v30 }
 0x32d   : > { %1405 = vmatpush.msrb.mxu3 %v4258_v36 }
 0x32f   : > { %1406 = vmatpush.msrb.mxu3 %v4265_v40 }
 0x383   : > { %v1097_v58 = vpop.f32.mrf.mxu0 }
 0x38b   : > { %v1100_v20 = vpop.f32.mrf.mxu0 }
 0x38e   : > { %v1120_v52 = vpop.f32.mrf.mxu1 }
 0x393   : > { %v1074_v62 = vpop.f32.mrf.mxu3 }
 0x394   : > { %v1075_v63 = vadd.f32 %v3865_v32, %v1074_v62  ;;  %v4473_v62 = vld [vmem:[%s5772_s1 + $0x158] sm:$0xff] }
 0x396   : > { %v1098_v60 = vadd.f32 %v1097_v58, %v1075_v63  ;;  %v1123_v42 = vpop.f32.mrf.mxu1  ;;  %v4466_v58 = vld [vmem:[%s5772_s1 + $0xb0] sm:$0xff] }
 0x397   : > { %1522 = vmatpush.msra.mxu1 %v4466_v58  ;;  %v4478_v63 = vld [vmem:[%s5772_s1 + $0x50] sm:$0xff] }
 0x398   : > { %v1121_v4 = vadd.f32 %v1120_v52, %v1098_v60  ;;  %v4484_v52 = vld [vmem:[%s5772_s1 + $0xa8] sm:$0xff]  ;;  %1495 = vmatpush.msra.mxu0 %v4478_v63  ;;  %v4491_v60 = vld [vmem:[%s5772_s1 + $0x150] sm:$0xff] }
 0x399   : > { %1523 = vmatpush.msra.mxu1 %v4484_v52 }
 0x39a   : > { %v4333_v14 = vadd.f32 %v1121_v4, %v4154_v15  ;;  %v1451_v4 = vld [vmem:[%s5772_s1 + $0x48] sm:$0xff] }
 0x39b   : > { %v1077_v1 = vpop.f32.mrf.mxu3  ;;  %1496 = vmatpush.msra.mxu0 %v1451_v4 }
 0x39c   : > { %v1134_v41 = vrot.slane %v4333_v14, 7  ;;  %v1078_v2 = vadd.f32 %v3865_v32, %v1077_v1  ;;  %1241 = vmatmul.f32.vlgmr.msra.gmra.mxu3 %v4333_v14  ;;  %v1141_v13 = vrot.slane %v4333_v14, 1  ;;  %v4500_v1 = vld [vmem:[%s5772_s1 + $0xa0] sm:$0xff] }
 0x39d   : > { %1524 = vmatpush.msra.mxu1 %v4500_v1 }
 0x39e   : > { %1139 = vst [vmem:[#allocation2 + $0x28] sm:$0xfe] %v1134_v41  ;;  %v1101_v26 = vadd.f32 %v1100_v20, %v1078_v2  ;;  %v1450_v2 = vld [vmem:[%s5772_s1 + $0x40] sm:$0xff]  ;;  %v4515_v20 = vld [vmem:[%s5772_s1 + $0x98] sm:$0xff] }
 0x39f   : > { %1497 = vmatpush.msra.mxu0 %v1450_v2  ;;  %1525 = vmatpush.msra.mxu1 %v4515_v20 }
 0x3a0   : > { %v1124_v6 = vadd.f32 %v1123_v42, %v1101_v26  ;;  %v4521_v26 = vld [vmem:[%s5772_s1 + $0x140] sm:$0xff]  ;;  %v1449_v42 = vld [vmem:[%s5772_s1 + $0x38] sm:$0xff] }
 0x3a1   : > { %1498 = vmatpush.msra.mxu0 %v1449_v42 }
 0x3a2   : > { %v4339_v10 = vadd.f32 %v1124_v6, %v5792_v9  ;;  %v4530_v6 = vld [vmem:[%s5772_s1 + $0x90] sm:$0xff]  ;;  %v4536_v9 = vld [vmem:[%s5772_s1 + $0x138] sm:$0xff] }
 0x3a3   : > { %1526 = vmatpush.msra.mxu1 %v4530_v6 }
 0x3a4   : > { %v1142_v15 = vrot.slane %v4339_v10, 1  ;;  %1244 = vmatmul.f32.gmra.mxu3 %v4339_v10  ;;  %v1135_v32 = vrot.slane %v4339_v10, 7 }
 0x3a5   : > { %v1148_v16 = vld [vmem:[#allocation2 + $0x28] sm:$0xff] }
 0x3a6   : > { %v1143_v25 = vsel %vm276_vm0, %v1141_v13, %v1142_v15  ;;  %1147 = vst [vmem:[#allocation2 + $0x20] sm:$0x7f] %v1142_v15  ;;  %1218 = vmatmul.f32.vlgmr.msra.gmra.mxu2 %v1148_v16  ;;  %v1136_v34 = vsel %vm268_vm1, %v1134_v41, %v1135_v32  ;;  %v4506_v41 = vld [vmem:[%s5772_s1 + $0x148] sm:$0xff]  ;;  %v1448_v13 = vld [vmem:[%s5772_s1 + $0x30] sm:$0xff]  ;;  %v4560_v32 = vld [vmem:[%s5772_s1 + $0x80] sm:$0xff] }
 0x3a7   : > { %1264 = vmatmul.f32.vlgmr.msrb.gmra.mxu0 %v1143_v25  ;;  %1536 = vmatpush.msra.mxu2 %v4401_v47  ;;  %v4545_v15 = vld [vmem:[%s5772_s1 + $0x88] sm:$0xff]  ;;  %v4551_v16 = vld [vmem:[%s5772_s1 + $0x130] sm:$0xff] }
 0x3a8   : > { %1499 = vmatpush.msra.mxu0 %v1448_v13  ;;  %1527 = vmatpush.msra.mxu1 %v4545_v15  ;;  %v1447_v25 = vld [vmem:[%s5772_s1 + $0x28] sm:$0xff] }
 0x3a9   : > { %1537 = vmatpush.msra.mxu2 %v4419_v53 }
 0x3aa   : > { %1500 = vmatpush.msra.mxu0 %v1447_v25  ;;  %1528 = vmatpush.msra.mxu1 %v4560_v32 }
 0x3ab   : > { %1538 = vmatpush.msra.mxu2 %v4437_v37 }
 0x3ad   : > { %v1153_v0 = vld [vmem:[#allocation2 + $0x20] sm:$0xff]  ;;  %1539 = vmatpush.msra.mxu2 %v4455_v55 }
 0x3ae   : > { %1221 = vmatmul.f32.gmra.mxu2 %v1136_v34  ;;  %v4566_v34 = vld [vmem:[%s5772_s1 + $0x128] sm:$0xff] }
 0x3af   : > { %1267 = vmatmul.f32.gmra.mxu0 %v1153_v0  ;;  %1540 = vmatpush.msra.mxu2 %v4473_v62  ;;  %v1446_v0 = vld [vmem:[%s5772_s1 + $0x20] sm:$0xff] }
 0x3b0   : > { %1501 = vmatpush.msra.mxu0 %v1446_v0 }
 0x3b1   : > { %1541 = vmatpush.msra.mxu2 %v4491_v60 }
 0x3b3   : > { %1542 = vmatpush.msra.mxu2 %v4506_v41 }
 0x3b5   : > { %1543 = vmatpush.msra.mxu2 %v4521_v26 }
 0x3b7   : > { %1544 = vmatpush.msra.mxu2 %v4536_v9 }
 0x3b9   : > { %1545 = vmatpush.msra.mxu2 %v4551_v16 }
 0x3bb   : > { %1546 = vmatpush.msra.mxu2 %v4566_v34 }
 0x41f   : > { %v1242_v57 = vpop.f32.mrf.mxu3 }
 0x424   : > { %v1265_v33 = vpop.f32.mrf.mxu0 }
 0x427   : > { %v1245_v51 = vpop.f32.mrf.mxu3 }
 0x429   : > { %v1219_v23 = vpop.f32.mrf.mxu2 }
 0x42a   : > { %v1220_v28 = vadd.f32 %v4356_v46, %v1219_v23  ;;  %v1445_v23 = vld [vmem:[%s5772_s1 + $0x18] sm:$0xff] }
 0x42b   : > { %1502 = vmatpush.msra.mxu0 %v1445_v23 }
 0x42c   : > { %v1243_v59 = vadd.f32 %v1242_v57, %v1220_v28  ;;  %v1268_v7 = vpop.f32.mrf.mxu0  ;;  %v4575_v57 = vld [vmem:[%s5772_s1 + $0x120] sm:$0xff]  ;;  %v4584_v28 = vld [vmem:[%s5772_s1 + $0x118] sm:$0xff] }
 0x42d   : > { %1547 = vmatpush.msra.mxu2 %v4575_v57 }
 0x42e   : > { %v1266_v3 = vadd.f32 %v1265_v33, %v1243_v59  ;;  %v1444_v33 = vld [vmem:[%s5772_s1 + $0x10] sm:$0xff] }
 0x42f   : > { %1548 = vmatpush.msra.mxu2 %v4584_v28  ;;  %1503 = vmatpush.msra.mxu0 %v1444_v33  ;;  %v4593_v59 = vld [vmem:[%s5772_s1 + $0x110] sm:$0xff] }
 0x430   : > { %v1271_v8 = vmax.f32 %v1266_v3, 0.0  ;;  %v1443_v3 = vld [vmem:[%s5772_s1 + $0x8] sm:$0xff] }
 0x431   : > { %v1222_v18 = vpop.f32.mrf.mxu2  ;;  %1549 = vmatpush.msra.mxu2 %v4593_v59  ;;  %1504 = vmatpush.msra.mxu0 %v1443_v3 }
 0x432   : > { %v1277_v38 = vrot.slane %v1271_v8, 7  ;;  %v1223_v49 = vadd.f32 %v4356_v46, %v1222_v18  ;;  %1384 = vmatmul.f32.vlgmr.msrb.gmra.mxu2 %v1271_v8  ;;  %v1284_v36 = vrot.slane %v1271_v8, 1  ;;  %v4602_v8 = vld [vmem:[%s5772_s1 + $0x108] sm:$0xff]  ;;  %v1442_v18 = vld [vmem:[%s5772_s1] sm:$0xff] }
 0x433   : > { %1550 = vmatpush.msra.mxu2 %v4602_v8  ;;  %1505 = vmatpush.msra.mxu0 %v1442_v18 }
 0x434   : > { %1282 = vst [vmem:[#allocation3] sm:$0xfe] %v1277_v38  ;;  %v1246_v61 = vadd.f32 %v1245_v51, %v1223_v49  ;;  %v1616_v49 = vld [vmem:[#allocation4 + $0xf8] sm:$0xff] }
 0x435   : > { %1656 = vmatpush.msrb.mxu0 %v1616_v49 }
 0x436   : > { %v1269_v30 = vadd.f32 %v1268_v7, %v1246_v61  ;;  %v4623_v61 = vld [vmem:[%s5775_s4] ss:$0 sm:$0xff] }
 0x438   : > { %v1272_v12 = vmax.f32 %v1269_v30, 0.0 }
 0x43a   : > { %v1285_v40 = vrot.slane %v1272_v12, 1  ;;  %1387 = vmatmul.f32.gmra.mxu2 %v1272_v12  ;;  %v1278_v21 = vrot.slane %v1272_v12, 7 }
 0x43b   : > { %v1291_v29 = vld [vmem:[#allocation3] sm:$0xff] }
 0x43c   : > { %v1286_v19 = vsel %vm276_vm0, %v1284_v36, %v1285_v40  ;;  %1290 = vst [vmem:[#allocation3 + $0x10] sm:$0x7f] %v1285_v40  ;;  %1361 = vmatmul.f32.vlgmr.msrb.gmra.mxu1 %v1291_v29  ;;  %v1279_v22 = vsel %vm268_vm1, %v1277_v38, %v1278_v21  ;;  %v4611_v38 = vld [vmem:[%s5772_s1 + $0x100] sm:$0xff] }
 0x43d   : > { %1407 = vmatmul.f32.vlgmr.msrb.gmra.mxu3 %v1286_v19  ;;  %1551 = vmatpush.msra.mxu2 %v4611_v38 }
 0x43f   : > { %1778 = vmatpush.msrb.mxu2 %v4389_v43 }
 0x441   : > { %1779 = vmatpush.msrb.mxu2 %v4406_v54 }
 0x443   : > { %v1296_v24 = vld [vmem:[#allocation3 + $0x10] sm:$0xff]  ;;  %1780 = vmatpush.msrb.mxu2 %v4424_v11 }
 0x444   : > { %1364 = vmatmul.f32.gmra.mxu1 %v1279_v22 }
 0x445   : > { %1410 = vmatmul.f32.gmra.mxu3 %v1296_v24  ;;  %1781 = vmatpush.msrb.mxu2 %v4442_v31 }
 0x447   : > { %1782 = vmatpush.msrb.mxu2 %v4460_v56 }
 0x449   : > { %1783 = vmatpush.msrb.mxu2 %v4478_v63 }
 0x44b   : > { %1784 = vmatpush.msrb.mxu2 %v1451_v4 }
 0x44d   : > { %1785 = vmatpush.msrb.mxu2 %v1450_v2 }
 0x44f   : > { %1786 = vmatpush.msrb.mxu2 %v1449_v42 }
 0x451   : > { %1787 = vmatpush.msrb.mxu2 %v1448_v13  ;;  %v1615_v13 = vld [vmem:[#allocation4 + $0xf0] sm:$0xff] }
 0x452   : > { %1657 = vmatpush.msrb.mxu0 %v1615_v13 }
 0x453   : > { %1788 = vmatpush.msrb.mxu2 %v1447_v25  ;;  %v1614_v25 = vld [vmem:[#allocation4 + $0xe8] sm:$0xff] }
 0x454   : > { %1658 = vmatpush.msrb.mxu0 %v1614_v25 }
 0x455   : > { %1789 = vmatpush.msrb.mxu2 %v1446_v0  ;;  %v1613_v0 = vld [vmem:[#allocation4 + $0xe0] sm:$0xff] }
 0x456   : > { %1659 = vmatpush.msrb.mxu0 %v1613_v0 }
 0x457   : > { %1790 = vmatpush.msrb.mxu2 %v1445_v23  ;;  %v1612_v23 = vld [vmem:[#allocation4 + $0xd8] sm:$0xff] }
 0x458   : > { %1660 = vmatpush.msrb.mxu0 %v1612_v23 }
 0x459   : > { %1791 = vmatpush.msrb.mxu2 %v1444_v33  ;;  %v4641_v33 = vld [vmem:[#allocation4 + $0x78] sm:$0xff] }
 0x45a   : > { %1633 = vmatpush.msra.mxu3 %v4641_v33 }
 0x45b   : > { %1792 = vmatpush.msrb.mxu2 %v1443_v3  ;;  %v1611_v3 = vld [vmem:[#allocation4 + $0xd0] sm:$0xff] }
 0x45c   : > { %1661 = vmatpush.msrb.mxu0 %v1611_v3 }
 0x45d   : > { %1793 = vmatpush.msrb.mxu2 %v1442_v18  ;;  %v4644_v18 = vld [vmem:[#allocation4 + $0x178] sm:$0xff] }
 0x45e   : > { %1679 = vmatpush.msrb.mxu1 %v4644_v18 }
 0x4b5   : > { %v1385_v30 = vpop.f32.mrf.mxu2 }
 0x4b9   : > { %v1362_v51 = vpop.f32.mrf.mxu1 }
 0x4ba   : > { %v1363_v7 = vadd.f32 %v4623_v61, %v1362_v51  ;;  %v1610_v51 = vld [vmem:[#allocation4 + $0xc8] sm:$0xff] }
 0x4bb   : > { %1662 = vmatpush.msrb.mxu0 %v1610_v51 }
 0x4bc   : > { %v1386_v12 = vadd.f32 %v1385_v30, %v1363_v7  ;;  %v4650_v7 = vld [vmem:[#allocation4 + $0x170] sm:$0xff]  ;;  %v4652_v30 = vld [vmem:[#allocation4 + $0x68] sm:$0xff] }
 0x4bd   : > { %v1388_v24 = vpop.f32.mrf.mxu2  ;;  %1680 = vmatpush.msrb.mxu1 %v4650_v7 }
 0x4c0   : > { %v1408_v36 = vpop.f32.mrf.mxu3 }
 0x4c1   : > { %v1365_v40 = vpop.f32.mrf.mxu1  ;;  %v1409_v29 = vadd.f32 %v1408_v36, %v1386_v12  ;;  %v1609_v12 = vld [vmem:[#allocation4 + $0xc0] sm:$0xff]  ;;  %v4656_v36 = vld [vmem:[#allocation4 + $0x168] sm:$0xff] }
 0x4c2   : > { %v1366_v19 = vadd.f32 %v4623_v61, %v1365_v40  ;;  %1663 = vmatpush.msrb.mxu0 %v1609_v12  ;;  %v4658_v40 = vld [vmem:[#allocation4 + $0x60] sm:$0xff]  ;;  %1681 = vmatpush.msrb.mxu1 %v4656_v36 }
 0x4c3   : > { %v4628_v21 = vadd.f32 %v1409_v29, %v4333_v14  ;;  %v1608_v29 = vld [vmem:[#allocation4 + $0xb8] sm:$0xff] }
 0x4c4   : > { %v1389_v43 = vadd.f32 %v1388_v24, %v1366_v19  ;;  %1664 = vmatpush.msrb.mxu0 %v1608_v29  ;;  %v4662_v19 = vld [vmem:[#allocation4 + $0x160] sm:$0xff]  ;;  %v1607_v24 = vld [vmem:[#allocation4 + $0xb0] sm:$0xff] }
 0x4c5   : > { %v1422_v22 = vrot.slane %v4628_v21, 7  ;;  %1529 = vmatmul.f32.vlgmr.msra.gmra.mxu1 %v4628_v21  ;;  %v1429_v14 = vrot.slane %v4628_v21, 1 }
 0x4c6   : > { %1682 = vmatpush.msrb.mxu1 %v4662_v19  ;;  %1665 = vmatpush.msrb.mxu0 %v1607_v24 }
 0x4c7   : > { %1427 = vst [vmem:[#allocation2 + $0x28] sm:$0xfe] %v1422_v22 }
 0x4c8   : > { %v1411_v54 = vpop.f32.mrf.mxu3 }
 0x4c9   : > { %v1412_v11 = vadd.f32 %v1411_v54, %v1389_v43  ;;  %v4668_v43 = vld [vmem:[#allocation4 + $0x158] sm:$0xff]  ;;  %v4670_v54 = vld [vmem:[#allocation4 + $0x50] sm:$0xff] }
 0x4ca   : > { %1683 = vmatpush.msrb.mxu1 %v4668_v43 }
 0x4cb   : > { %v4633_v31 = vadd.f32 %v1412_v11, %v4339_v10  ;;  %v1606_v11 = vld [vmem:[#allocation4 + $0xa8] sm:$0xff] }
 0x4cc   : > { %1666 = vmatpush.msrb.mxu0 %v1606_v11 }
 0x4cd   : > { %5793 = vst [vmem:[#allocation8_spill] sm:$0xff] %v4633_v31  ;;  %v1430_v56 = vrot.slane %v4633_v31, 1  ;;  %1532 = vmatmul.f32.gmra.mxu1 %v4633_v31  ;;  %v1423_v2 = vrot.slane %v4633_v31, 7  ;;  %v4734_v31 = vld [vmem:[#allocation4] sm:$0xff] }
 0x4ce   : > { %v1436_v63 = vld [vmem:[#allocation2 + $0x28] sm:$0xff] }
 0x4cf   : > { %v1431_v4 = vsel %vm276_vm0, %v1429_v14, %v1430_v56  ;;  %1435 = vst [vmem:[#allocation2 + $0x20] sm:$0x7f] %v1430_v56  ;;  %1506 = vmatmul.f32.vlgmr.msra.gmra.mxu0 %v1436_v63  ;;  %v1424_v10 = vsel %vm268_vm1, %v1422_v22, %v1423_v2  ;;  %v4664_v22 = vld [vmem:[#allocation4 + $0x58] sm:$0xff]  ;;  %v4674_v14 = vld [vmem:[#allocation4 + $0x150] sm:$0xff]  ;;  %v4676_v56 = vld [vmem:[#allocation4 + $0x48] sm:$0xff] }
 0x4d0   : > { %1552 = vmatmul.f32.vlgmr.msra.gmra.mxu2 %v1431_v4  ;;  %1684 = vmatpush.msrb.mxu1 %v4674_v14  ;;  %v1605_v63 = vld [vmem:[#allocation4 + $0xa0] sm:$0xff]  ;;  %v4680_v4 = vld [vmem:[#allocation4 + $0x148] sm:$0xff] }
 0x4d1   : > { %1944 = vmatpush.msra.mxu2 %v1616_v49  ;;  %v4646_v49 = vld [vmem:[#allocation4 + $0x70] sm:$0xff]  ;;  %1667 = vmatpush.msrb.mxu0 %v1605_v63  ;;  %v4682_v2 = vld [vmem:[#allocation4 + $0x40] sm:$0xff] }
 0x4d2   : > { %1634 = vmatpush.msra.mxu3 %v4646_v49  ;;  %1685 = vmatpush.msrb.mxu1 %v4680_v4 }
 0x4d3   : > { %1945 = vmatpush.msra.mxu2 %v1615_v13  ;;  %v4688_v13 = vld [vmem:[#allocation4 + $0x38] sm:$0xff] }
 0x4d4   : > { %1635 = vmatpush.msra.mxu3 %v4652_v30 }
 0x4d5   : > { %1946 = vmatpush.msra.mxu2 %v1614_v25  ;;  %v1603_v25 = vld [vmem:[#allocation4 + $0x90] sm:$0xff] }
 0x4d6   : > { %v1441_v42 = vld [vmem:[#allocation2 + $0x20] sm:$0xff]  ;;  %1636 = vmatpush.msra.mxu3 %v4658_v40 }
 0x4d7   : > { %1509 = vmatmul.f32.gmra.mxu0 %v1424_v10  ;;  %1947 = vmatpush.msra.mxu2 %v1613_v0  ;;  %v1604_v10 = vld [vmem:[#allocation4 + $0x98] sm:$0xff] }
 0x4d8   : > { %1555 = vmatmul.f32.gmra.mxu2 %v1441_v42  ;;  %1637 = vmatpush.msra.mxu3 %v4664_v22  ;;  %v4686_v42 = vld [vmem:[#allocation4 + $0x140] sm:$0xff]  ;;  %v4692_v0 = vld [vmem:[#allocation4 + $0x138] sm:$0xff] }
 0x4d9   : > { %1948 = vmatpush.msra.mxu2 %v1612_v23  ;;  %1668 = vmatpush.msrb.mxu0 %v1604_v10  ;;  %v4694_v23 = vld [vmem:[#allocation4 + $0x30] sm:$0xff] }
 0x4da   : > { %1638 = vmatpush.msra.mxu3 %v4670_v54  ;;  %1686 = vmatpush.msrb.mxu1 %v4686_v42 }
 0x4db   : > { %1949 = vmatpush.msra.mxu2 %v1611_v3  ;;  %1669 = vmatpush.msrb.mxu0 %v1603_v25  ;;  %v1602_v3 = vld [vmem:[#allocation4 + $0x88] sm:$0xff] }
 0x4dc   : > { %1639 = vmatpush.msra.mxu3 %v4676_v56  ;;  %1687 = vmatpush.msrb.mxu1 %v4692_v0 }
 0x4dd   : > { %1950 = vmatpush.msra.mxu2 %v1610_v51  ;;  %1670 = vmatpush.msrb.mxu0 %v1602_v3  ;;  %v4698_v51 = vld [vmem:[#allocation4 + $0x130] sm:$0xff] }
 0x4de   : > { %1640 = vmatpush.msra.mxu3 %v4682_v2  ;;  %1688 = vmatpush.msrb.mxu1 %v4698_v51 }
 0x4df   : > { %1951 = vmatpush.msra.mxu2 %v1609_v12  ;;  %v4700_v12 = vld [vmem:[#allocation4 + $0x28] sm:$0xff] }
 0x4e0   : > { %1641 = vmatpush.msra.mxu3 %v4688_v13 }
 0x4e1   : > { %1952 = vmatpush.msra.mxu2 %v1608_v29  ;;  %v1601_v29 = vld [vmem:[#allocation4 + $0x80] sm:$0xff] }
 0x4e2   : > { %1642 = vmatpush.msra.mxu3 %v4694_v23  ;;  %1671 = vmatpush.msrb.mxu0 %v1601_v29 }
 0x4e3   : > { %1953 = vmatpush.msra.mxu2 %v1607_v24  ;;  %v4704_v24 = vld [vmem:[#allocation4 + $0x128] sm:$0xff] }
 0x4e4   : > { %1643 = vmatpush.msra.mxu3 %v4700_v12  ;;  %1689 = vmatpush.msrb.mxu1 %v4704_v24 }
 0x4e5   : > { %1954 = vmatpush.msra.mxu2 %v1606_v11  ;;  %v4706_v11 = vld [vmem:[#allocation4 + $0x20] sm:$0xff]  ;;  %1824 = vmatpush.msra.mxu0 %v4401_v47  ;;  %v4725_v47 = vld [vmem:[#allocation4 + $0x110] sm:$0xff] }
 0x4e6   : > { %1644 = vmatpush.msra.mxu3 %v4706_v11 }
 0x4e7   : > { %1955 = vmatpush.msra.mxu2 %v1605_v63  ;;  %v4711_v63 = vld [vmem:[#allocation4 + $0x120] sm:$0xff]  ;;  %1825 = vmatpush.msra.mxu0 %v4419_v53  ;;  %v4732_v53 = vld [vmem:[#allocation4 + $0x108] sm:$0xff] }
 0x4e8   : > { %1690 = vmatpush.msrb.mxu1 %v4711_v63 }
 0x4e9   : > { %1956 = vmatpush.msra.mxu2 %v1604_v10  ;;  %v4713_v10 = vld [vmem:[#allocation4 + $0x18] sm:$0xff]  ;;  %1826 = vmatpush.msra.mxu0 %v4437_v37  ;;  %v4739_v37 = vld [vmem:[#allocation4 + $0x100] sm:$0xff] }
 0x4ea   : > { %1645 = vmatpush.msra.mxu3 %v4713_v10 }
 0x4eb   : > { %1957 = vmatpush.msra.mxu2 %v1603_v25  ;;  %v4718_v25 = vld [vmem:[#allocation4 + $0x118] sm:$0xff]  ;;  %1827 = vmatpush.msra.mxu0 %v4455_v55 }
 0x4ec   : > { %1691 = vmatpush.msrb.mxu1 %v4718_v25 }
 0x4ed   : > { %1958 = vmatpush.msra.mxu2 %v1602_v3  ;;  %v4720_v3 = vld [vmem:[#allocation4 + $0x10] sm:$0xff]  ;;  %1828 = vmatpush.msra.mxu0 %v4473_v62 }
 0x4ee   : > { %1646 = vmatpush.msra.mxu3 %v4720_v3  ;;  %1692 = vmatpush.msrb.mxu1 %v4725_v47 }
 0x4ef   : > { %1959 = vmatpush.msra.mxu2 %v1601_v29  ;;  %v4727_v29 = vld [vmem:[#allocation4 + $0x8] sm:$0xff]  ;;  %1829 = vmatpush.msra.mxu0 %v4491_v60 }
 0x4f0   : > { %1647 = vmatpush.msra.mxu3 %v4727_v29  ;;  %1693 = vmatpush.msrb.mxu1 %v4732_v53 }
 0x4f1   : > { %1830 = vmatpush.msra.mxu0 %v4506_v41 }
 0x4f2   : > { %1648 = vmatpush.msra.mxu3 %v4734_v31  ;;  %1694 = vmatpush.msrb.mxu1 %v4739_v37 }
 0x4f3   : > { %1831 = vmatpush.msra.mxu0 %v4521_v26 }
 0x4f4   : > { %1801 = vmatpush.msrb.mxu3 %v4350_v45  ;;  %1921 = vmatpush.msra.mxu1 %v4641_v33 }
 0x4f5   : > { %1832 = vmatpush.msra.mxu0 %v4536_v9 }
 0x4f6   : > { %1802 = vmatpush.msrb.mxu3 %v4365_v27  ;;  %1922 = vmatpush.msra.mxu1 %v4646_v49 }
 0x4f7   : > { %1833 = vmatpush.msra.mxu0 %v4551_v16 }
 0x4f8   : > { %1803 = vmatpush.msrb.mxu3 %v4371_v35  ;;  %1923 = vmatpush.msra.mxu1 %v4652_v30 }
 0x4f9   : > { %1834 = vmatpush.msra.mxu0 %v4566_v34 }
 0x4fa   : > { %1804 = vmatpush.msrb.mxu3 %v4377_v39  ;;  %1924 = vmatpush.msra.mxu1 %v4658_v40  ;;  %v5794_v40 = vld [vmem:[#allocation8_spill] sm:$0xff] }
 0x4fb   : > { %1835 = vmatpush.msra.mxu0 %v4575_v57 }
 0x4fc   : > { %1805 = vmatpush.msrb.mxu3 %v4383_v44  ;;  %1925 = vmatpush.msra.mxu1 %v4664_v22 }
 0x4fd   : > { %1836 = vmatpush.msra.mxu0 %v4584_v28 }
 0x4fe   : > { %1806 = vmatpush.msrb.mxu3 %v4394_v48  ;;  %1926 = vmatpush.msra.mxu1 %v4670_v54 }
 0x4ff   : > { %1837 = vmatpush.msra.mxu0 %v4593_v59 }
 0x500   : > { %1807 = vmatpush.msrb.mxu3 %v4412_v5  ;;  %1927 = vmatpush.msra.mxu1 %v4676_v56 }
 0x501   : > { %1838 = vmatpush.msra.mxu0 %v4602_v8 }
 0x502   : > { %1808 = vmatpush.msrb.mxu3 %v4430_v17  ;;  %1928 = vmatpush.msra.mxu1 %v4682_v2  ;;  %v4824_v2 = vld [vmem:[%s5772_s1 + $0xf8] sm:$0xff] }
 0x503   : > { %1839 = vmatpush.msra.mxu0 %v4611_v38 }
 0x504   : > { %1809 = vmatpush.msrb.mxu3 %v4448_v50  ;;  %1929 = vmatpush.msra.mxu1 %v4688_v13 }
 0x506   : > { %1810 = vmatpush.msrb.mxu3 %v4466_v58  ;;  %1930 = vmatpush.msra.mxu1 %v4694_v23 }
 0x508   : > { %1811 = vmatpush.msrb.mxu3 %v4484_v52  ;;  %1931 = vmatpush.msra.mxu1 %v4700_v12 }
 0x50a   : > { %1812 = vmatpush.msrb.mxu3 %v4500_v1  ;;  %1932 = vmatpush.msra.mxu1 %v4706_v11 }
 0x50c   : > { %1813 = vmatpush.msrb.mxu3 %v4515_v20  ;;  %1933 = vmatpush.msra.mxu1 %v4713_v10 }
 0x50e   : > { %1814 = vmatpush.msrb.mxu3 %v4530_v6  ;;  %1934 = vmatpush.msra.mxu1 %v4720_v3 }
 0x510   : > { %1815 = vmatpush.msrb.mxu3 %v4545_v15  ;;  %1935 = vmatpush.msra.mxu1 %v4727_v29 }
 0x512   : > { %1816 = vmatpush.msrb.mxu3 %v4560_v32  ;;  %1936 = vmatpush.msra.mxu1 %v4734_v31 }
 0x542   : > { %v1530_v35 = vpop.f32.mrf.mxu1 }
 0x54a   : > { %v1533_v62 = vpop.f32.mrf.mxu1 }
 0x54c   : > { %v1507_v45 = vpop.f32.mrf.mxu0 }
 0x54d   : > { %v1508_v27 = vadd.f32 %v4356_v46, %v1507_v45 }
 0x54f   : > { %v1531_v39 = vadd.f32 %v1530_v35, %v1508_v27 }
 0x553   : > { %v1553_v44 = vpop.f32.mrf.mxu2 }
 0x554   : > { %v1510_v48 = vpop.f32.mrf.mxu0  ;;  %v1554_v5 = vadd.f32 %v1553_v44, %v1531_v39 }
 0x555   : > { %v1511_v17 = vadd.f32 %v4356_v46, %v1510_v48  ;;  %v4834_v48 = vld [vmem:[%s5772_s1 + $0xf0] sm:$0xff] }
 0x556   : > { %v1559_v55 = vmax.f32 %v1554_v5, 0.0  ;;  %v4840_v5 = vld [vmem:[%s5772_s1 + $0xe8] sm:$0xff] }
 0x557   : > { %v1534_v58 = vadd.f32 %v1533_v62, %v1511_v17  ;;  %v4846_v17 = vld [vmem:[%s5772_s1 + $0xe0] sm:$0xff]  ;;  %v4863_v62 = vld [vmem:[%s5772_s1 + $0xd0] sm:$0xff] }
 0x558   : > { %v1565_v50 = vrot.slane %v1559_v55, 7  ;;  %1672 = vmatmul.f32.vlgmr.msrb.gmra.mxu0 %v1559_v55  ;;  %v1572_v1 = vrot.slane %v1559_v55, 1  ;;  %v4852_v55 = vld [vmem:[%s5772_s1 + $0xd8] sm:$0xff] }
 0x55a   : > { %1570 = vst [vmem:[#allocation3] sm:$0xfe] %v1565_v50 }
 0x55b   : > { %v1556_v60 = vpop.f32.mrf.mxu2 }
 0x55c   : > { %v1557_v41 = vadd.f32 %v1556_v60, %v1534_v58  ;;  %v4870_v58 = vld [vmem:[%s5772_s1 + $0x178] sm:$0xff]  ;;  %v4875_v60 = vld [vmem:[%s5772_s1 + $0x70] sm:$0xff] }
 0x55e   : > { %v1560_v52 = vmax.f32 %v1557_v41, 0.0  ;;  %v4881_v41 = vld [vmem:[%s5772_s1 + $0xc8] sm:$0xff] }
 0x560   : > { %v1573_v26 = vrot.slane %v1560_v52, 1  ;;  %1675 = vmatmul.f32.gmra.mxu0 %v1560_v52  ;;  %v1566_v6 = vrot.slane %v1560_v52, 7  ;;  %v4888_v52 = vld [vmem:[%s5772_s1 + $0x170] sm:$0xff] }
 0x561   : > { %v1579_v9 = vld [vmem:[#allocation3] sm:$0xff] }
 0x562   : > { %v1574_v20 = vsel %vm276_vm0, %v1572_v1, %v1573_v26  ;;  %1578 = vst [vmem:[#allocation3 + $0x10] sm:$0x7f] %v1573_v26  ;;  %1649 = vmatmul.f32.vlgmr.msra.gmra.mxu3 %v1579_v9  ;;  %v1567_v15 = vsel %vm268_vm1, %v1565_v50, %v1566_v6  ;;  %v4858_v50 = vld [vmem:[%s5772_s1 + $0x78] sm:$0xff]  ;;  %v4893_v1 = vld [vmem:[%s5772_s1 + $0x68] sm:$0xff]  ;;  %v4899_v26 = vld [vmem:[%s5772_s1 + $0xc0] sm:$0xff] }
 0x563   : > { %1695 = vmatmul.f32.vlgmr.msrb.gmra.mxu1 %v1574_v20  ;;  %1967 = vmatpush.msra.mxu3 %v4644_v18  ;;  %v4906_v9 = vld [vmem:[%s5772_s1 + $0x168] sm:$0xff]  ;;  %v4911_v20 = vld [vmem:[%s5772_s1 + $0x60] sm:$0xff]  ;;  %v4917_v6 = vld [vmem:[%s5772_s1 + $0xb8] sm:$0xff] }
 0x564   : > { %2089 = vmatpush.msrb.mxu1 %v4824_v2  ;;  %2066 = vmatpush.msrb.mxu0 %v4858_v50 }
 0x565   : > { %1968 = vmatpush.msra.mxu3 %v4650_v7 }
 0x566   : > { %2090 = vmatpush.msrb.mxu1 %v4834_v48  ;;  %2067 = vmatpush.msrb.mxu0 %v4875_v60 }
 0x567   : > { %1969 = vmatpush.msra.mxu3 %v4656_v36 }
 0x568   : > { %2091 = vmatpush.msrb.mxu1 %v4840_v5  ;;  %2068 = vmatpush.msrb.mxu0 %v4893_v1 }
 0x569   : > { %v1584_v16 = vld [vmem:[#allocation3 + $0x10] sm:$0xff]  ;;  %1970 = vmatpush.msra.mxu3 %v4662_v19 }
 0x56a   : > { %1652 = vmatmul.f32.gmra.mxu3 %v1567_v15  ;;  %2092 = vmatpush.msrb.mxu1 %v4846_v17  ;;  %v4924_v15 = vld [vmem:[%s5772_s1 + $0x160] sm:$0xff] }
 0x56b   : > { %1698 = vmatmul.f32.gmra.mxu1 %v1584_v16  ;;  %1971 = vmatpush.msra.mxu3 %v4668_v43  ;;  %v4929_v16 = vld [vmem:[%s5772_s1 + $0x58] sm:$0xff] }
 0x56c   : > { %2093 = vmatpush.msrb.mxu1 %v4852_v55  ;;  %2069 = vmatpush.msrb.mxu0 %v4911_v20 }
 0x56d   : > { %1972 = vmatpush.msra.mxu3 %v4674_v14 }
 0x56e   : > { %2094 = vmatpush.msrb.mxu1 %v4863_v62  ;;  %2070 = vmatpush.msrb.mxu0 %v4929_v16 }
 0x56f   : > { %1973 = vmatpush.msra.mxu3 %v4680_v4 }
 0x570   : > { %2095 = vmatpush.msrb.mxu1 %v4881_v41 }
 0x571   : > { %1974 = vmatpush.msra.mxu3 %v4686_v42 }
 0x572   : > { %2096 = vmatpush.msrb.mxu1 %v4899_v26 }
 0x573   : > { %1975 = vmatpush.msra.mxu3 %v4692_v0 }
 0x574   : > { %2097 = vmatpush.msrb.mxu1 %v4917_v6 }
 0x575   : > { %1976 = vmatpush.msra.mxu3 %v4698_v51 }
 0x577   : > { %1977 = vmatpush.msra.mxu3 %v4704_v24 }
 0x579   : > { %1978 = vmatpush.msra.mxu3 %v4711_v63 }
 0x57b   : > { %1979 = vmatpush.msra.mxu3 %v4718_v25 }
 0x57d   : > { %1980 = vmatpush.msra.mxu3 %v4725_v47 }
 0x57f   : > { %1981 = vmatpush.msra.mxu3 %v4732_v53 }
 0x581   : > { %1982 = vmatpush.msra.mxu3 %v4739_v37 }
 0x5d5   : > { %v1673_v32 = vpop.f32.mrf.mxu0 }
 0x5dd   : > { %v1676_v49 = vpop.f32.mrf.mxu0 }
 0x5e0   : > { %v1696_v28 = vpop.f32.mrf.mxu1 }
 0x5e5   : > { %v1650_v34 = vpop.f32.mrf.mxu3 }
 0x5e6   : > { %v1651_v57 = vadd.f32 %v4623_v61, %v1650_v34  ;;  %v4942_v34 = vld [vmem:[%s5772_s1 + $0x158] sm:$0xff] }
 0x5e8   : > { %v1674_v59 = vadd.f32 %v1673_v32, %v1651_v57  ;;  %v1699_v30 = vpop.f32.mrf.mxu1  ;;  %v4935_v32 = vld [vmem:[%s5772_s1 + $0xb0] sm:$0xff] }
 0x5e9   : > { %2098 = vmatpush.msrb.mxu1 %v4935_v32  ;;  %v4947_v57 = vld [vmem:[%s5772_s1 + $0x50] sm:$0xff] }
 0x5ea   : > { %v1697_v8 = vadd.f32 %v1696_v28, %v1674_v59  ;;  %v4953_v28 = vld [vmem:[%s5772_s1 + $0xa8] sm:$0xff]  ;;  %2071 = vmatpush.msrb.mxu0 %v4947_v57  ;;  %v4960_v59 = vld [vmem:[%s5772_s1 + $0x150] sm:$0xff] }
 0x5eb   : > { %2099 = vmatpush.msrb.mxu1 %v4953_v28 }
 0x5ec   : > { %v4807_v38 = vadd.f32 %v1697_v8, %v4628_v21  ;;  %v2027_v8 = vld [vmem:[%s5772_s1 + $0x48] sm:$0xff] }
 0x5ed   : > { %v1653_v31 = vpop.f32.mrf.mxu3  ;;  %2072 = vmatpush.msrb.mxu0 %v2027_v8 }
 0x5ee   : > { %v1710_v33 = vrot.slane %v4807_v38, 7  ;;  %v1654_v18 = vadd.f32 %v4623_v61, %v1653_v31  ;;  %1817 = vmatmul.f32.vlgmr.msrb.gmra.mxu3 %v4807_v38  ;;  %v1717_v22 = vrot.slane %v4807_v38, 1  ;;  %v4969_v31 = vld [vmem:[%s5772_s1 + $0xa0] sm:$0xff] }
 0x5ef   : > { %2100 = vmatpush.msrb.mxu1 %v4969_v31 }
 0x5f0   : > { %1715 = vst [vmem:[#allocation2 + $0x28] sm:$0xfe] %v1710_v33  ;;  %v1677_v7 = vadd.f32 %v1676_v49, %v1654_v18  ;;  %v2026_v18 = vld [vmem:[%s5772_s1 + $0x40] sm:$0xff]  ;;  %v4984_v49 = vld [vmem:[%s5772_s1 + $0x98] sm:$0xff] }
 0x5f1   : > { %2073 = vmatpush.msrb.mxu0 %v2026_v18  ;;  %2101 = vmatpush.msrb.mxu1 %v4984_v49 }
 0x5f2   : > { %v1700_v36 = vadd.f32 %v1699_v30, %v1677_v7  ;;  %v4990_v7 = vld [vmem:[%s5772_s1 + $0x140] sm:$0xff]  ;;  %v2025_v30 = vld [vmem:[%s5772_s1 + $0x38] sm:$0xff] }
 0x5f3   : > { %2074 = vmatpush.msrb.mxu0 %v2025_v30 }
 0x5f4   : > { %v4813_v19 = vadd.f32 %v1700_v36, %v5794_v40  ;;  %v4999_v36 = vld [vmem:[%s5772_s1 + $0x90] sm:$0xff]  ;;  %v5005_v40 = vld [vmem:[%s5772_s1 + $0x138] sm:$0xff] }
 0x5f5   : > { %2102 = vmatpush.msrb.mxu1 %v4999_v36 }
 0x5f6   : > { %v1718_v21 = vrot.slane %v4813_v19, 1  ;;  %1820 = vmatmul.f32.gmra.mxu3 %v4813_v19  ;;  %v1711_v14 = vrot.slane %v4813_v19, 7 }
 0x5f7   : > { %v1724_v43 = vld [vmem:[#allocation2 + $0x28] sm:$0xff] }
 0x5f8   : > { %v1719_v54 = vsel %vm276_vm0, %v1717_v22, %v1718_v21  ;;  %1723 = vst [vmem:[#allocation2 + $0x20] sm:$0x7f] %v1718_v21  ;;  %1794 = vmatmul.f32.vlgmr.msrb.gmra.mxu2 %v1724_v43  ;;  %v1712_v56 = vsel %vm268_vm1, %v1710_v33, %v1711_v14  ;;  %v4975_v33 = vld [vmem:[%s5772_s1 + $0x148] sm:$0xff]  ;;  %v2024_v22 = vld [vmem:[%s5772_s1 + $0x30] sm:$0xff]  ;;  %v5029_v14 = vld [vmem:[%s5772_s1 + $0x80] sm:$0xff] }
 0x5f9   : > { %1840 = vmatmul.f32.vlgmr.msra.gmra.mxu0 %v1719_v54  ;;  %2112 = vmatpush.msrb.mxu2 %v4870_v58  ;;  %v5014_v21 = vld [vmem:[%s5772_s1 + $0x88] sm:$0xff]  ;;  %v5020_v43 = vld [vmem:[%s5772_s1 + $0x130] sm:$0xff] }
 0x5fa   : > { %2075 = vmatpush.msrb.mxu0 %v2024_v22  ;;  %2103 = vmatpush.msrb.mxu1 %v5014_v21  ;;  %v2023_v54 = vld [vmem:[%s5772_s1 + $0x28] sm:$0xff] }
 0x5fb   : > { %2113 = vmatpush.msrb.mxu2 %v4888_v52 }
 0x5fc   : > { %2076 = vmatpush.msrb.mxu0 %v2023_v54  ;;  %2104 = vmatpush.msrb.mxu1 %v5029_v14 }
 0x5fd   : > { %2114 = vmatpush.msrb.mxu2 %v4906_v9 }
 0x5ff   : > { %v1729_v4 = vld [vmem:[#allocation2 + $0x20] sm:$0xff]  ;;  %2115 = vmatpush.msrb.mxu2 %v4924_v15 }
 0x600   : > { %1797 = vmatmul.f32.gmra.mxu2 %v1712_v56  ;;  %v5035_v56 = vld [vmem:[%s5772_s1 + $0x128] sm:$0xff] }
 0x601   : > { %1843 = vmatmul.f32.gmra.mxu0 %v1729_v4  ;;  %2116 = vmatpush.msrb.mxu2 %v4942_v34  ;;  %v2022_v4 = vld [vmem:[%s5772_s1 + $0x20] sm:$0xff] }
 0x602   : > { %2077 = vmatpush.msrb.mxu0 %v2022_v4 }
 0x603   : > { %2117 = vmatpush.msrb.mxu2 %v4960_v59 }
 0x605   : > { %2118 = vmatpush.msrb.mxu2 %v4975_v33 }
 0x607   : > { %2119 = vmatpush.msrb.mxu2 %v4990_v7 }
 0x609   : > { %2120 = vmatpush.msrb.mxu2 %v5005_v40 }
 0x60b   : > { %2121 = vmatpush.msrb.mxu2 %v5020_v43 }
 0x60d   : > { %2122 = vmatpush.msrb.mxu2 %v5035_v56 }
 0x671   : > { %v1818_v42 = vpop.f32.mrf.mxu3 }
 0x676   : > { %v1841_v23 = vpop.f32.mrf.mxu0 }
 0x679   : > { %v1821_v25 = vpop.f32.mrf.mxu3 }
 0x67b   : > { %v1795_v13 = vpop.f32.mrf.mxu2 }
 0x67c   : > { %v1796_v0 = vadd.f32 %v4356_v46, %v1795_v13  ;;  %v2021_v13 = vld [vmem:[%s5772_s1 + $0x18] sm:$0xff] }
 0x67d   : > { %2078 = vmatpush.msrb.mxu0 %v2021_v13 }
 0x67e   : > { %v1819_v51 = vadd.f32 %v1818_v42, %v1796_v0  ;;  %v1844_v47 = vpop.f32.mrf.mxu0  ;;  %v5044_v42 = vld [vmem:[%s5772_s1 + $0x120] sm:$0xff]  ;;  %v5053_v0 = vld [vmem:[%s5772_s1 + $0x118] sm:$0xff] }
 0x67f   : > { %2123 = vmatpush.msrb.mxu2 %v5044_v42 }
 0x680   : > { %v1842_v12 = vadd.f32 %v1841_v23, %v1819_v51  ;;  %v2020_v23 = vld [vmem:[%s5772_s1 + $0x10] sm:$0xff] }
 0x681   : > { %2124 = vmatpush.msrb.mxu2 %v5053_v0  ;;  %2079 = vmatpush.msrb.mxu0 %v2020_v23  ;;  %v5062_v51 = vld [vmem:[%s5772_s1 + $0x110] sm:$0xff] }
 0x682   : > { %v1847_v24 = vmax.f32 %v1842_v12, 0.0  ;;  %v2019_v12 = vld [vmem:[%s5772_s1 + $0x8] sm:$0xff] }
 0x683   : > { %v1798_v11 = vpop.f32.mrf.mxu2  ;;  %2125 = vmatpush.msrb.mxu2 %v5062_v51  ;;  %2080 = vmatpush.msrb.mxu0 %v2019_v12 }
 0x684   : > { %v1853_v63 = vrot.slane %v1847_v24, 7  ;;  %v1799_v10 = vadd.f32 %v4356_v46, %v1798_v11  ;;  %1960 = vmatmul.f32.vlgmr.msra.gmra.mxu2 %v1847_v24  ;;  %v1860_v37 = vrot.slane %v1847_v24, 1  ;;  %v5071_v24 = vld [vmem:[%s5772_s1 + $0x108] sm:$0xff]  ;;  %v2018_v11 = vld [vmem:[%s5772_s1] sm:$0xff] }
 0x685   : > { %2126 = vmatpush.msrb.mxu2 %v5071_v24  ;;  %2081 = vmatpush.msrb.mxu0 %v2018_v11 }
 0x686   : > { %1858 = vst [vmem:[#allocation3] sm:$0xfe] %v1853_v63  ;;  %v1822_v3 = vadd.f32 %v1821_v25, %v1799_v10  ;;  %v2192_v10 = vld [vmem:[#allocation4 + $0xf8] sm:$0xff] }
 0x687   : > { %2232 = vmatpush.msra.mxu0 %v2192_v10 }
 0x688   : > { %v1845_v29 = vadd.f32 %v1844_v47, %v1822_v3 }
 0x68a   : > { %v1848_v53 = vmax.f32 %v1845_v29, 0.0 }
 0x68c   : > { %v1861_v45 = vrot.slane %v1848_v53, 1  ;;  %1963 = vmatmul.f32.gmra.mxu2 %v1848_v53  ;;  %v1854_v39 = vrot.slane %v1848_v53, 7 }
 0x68d   : > { %v1867_v27 = vld [vmem:[#allocation3] sm:$0xff] }
 0x68e   : > { %v1862_v35 = vsel %vm276_vm0, %v1860_v37, %v1861_v45  ;;  %1866 = vst [vmem:[#allocation3 + $0x10] sm:$0x7f] %v1861_v45  ;;  %1937 = vmatmul.f32.vlgmr.msra.gmra.mxu1 %v1867_v27  ;;  %v1855_v44 = vsel %vm268_vm1, %v1853_v63, %v1854_v39  ;;  %v5080_v63 = vld [vmem:[%s5772_s1 + $0x100] sm:$0xff] }
 0x68f   : > { %1983 = vmatmul.f32.vlgmr.msra.gmra.mxu3 %v1862_v35  ;;  %2127 = vmatpush.msrb.mxu2 %v5080_v63 }
 0x691   : > { %2354 = vmatpush.msra.mxu2 %v4858_v50 }
 0x693   : > { %2355 = vmatpush.msra.mxu2 %v4875_v60 }
 0x695   : > { %v1872_v46 = vld [vmem:[#allocation3 + $0x10] sm:$0xff]  ;;  %2356 = vmatpush.msra.mxu2 %v4893_v1 }
 0x696   : > { %1940 = vmatmul.f32.gmra.mxu1 %v1855_v44 }
 0x697   : > { %1986 = vmatmul.f32.gmra.mxu3 %v1872_v46  ;;  %2357 = vmatpush.msra.mxu2 %v4911_v20 }
 0x699   : > { %2358 = vmatpush.msra.mxu2 %v4929_v16 }
 0x69b   : > { %2359 = vmatpush.msra.mxu2 %v4947_v57 }
 0x69d   : > { %2360 = vmatpush.msra.mxu2 %v2027_v8 }
 0x69f   : > { %2361 = vmatpush.msra.mxu2 %v2026_v18  ;;  %v2191_v18 = vld [vmem:[#allocation4 + $0xf0] sm:$0xff] }
 0x6a0   : > { %2233 = vmatpush.msra.mxu0 %v2191_v18 }
 0x6a1   : > { %2362 = vmatpush.msra.mxu2 %v2025_v30  ;;  %v2190_v30 = vld [vmem:[#allocation4 + $0xe8] sm:$0xff] }
 0x6a2   : > { %2234 = vmatpush.msra.mxu0 %v2190_v30 }
 0x6a3   : > { %2363 = vmatpush.msra.mxu2 %v2024_v22  ;;  %v2189_v22 = vld [vmem:[#allocation4 + $0xe0] sm:$0xff] }
 0x6a4   : > { %2235 = vmatpush.msra.mxu0 %v2189_v22 }
 0x6a5   : > { %2364 = vmatpush.msra.mxu2 %v2023_v54  ;;  %v2188_v54 = vld [vmem:[#allocation4 + $0xd8] sm:$0xff] }
 0x6a6   : > { %2236 = vmatpush.msra.mxu0 %v2188_v54 }
 0x6a7   : > { %2365 = vmatpush.msra.mxu2 %v2022_v4  ;;  %v5105_v4 = vld [vmem:[#allocation4 + $0x78] sm:$0xff] }
 0x6a8   : > { %2209 = vmatpush.msrb.mxu3 %v5105_v4 }
 0x6a9   : > { %2366 = vmatpush.msra.mxu2 %v2021_v13  ;;  %v2187_v13 = vld [vmem:[#allocation4 + $0xd0] sm:$0xff] }
 0x6aa   : > { %2237 = vmatpush.msra.mxu0 %v2187_v13 }
 0x6ab   : > { %2367 = vmatpush.msra.mxu2 %v2020_v23  ;;  %v5108_v23 = vld [vmem:[#allocation4 + $0x178] sm:$0xff] }
 0x6ac   : > { %2255 = vmatpush.msra.mxu1 %v5108_v23 }
 0x6ad   : > { %2368 = vmatpush.msra.mxu2 %v2019_v12  ;;  %v5110_v12 = vld [vmem:[#allocation4 + $0x70] sm:$0xff] }
 0x6ae   : > { %2210 = vmatpush.msrb.mxu3 %v5110_v12 }
 0x6af   : > { %2369 = vmatpush.msra.mxu2 %v2018_v11  ;;  %v2186_v11 = vld [vmem:[#allocation4 + $0xc8] sm:$0xff] }
 0x6b0   : > { %2238 = vmatpush.msra.mxu0 %v2186_v11 }
 0x707   : > { %v1961_v47 = vpop.f32.mrf.mxu2 }
 0x70b   : > { %v1938_v25 = vpop.f32.mrf.mxu1 }
 0x70c   : > { %v1939_v3 = vadd.f32 %v4623_v61, %v1938_v25  ;;  %v5116_v25 = vld [vmem:[#allocation4 + $0x68] sm:$0xff] }
 0x70d   : > { %2211 = vmatpush.msrb.mxu3 %v5116_v25 }
 0x70e   : > { %v1962_v29 = vadd.f32 %v1961_v47, %v1939_v3  ;;  %v2185_v3 = vld [vmem:[#allocation4 + $0xc0] sm:$0xff]  ;;  %v5120_v47 = vld [vmem:[#allocation4 + $0x168] sm:$0xff] }
 0x70f   : > { %v1964_v44 = vpop.f32.mrf.mxu2  ;;  %2239 = vmatpush.msra.mxu0 %v2185_v3 }
 0x712   : > { %v1984_v53 = vpop.f32.mrf.mxu3 }
 0x713   : > { %v1941_v37 = vpop.f32.mrf.mxu1  ;;  %v1985_v45 = vadd.f32 %v1984_v53, %v1962_v29  ;;  %v5122_v29 = vld [vmem:[#allocation4 + $0x60] sm:$0xff]  ;;  %v2184_v53 = vld [vmem:[#allocation4 + $0xb8] sm:$0xff] }
 0x714   : > { %v1942_v27 = vadd.f32 %v4623_v61, %v1941_v37  ;;  %2212 = vmatpush.msrb.mxu3 %v5122_v29  ;;  %2240 = vmatpush.msra.mxu0 %v2184_v53  ;;  %v5126_v37 = vld [vmem:[#allocation4 + $0x160] sm:$0xff] }
 0x715   : > { %v5092_v35 = vadd.f32 %v1985_v45, %v4807_v38  ;;  %v5128_v45 = vld [vmem:[#allocation4 + $0x58] sm:$0xff] }
 0x716   : > { %v1965_v46 = vadd.f32 %v1964_v44, %v1942_v27  ;;  %v2183_v27 = vld [vmem:[#allocation4 + $0xb0] sm:$0xff]  ;;  %2213 = vmatpush.msrb.mxu3 %v5128_v45 }
 0x717   : > { %v1998_v39 = vrot.slane %v5092_v35, 7  ;;  %2105 = vmatmul.f32.vlgmr.msrb.gmra.mxu1 %v5092_v35  ;;  %v2005_v61 = vrot.slane %v5092_v35, 1  ;;  %2241 = vmatpush.msra.mxu0 %v2183_v27  ;;  %v5134_v44 = vld [vmem:[#allocation4 + $0x50] sm:$0xff] }
 0x718   : > { %2214 = vmatpush.msrb.mxu3 %v5134_v44 }
 0x719   : > { %2003 = vst [vmem:[#allocation2 + $0x28] sm:$0xfe] %v1998_v39 }
 0x71a   : > { %v1987_v50 = vpop.f32.mrf.mxu3 }
 0x71b   : > { %v1988_v60 = vadd.f32 %v1987_v50, %v1965_v46  ;;  %v2182_v46 = vld [vmem:[#allocation4 + $0xa8] sm:$0xff]  ;;  %v5138_v50 = vld [vmem:[#allocation4 + $0x150] sm:$0xff] }
 0x71c   : > { %2242 = vmatpush.msra.mxu0 %v2182_v46 }
 0x71d   : > { %v5097_v1 = vadd.f32 %v1988_v60, %v4813_v19  ;;  %v5140_v60 = vld [vmem:[#allocation4 + $0x48] sm:$0xff] }
 0x71e   : > { %2215 = vmatpush.msrb.mxu3 %v5140_v60 }
 0x71f   : > { %v2006_v38 = vrot.slane %v5097_v1, 1  ;;  %2108 = vmatmul.f32.gmra.mxu1 %v5097_v1  ;;  %v1999_v57 = vrot.slane %v5097_v1, 7 }
 0x720   : > { %v2012_v20 = vld [vmem:[#allocation2 + $0x28] sm:$0xff] }
 0x721   : > { %v2007_v16 = vsel %vm276_vm0, %v2005_v61, %v2006_v38  ;;  %2011 = vst [vmem:[#allocation2 + $0x20] sm:$0x7f] %v2006_v38  ;;  %2082 = vmatmul.f32.vlgmr.msrb.gmra.mxu0 %v2012_v20  ;;  %v2000_v19 = vsel %vm268_vm1, %v1998_v39, %v1999_v57  ;;  %v5132_v39 = vld [vmem:[#allocation4 + $0x158] sm:$0xff]  ;;  %v2181_v61 = vld [vmem:[#allocation4 + $0xa0] sm:$0xff]  ;;  %v5144_v38 = vld [vmem:[#allocation4 + $0x148] sm:$0xff] }
 0x722   : > { %2128 = vmatmul.f32.vlgmr.msrb.gmra.mxu2 %v2007_v16  ;;  %2243 = vmatpush.msra.mxu0 %v2181_v61  ;;  %v5146_v20 = vld [vmem:[#allocation4 + $0x40] sm:$0xff]  ;;  %v2180_v16 = vld [vmem:[#allocation4 + $0x98] sm:$0xff] }
 0x723   : > { %2520 = vmatpush.msrb.mxu2 %v2192_v10  ;;  %v5114_v10 = vld [vmem:[#allocation4 + $0x170] sm:$0xff]  ;;  %2216 = vmatpush.msrb.mxu3 %v5146_v20  ;;  %v5150_v57 = vld [vmem:[#allocation4 + $0x140] sm:$0xff] }
 0x724   : > { %2256 = vmatpush.msra.mxu1 %v5114_v10  ;;  %2244 = vmatpush.msra.mxu0 %v2180_v16 }
 0x725   : > { %2521 = vmatpush.msrb.mxu2 %v2191_v18  ;;  %v5156_v18 = vld [vmem:[#allocation4 + $0x138] sm:$0xff] }
 0x726   : > { %2257 = vmatpush.msra.mxu1 %v5120_v47 }
 0x727   : > { %2522 = vmatpush.msrb.mxu2 %v2190_v30  ;;  %v5158_v30 = vld [vmem:[#allocation4 + $0x30] sm:$0xff] }
 0x728   : > { %v2017_v8 = vld [vmem:[#allocation2 + $0x20] sm:$0xff]  ;;  %2258 = vmatpush.msra.mxu1 %v5126_v37 }
 0x729   : > { %2085 = vmatmul.f32.gmra.mxu0 %v2000_v19  ;;  %2523 = vmatpush.msrb.mxu2 %v2189_v22  ;;  %v5152_v19 = vld [vmem:[#allocation4 + $0x38] sm:$0xff]  ;;  %v2178_v22 = vld [vmem:[#allocation4 + $0x88] sm:$0xff] }
 0x72a   : > { %2131 = vmatmul.f32.gmra.mxu2 %v2017_v8  ;;  %2259 = vmatpush.msra.mxu1 %v5132_v39  ;;  %v2179_v8 = vld [vmem:[#allocation4 + $0x90] sm:$0xff] }
 0x72b   : > { %2524 = vmatpush.msrb.mxu2 %v2188_v54  ;;  %2217 = vmatpush.msrb.mxu3 %v5152_v19  ;;  %v5162_v54 = vld [vmem:[#allocation4 + $0x130] sm:$0xff] }
 0x72c   : > { %2260 = vmatpush.msra.mxu1 %v5138_v50  ;;  %2245 = vmatpush.msra.mxu0 %v2179_v8 }
 0x72d   : > { %2525 = vmatpush.msrb.mxu2 %v2187_v13  ;;  %2218 = vmatpush.msrb.mxu3 %v5158_v30  ;;  %v5164_v13 = vld [vmem:[#allocation4 + $0x28] sm:$0xff] }
 0x72e   : > { %2261 = vmatpush.msra.mxu1 %v5144_v38  ;;  %2246 = vmatpush.msra.mxu0 %v2178_v22 }
 0x72f   : > { %2526 = vmatpush.msrb.mxu2 %v2186_v11  ;;  %v2177_v11 = vld [vmem:[#allocation4 + $0x80] sm:$0xff]  ;;  %2219 = vmatpush.msrb.mxu3 %v5164_v13 }
 0x730   : > { %2262 = vmatpush.msra.mxu1 %v5150_v57  ;;  %2247 = vmatpush.msra.mxu0 %v2177_v11 }
 0x731   : > { %2527 = vmatpush.msrb.mxu2 %v2185_v3  ;;  %v5168_v3 = vld [vmem:[#allocation4 + $0x128] sm:$0xff] }
 0x732   : > { %2263 = vmatpush.msra.mxu1 %v5156_v18  ;;  %2400 = vmatpush.msrb.mxu0 %v4870_v58  ;;  %v5189_v58 = vld [vmem:[#allocation4 + $0x110] sm:$0xff] }
 0x733   : > { %2528 = vmatpush.msrb.mxu2 %v2184_v53  ;;  %v5170_v53 = vld [vmem:[#allocation4 + $0x20] sm:$0xff] }
 0x734   : > { %2264 = vmatpush.msra.mxu1 %v5162_v54  ;;  %2220 = vmatpush.msrb.mxu3 %v5170_v53 }
 0x735   : > { %2529 = vmatpush.msrb.mxu2 %v2183_v27  ;;  %v5175_v27 = vld [vmem:[#allocation4 + $0x120] sm:$0xff]  ;;  %2401 = vmatpush.msrb.mxu0 %v4888_v52  ;;  %v5196_v52 = vld [vmem:[#allocation4 + $0x108] sm:$0xff] }
 0x736   : > { %2265 = vmatpush.msra.mxu1 %v5168_v3 }
 0x737   : > { %2530 = vmatpush.msrb.mxu2 %v2182_v46  ;;  %v5177_v46 = vld [vmem:[#allocation4 + $0x18] sm:$0xff]  ;;  %2402 = vmatpush.msrb.mxu0 %v4906_v9  ;;  %v5203_v9 = vld [vmem:[#allocation4 + $0x100] sm:$0xff] }
 0x738   : > { %2266 = vmatpush.msra.mxu1 %v5175_v27  ;;  %2221 = vmatpush.msrb.mxu3 %v5177_v46 }
 0x739   : > { %2531 = vmatpush.msrb.mxu2 %v2181_v61  ;;  %v5182_v61 = vld [vmem:[#allocation4 + $0x118] sm:$0xff]  ;;  %2403 = vmatpush.msrb.mxu0 %v4924_v15 }
 0x73a   : > { %2267 = vmatpush.msra.mxu1 %v5182_v61 }
 0x73b   : > { %2532 = vmatpush.msrb.mxu2 %v2180_v16  ;;  %v5184_v16 = vld [vmem:[#allocation4 + $0x10] sm:$0xff]  ;;  %2404 = vmatpush.msrb.mxu0 %v4942_v34 }
 0x73c   : > { %2222 = vmatpush.msrb.mxu3 %v5184_v16  ;;  %2268 = vmatpush.msra.mxu1 %v5189_v58 }
 0x73d   : > { %2533 = vmatpush.msrb.mxu2 %v2179_v8  ;;  %v5191_v8 = vld [vmem:[#allocation4 + $0x8] sm:$0xff]  ;;  %2405 = vmatpush.msrb.mxu0 %v4960_v59 }
 0x73e   : > { %2223 = vmatpush.msrb.mxu3 %v5191_v8  ;;  %2269 = vmatpush.msra.mxu1 %v5196_v52 }
 0x73f   : > { %2534 = vmatpush.msrb.mxu2 %v2178_v22  ;;  %v5198_v22 = vld [vmem:[#allocation4] sm:$0xff]  ;;  %2406 = vmatpush.msrb.mxu0 %v4975_v33 }
 0x740   : > { %2224 = vmatpush.msrb.mxu3 %v5198_v22  ;;  %2270 = vmatpush.msra.mxu1 %v5203_v9 }
 0x741   : > { %2535 = vmatpush.msrb.mxu2 %v2177_v11  ;;  %2407 = vmatpush.msrb.mxu0 %v4990_v7 }
 0x742   : > { %2377 = vmatpush.msra.mxu3 %v4824_v2  ;;  %2497 = vmatpush.msrb.mxu1 %v5105_v4 }
 0x743   : > { %2408 = vmatpush.msrb.mxu0 %v5005_v40 }
 0x744   : > { %2378 = vmatpush.msra.mxu3 %v4834_v48  ;;  %2498 = vmatpush.msrb.mxu1 %v5110_v12  ;;  %v5227_v48 = vld [vmem:[%s5773_s2] ss:$0 sm:$0xff] }
 0x745   : > { %2409 = vmatpush.msrb.mxu0 %v5020_v43 }
 0x746   : > { %2379 = vmatpush.msra.mxu3 %v4840_v5  ;;  %2499 = vmatpush.msrb.mxu1 %v5116_v25 }
 0x747   : > { %2410 = vmatpush.msrb.mxu0 %v5035_v56 }
 0x748   : > { %2380 = vmatpush.msra.mxu3 %v4846_v17  ;;  %2500 = vmatpush.msrb.mxu1 %v5122_v29 }
 0x749   : > { %2411 = vmatpush.msrb.mxu0 %v5044_v42 }
 0x74a   : > { %2381 = vmatpush.msra.mxu3 %v4852_v55  ;;  %2501 = vmatpush.msrb.mxu1 %v5128_v45 }
 0x74b   : > { %2412 = vmatpush.msrb.mxu0 %v5053_v0  ;;  %v5277_v0 = vld [vmem:[%s5775_s4] ss:$0 sm:$0xff] }
 0x74c   : > { %2382 = vmatpush.msra.mxu3 %v4863_v62  ;;  %2502 = vmatpush.msrb.mxu1 %v5134_v44 }
 0x74d   : > { %2413 = vmatpush.msrb.mxu0 %v5062_v51 }
 0x74e   : > { %2383 = vmatpush.msra.mxu3 %v4881_v41  ;;  %2503 = vmatpush.msrb.mxu1 %v5140_v60 }
 0x74f   : > { %2414 = vmatpush.msrb.mxu0 %v5071_v24 }
 0x750   : > { %2384 = vmatpush.msra.mxu3 %v4899_v26  ;;  %2504 = vmatpush.msrb.mxu1 %v5146_v20 }
 0x751   : > { %2415 = vmatpush.msrb.mxu0 %v5080_v63 }
 0x752   : > { %2385 = vmatpush.msra.mxu3 %v4917_v6  ;;  %2505 = vmatpush.msrb.mxu1 %v5152_v19 }
 0x754   : > { %2386 = vmatpush.msra.mxu3 %v4935_v32  ;;  %2506 = vmatpush.msrb.mxu1 %v5158_v30 }
 0x756   : > { %2387 = vmatpush.msra.mxu3 %v4953_v28  ;;  %2507 = vmatpush.msrb.mxu1 %v5164_v13 }
 0x758   : > { %2388 = vmatpush.msra.mxu3 %v4969_v31  ;;  %2508 = vmatpush.msrb.mxu1 %v5170_v53 }
 0x75a   : > { %2389 = vmatpush.msra.mxu3 %v4984_v49  ;;  %2509 = vmatpush.msrb.mxu1 %v5177_v46 }
 0x75c   : > { %2390 = vmatpush.msra.mxu3 %v4999_v36  ;;  %2510 = vmatpush.msrb.mxu1 %v5184_v16 }
 0x75e   : > { %2391 = vmatpush.msra.mxu3 %v5014_v21  ;;  %2511 = vmatpush.msrb.mxu1 %v5191_v8 }
 0x760   : > { %2392 = vmatpush.msra.mxu3 %v5029_v14  ;;  %2512 = vmatpush.msrb.mxu1 %v5198_v22 }
 0x794   : > { %v2106_v17 = vpop.f32.mrf.mxu1 }
 0x79c   : > { %v2109_v59 = vpop.f32.mrf.mxu1 }
 0x79e   : > { %v2083_v2 = vpop.f32.mrf.mxu0 }
 0x79f   : > { %v2084_v5 = vadd.f32 %v5227_v48, %v2083_v2 }
 0x7a1   : > { %v2107_v55 = vadd.f32 %v2106_v17, %v2084_v5 }
 0x7a5   : > { %v2129_v62 = vpop.f32.mrf.mxu2 }
 0x7a6   : > { %v2086_v41 = vpop.f32.mrf.mxu0  ;;  %v2130_v15 = vadd.f32 %v2129_v62, %v2107_v55 }
 0x7a7   : > { %v2087_v26 = vadd.f32 %v5227_v48, %v2086_v41  ;;  %v5308_v41 = vld [vmem:[%s5772_s1 + $0xf0] sm:$0xff] }
 0x7a8   : > { %v2135_v34 = vmax.f32 %v2130_v15, 0.0  ;;  %v5314_v15 = vld [vmem:[%s5772_s1 + $0xe8] sm:$0xff] }
 0x7a9   : > { %v2110_v32 = vadd.f32 %v2109_v59, %v2087_v26  ;;  %v5320_v26 = vld [vmem:[%s5772_s1 + $0xe0] sm:$0xff]  ;;  %v5337_v59 = vld [vmem:[%s5772_s1 + $0xd0] sm:$0xff] }
 0x7aa   : > { %v2141_v6 = vrot.slane %v2135_v34, 7  ;;  %2248 = vmatmul.f32.vlgmr.msra.gmra.mxu0 %v2135_v34  ;;  %v2148_v31 = vrot.slane %v2135_v34, 1  ;;  %v5326_v34 = vld [vmem:[%s5772_s1 + $0xd8] sm:$0xff] }
 0x7ac   : > { %2146 = vst [vmem:[#allocation3] sm:$0xfe] %v2141_v6 }
 0x7ad   : > { %v2132_v33 = vpop.f32.mrf.mxu2 }
 0x7ae   : > { %v2133_v7 = vadd.f32 %v2132_v33, %v2110_v32  ;;  %v5344_v32 = vld [vmem:[%s5772_s1 + $0x178] sm:$0xff]  ;;  %v5349_v33 = vld [vmem:[%s5772_s1 + $0x70] sm:$0xff] }
 0x7b0   : > { %v2136_v28 = vmax.f32 %v2133_v7, 0.0  ;;  %v5355_v7 = vld [vmem:[%s5772_s1 + $0xc8] sm:$0xff] }
 0x7b2   : > { %v2149_v40 = vrot.slane %v2136_v28, 1  ;;  %2251 = vmatmul.f32.gmra.mxu0 %v2136_v28  ;;  %v2142_v36 = vrot.slane %v2136_v28, 7  ;;  %v5362_v28 = vld [vmem:[%s5772_s1 + $0x170] sm:$0xff] }
 0x7b3   : > { %v2155_v43 = vld [vmem:[#allocation3] sm:$0xff] }
 0x7b4   : > { %v2150_v49 = vsel %vm276_vm0, %v2148_v31, %v2149_v40  ;;  %2154 = vst [vmem:[#allocation3 + $0x10] sm:$0x7f] %v2149_v40  ;;  %2225 = vmatmul.f32.vlgmr.msrb.gmra.mxu3 %v2155_v43  ;;  %v2143_v21 = vsel %vm268_vm1, %v2141_v6, %v2142_v36  ;;  %v5332_v6 = vld [vmem:[%s5772_s1 + $0x78] sm:$0xff]  ;;  %v5367_v31 = vld [vmem:[%s5772_s1 + $0x68] sm:$0xff]  ;;  %v5373_v40 = vld [vmem:[%s5772_s1 + $0xc0] sm:$0xff] }
 0x7b5   : > { %2271 = vmatmul.f32.vlgmr.msra.gmra.mxu1 %v2150_v49  ;;  %2543 = vmatpush.msrb.mxu3 %v5108_v23  ;;  %v5380_v43 = vld [vmem:[%s5772_s1 + $0x168] sm:$0xff]  ;;  %v5385_v49 = vld [vmem:[%s5772_s1 + $0x60] sm:$0xff]  ;;  %v5391_v36 = vld [vmem:[%s5772_s1 + $0xb8] sm:$0xff] }
 0x7b6   : > { %2642 = vmatpush.msra.mxu0 %v5332_v6 }
 0x7b7   : > { %2544 = vmatpush.msrb.mxu3 %v5114_v10 }
 0x7b8   : > { %2643 = vmatpush.msra.mxu0 %v5349_v33 }
 0x7b9   : > { %2545 = vmatpush.msrb.mxu3 %v5120_v47 }
 0x7ba   : > { %2644 = vmatpush.msra.mxu0 %v5367_v31 }
 0x7bb   : > { %v2160_v56 = vld [vmem:[#allocation3 + $0x10] sm:$0xff]  ;;  %2546 = vmatpush.msrb.mxu3 %v5126_v37 }
 0x7bc   : > { %2228 = vmatmul.f32.gmra.mxu3 %v2143_v21  ;;  %2645 = vmatpush.msra.mxu0 %v5385_v49  ;;  %v5398_v21 = vld [vmem:[%s5772_s1 + $0x160] sm:$0xff] }
 0x7bd   : > { %2274 = vmatmul.f32.gmra.mxu1 %v2160_v56  ;;  %2547 = vmatpush.msrb.mxu3 %v5132_v39  ;;  %v5403_v56 = vld [vmem:[%s5772_s1 + $0x58] sm:$0xff] }
 0x7be   : > { %2646 = vmatpush.msra.mxu0 %v5403_v56 }
 0x7bf   : > { %2548 = vmatpush.msrb.mxu3 %v5138_v50 }
 0x7c1   : > { %2549 = vmatpush.msrb.mxu3 %v5144_v38 }
 0x7c3   : > { %2550 = vmatpush.msrb.mxu3 %v5150_v57 }
 0x7c5   : > { %2551 = vmatpush.msrb.mxu3 %v5156_v18 }
 0x7c7   : > { %2552 = vmatpush.msrb.mxu3 %v5162_v54 }
 0x7c9   : > { %2553 = vmatpush.msrb.mxu3 %v5168_v3 }
 0x7cb   : > { %2554 = vmatpush.msrb.mxu3 %v5175_v27 }
 0x7cd   : > { %2555 = vmatpush.msrb.mxu3 %v5182_v61 }
 0x7cf   : > { %2556 = vmatpush.msrb.mxu3 %v5189_v58 }
 0x7d1   : > { %2557 = vmatpush.msrb.mxu3 %v5196_v52 }
 0x7d3   : > { %2558 = vmatpush.msrb.mxu3 %v5203_v9 }
 0x827   : > { %v2249_v14 = vpop.f32.mrf.mxu0 }
 0x82f   : > { %v2252_v47 = vpop.f32.mrf.mxu0 }
 0x832   : > { %v2272_v24 = vpop.f32.mrf.mxu1 }
 0x837   : > { %v2226_v42 = vpop.f32.mrf.mxu3 }
 0x838   : > { %v2227_v51 = vadd.f32 %v5277_v0, %v2226_v42  ;;  %v5416_v42 = vld [vmem:[%s5772_s1 + $0x158] sm:$0xff] }
 0x83a   : > { %v2250_v63 = vadd.f32 %v2249_v14, %v2227_v51  ;;  %v2275_v37 = vpop.f32.mrf.mxu1  ;;  %v5409_v14 = vld [vmem:[%s5772_s1 + $0xb0] sm:$0xff] }
 0x83b   : > { %v5421_v51 = vld [vmem:[%s5772_s1 + $0x50] sm:$0xff] }
 0x83c   : > { %v2273_v4 = vadd.f32 %v2272_v24, %v2250_v63  ;;  %v5427_v24 = vld [vmem:[%s5772_s1 + $0xa8] sm:$0xff]  ;;  %2647 = vmatpush.msra.mxu0 %v5421_v51  ;;  %v5434_v63 = vld [vmem:[%s5772_s1 + $0x150] sm:$0xff] }
 0x83e   : > { %v5281_v23 = vadd.f32 %v2273_v4, %v5092_v35  ;;  %v2603_v4 = vld [vmem:[%s5772_s1 + $0x48] sm:$0xff] }
 0x83f   : > { %v2229_v12 = vpop.f32.mrf.mxu3  ;;  %2648 = vmatpush.msra.mxu0 %v2603_v4 }
 0x840   : > { %v2286_v10 = vrot.slane %v5281_v23, 7  ;;  %v2230_v25 = vadd.f32 %v5277_v0, %v2229_v12  ;;  %2393 = vmatmul.f32.vlgmr.msra.gmra.mxu3 %v5281_v23  ;;  %v2293_v44 = vrot.slane %v5281_v23, 1  ;;  %v5443_v12 = vld [vmem:[%s5772_s1 + $0xa0] sm:$0xff] }
 0x842   : > { %2291 = vst [vmem:[#allocation2 + $0x28] sm:$0xfe] %v2286_v10  ;;  %v2253_v29 = vadd.f32 %v2252_v47, %v2230_v25  ;;  %v2602_v25 = vld [vmem:[%s5772_s1 + $0x40] sm:$0xff]  ;;  %v5458_v47 = vld [vmem:[%s5772_s1 + $0x98] sm:$0xff] }
 0x843   : > { %2649 = vmatpush.msra.mxu0 %v2602_v25 }
 0x844   : > { %v2276_v45 = vadd.f32 %v2275_v37, %v2253_v29  ;;  %v5464_v29 = vld [vmem:[%s5772_s1 + $0x140] sm:$0xff]  ;;  %v2601_v37 = vld [vmem:[%s5772_s1 + $0x38] sm:$0xff] }
 0x845   : > { %2650 = vmatpush.msra.mxu0 %v2601_v37 }
 0x846   : > { %v5287_v39 = vadd.f32 %v2276_v45, %v5097_v1  ;;  %v5298_v1 = vld [vmem:[%s5772_s1 + $0xf8] sm:$0xff]  ;;  %v5473_v45 = vld [vmem:[%s5772_s1 + $0x90] sm:$0xff] }
 0x847   : > { %2665 = vmatpush.msra.mxu1 %v5298_v1 }
 0x848   : > { %v2294_v35 = vrot.slane %v5287_v39, 1  ;;  %2396 = vmatmul.f32.gmra.mxu3 %v5287_v39  ;;  %v2287_v38 = vrot.slane %v5287_v39, 7 }
 0x849   : > { %v2300_v50 = vld [vmem:[#allocation2 + $0x28] sm:$0xff]  ;;  %2666 = vmatpush.msra.mxu1 %v5308_v41 }
 0x84a   : > { %v2295_v60 = vsel %vm276_vm0, %v2293_v44, %v2294_v35  ;;  %2299 = vst [vmem:[#allocation2 + $0x20] sm:$0x7f] %v2294_v35  ;;  %2370 = vmatmul.f32.vlgmr.msra.gmra.mxu2 %v2300_v50  ;;  %v2288_v20 = vsel %vm268_vm1, %v2286_v10, %v2287_v38  ;;  %v5449_v10 = vld [vmem:[%s5772_s1 + $0x148] sm:$0xff]  ;;  %v5479_v44 = vld [vmem:[%s5772_s1 + $0x138] sm:$0xff]  ;;  %v2600_v35 = vld [vmem:[%s5772_s1 + $0x30] sm:$0xff] }
 0x84b   : > { %2416 = vmatmul.f32.vlgmr.msrb.gmra.mxu0 %v2295_v60  ;;  %2667 = vmatpush.msra.mxu1 %v5314_v15  ;;  %v5488_v50 = vld [vmem:[%s5772_s1 + $0x88] sm:$0xff]  ;;  %v5494_v60 = vld [vmem:[%s5772_s1 + $0x130] sm:$0xff] }
 0x84c   : > { %2688 = vmatpush.msra.mxu2 %v5344_v32  ;;  %2651 = vmatpush.msra.mxu0 %v2600_v35  ;;  %v2599_v38 = vld [vmem:[%s5772_s1 + $0x28] sm:$0xff] }
 0x84d   : > { %2668 = vmatpush.msra.mxu1 %v5320_v26 }
 0x84e   : > { %2689 = vmatpush.msra.mxu2 %v5362_v28  ;;  %2652 = vmatpush.msra.mxu0 %v2599_v38 }
 0x84f   : > { %2669 = vmatpush.msra.mxu1 %v5326_v34 }
 0x850   : > { %2690 = vmatpush.msra.mxu2 %v5380_v43 }
 0x851   : > { %v2305_v57 = vld [vmem:[#allocation2 + $0x20] sm:$0xff]  ;;  %2670 = vmatpush.msra.mxu1 %v5337_v59 }
 0x852   : > { %2373 = vmatmul.f32.gmra.mxu2 %v2288_v20  ;;  %v5503_v20 = vld [vmem:[%s5772_s1 + $0x80] sm:$0xff] }
 0x853   : > { %2419 = vmatmul.f32.gmra.mxu0 %v2305_v57  ;;  %2671 = vmatpush.msra.mxu1 %v5355_v7  ;;  %v5509_v57 = vld [vmem:[%s5772_s1 + $0x128] sm:$0xff] }
 0x854   : > { %2691 = vmatpush.msra.mxu2 %v5398_v21 }
 0x855   : > { %2672 = vmatpush.msra.mxu1 %v5373_v40 }
 0x856   : > { %2692 = vmatpush.msra.mxu2 %v5416_v42 }
 0x857   : > { %2673 = vmatpush.msra.mxu1 %v5391_v36 }
 0x858   : > { %2693 = vmatpush.msra.mxu2 %v5434_v63 }
 0x859   : > { %2674 = vmatpush.msra.mxu1 %v5409_v14 }
 0x85a   : > { %2694 = vmatpush.msra.mxu2 %v5449_v10 }
 0x85b   : > { %2675 = vmatpush.msra.mxu1 %v5427_v24 }
 0x85c   : > { %2695 = vmatpush.msra.mxu2 %v5464_v29 }
 0x85d   : > { %2676 = vmatpush.msra.mxu1 %v5443_v12 }
 0x85e   : > { %2696 = vmatpush.msra.mxu2 %v5479_v44 }
 0x85f   : > { %2677 = vmatpush.msra.mxu1 %v5458_v47 }
 0x860   : > { %2697 = vmatpush.msra.mxu2 %v5494_v60 }
 0x861   : > { %2678 = vmatpush.msra.mxu1 %v5473_v45 }
 0x862   : > { %2698 = vmatpush.msra.mxu2 %v5509_v57 }
 0x863   : > { %2679 = vmatpush.msra.mxu1 %v5488_v50 }
 0x865   : > { %2680 = vmatpush.msra.mxu1 %v5503_v20 }
 0x8c3   : > { %v2394_v19 = vpop.f32.mrf.mxu3 }
 0x8c8   : > { %v2417_v54 = vpop.f32.mrf.mxu0 }
 0x8cb   : > { %v2397_v61 = vpop.f32.mrf.mxu3 }
 0x8cd   : > { %v2371_v18 = vpop.f32.mrf.mxu2 }
 0x8ce   : > { %v2372_v30 = vadd.f32 %v5227_v48, %v2371_v18  ;;  %v5518_v18 = vld [vmem:[%s5772_s1 + $0x120] sm:$0xff] }
 0x8cf   : > { %2699 = vmatpush.msra.mxu2 %v5518_v18 }
 0x8d0   : > { %v2395_v13 = vadd.f32 %v2394_v19, %v2372_v30  ;;  %v2420_v58 = vpop.f32.mrf.mxu0  ;;  %v2598_v19 = vld [vmem:[%s5772_s1 + $0x20] sm:$0xff]  ;;  %v2597_v30 = vld [vmem:[%s5772_s1 + $0x18] sm:$0xff] }
 0x8d1   : > { %2653 = vmatpush.msra.mxu0 %v2598_v19 }
 0x8d2   : > { %v2418_v11 = vadd.f32 %v2417_v54, %v2395_v13  ;;  %v5527_v54 = vld [vmem:[%s5772_s1 + $0x118] sm:$0xff]  ;;  %v2596_v13 = vld [vmem:[%s5772_s1 + $0x10] sm:$0xff] }
 0x8d3   : > { %2654 = vmatpush.msra.mxu0 %v2597_v30  ;;  %2700 = vmatpush.msra.mxu2 %v5527_v54 }
 0x8d4   : > { %v2423_v3 = vmax.f32 %v2418_v11, 0.0  ;;  %v5536_v11 = vld [vmem:[%s5772_s1 + $0x110] sm:$0xff] }
 0x8d5   : > { %v2374_v53 = vpop.f32.mrf.mxu2  ;;  %2655 = vmatpush.msra.mxu0 %v2596_v13  ;;  %2701 = vmatpush.msra.mxu2 %v5536_v11 }
 0x8d6   : > { %v2429_v27 = vrot.slane %v2423_v3, 7  ;;  %v2375_v46 = vadd.f32 %v5227_v48, %v2374_v53  ;;  %2536 = vmatmul.f32.vlgmr.msrb.gmra.mxu2 %v2423_v3  ;;  %v2436_v22 = vrot.slane %v2423_v3, 1  ;;  %v2595_v3 = vld [vmem:[%s5772_s1 + $0x8] sm:$0xff] }
 0x8d7   : > { %2656 = vmatpush.msra.mxu0 %v2595_v3  ;;  %v5545_v53 = vld [vmem:[%s5772_s1 + $0x108] sm:$0xff] }
 0x8d8   : > { %2434 = vst [vmem:[#allocation3] sm:$0xfe] %v2429_v27  ;;  %v2398_v16 = vadd.f32 %v2397_v61, %v2375_v46  ;;  %2702 = vmatpush.msra.mxu2 %v5545_v53  ;;  %v5554_v46 = vld [vmem:[%s5772_s1 + $0x100] sm:$0xff]  ;;  %v2768_v61 = vld [vmem:[#allocation4 + $0xf8] sm:$0xff] }
 0x8da   : > { %v2421_v8 = vadd.f32 %v2420_v58, %v2398_v16  ;;  %2703 = vmatpush.msra.mxu2 %v5554_v46 }
 0x8dc   : > { %v2424_v52 = vmax.f32 %v2421_v8, 0.0  ;;  %2930 = vmatpush.msrb.mxu2 %v5332_v6 }
 0x8de   : > { %v2437_v9 = vrot.slane %v2424_v52, 1  ;;  %2539 = vmatmul.f32.gmra.mxu2 %v2424_v52  ;;  %v2430_v17 = vrot.slane %v2424_v52, 7 }
 0x8df   : > { %v2443_v2 = vld [vmem:[#allocation3] sm:$0xff]  ;;  %2931 = vmatpush.msrb.mxu2 %v5349_v33 }
 0x8e0   : > { %v2438_v5 = vsel %vm276_vm0, %v2436_v22, %v2437_v9  ;;  %2442 = vst [vmem:[#allocation3 + $0x10] sm:$0x7f] %v2437_v9  ;;  %2513 = vmatmul.f32.vlgmr.msrb.gmra.mxu1 %v2443_v2  ;;  %v2431_v55 = vsel %vm268_vm1, %v2429_v27, %v2430_v17  ;;  %v2594_v27 = vld [vmem:[%s5772_s1] sm:$0xff] }
 0x8e1   : > { %2559 = vmatmul.f32.vlgmr.msrb.gmra.mxu3 %v2438_v5  ;;  %2657 = vmatpush.msra.mxu0 %v2594_v27 }
 0x8e2   : > { %2932 = vmatpush.msrb.mxu2 %v5367_v31 }
 0x8e3   : > { %2808 = vmatpush.msrb.mxu0 %v2768_v61 }
 0x8e4   : > { %2933 = vmatpush.msrb.mxu2 %v5385_v49 }
 0x8e6   : > { %2934 = vmatpush.msrb.mxu2 %v5403_v56 }
 0x8e7   : > { %v2448_v62 = vld [vmem:[#allocation3 + $0x10] sm:$0xff] }
 0x8e8   : > { %2516 = vmatmul.f32.gmra.mxu1 %v2431_v55  ;;  %2935 = vmatpush.msrb.mxu2 %v5421_v51 }
 0x8e9   : > { %2562 = vmatmul.f32.gmra.mxu3 %v2448_v62 }
 0x8ea   : > { %2936 = vmatpush.msrb.mxu2 %v2603_v4 }
 0x8ec   : > { %2937 = vmatpush.msrb.mxu2 %v2602_v25 }
 0x8ee   : > { %2938 = vmatpush.msrb.mxu2 %v2601_v37 }
 0x8f0   : > { %2939 = vmatpush.msrb.mxu2 %v2600_v35  ;;  %v2767_v35 = vld [vmem:[#allocation4 + $0xf0] sm:$0xff] }
 0x8f1   : > { %2809 = vmatpush.msrb.mxu0 %v2767_v35 }
 0x8f2   : > { %2940 = vmatpush.msrb.mxu2 %v2599_v38  ;;  %v2766_v38 = vld [vmem:[#allocation4 + $0xe8] sm:$0xff] }
 0x8f3   : > { %2810 = vmatpush.msrb.mxu0 %v2766_v38 }
 0x8f4   : > { %2941 = vmatpush.msrb.mxu2 %v2598_v19  ;;  %v2765_v19 = vld [vmem:[#allocation4 + $0xe0] sm:$0xff] }
 0x8f5   : > { %2811 = vmatpush.msrb.mxu0 %v2765_v19 }
 0x8f6   : > { %2942 = vmatpush.msrb.mxu2 %v2597_v30  ;;  %v2764_v30 = vld [vmem:[#allocation4 + $0xd8] sm:$0xff] }
 0x8f7   : > { %2812 = vmatpush.msrb.mxu0 %v2764_v30 }
 0x8f8   : > { %2943 = vmatpush.msrb.mxu2 %v2596_v13  ;;  %v5579_v13 = vld [vmem:[#allocation4 + $0x78] sm:$0xff] }
 0x8f9   : > { %2785 = vmatpush.msra.mxu3 %v5579_v13 }
 0x8fa   : > { %2944 = vmatpush.msrb.mxu2 %v2595_v3  ;;  %v2763_v3 = vld [vmem:[#allocation4 + $0xd0] sm:$0xff] }
 0x8fb   : > { %2813 = vmatpush.msrb.mxu0 %v2763_v3 }
 0x8fc   : > { %2945 = vmatpush.msrb.mxu2 %v2594_v27  ;;  %v5582_v27 = vld [vmem:[#allocation4 + $0x178] sm:$0xff] }
 0x8fd   : > { %2831 = vmatpush.msrb.mxu1 %v5582_v27 }
 0x959   : > { %v2537_v8 = vpop.f32.mrf.mxu2 }
 0x95d   : > { %v2514_v16 = vpop.f32.mrf.mxu1 }
 0x95e   : > { %v2515_v58 = vadd.f32 %v5277_v0, %v2514_v16  ;;  %v2762_v16 = vld [vmem:[#allocation4 + $0xc8] sm:$0xff] }
 0x95f   : > { %2814 = vmatpush.msrb.mxu0 %v2762_v16 }
 0x960   : > { %v2538_v52 = vadd.f32 %v2537_v8, %v2515_v58  ;;  %v5588_v58 = vld [vmem:[#allocation4 + $0x170] sm:$0xff]  ;;  %v5590_v8 = vld [vmem:[#allocation4 + $0x68] sm:$0xff] }
 0x961   : > { %v2540_v62 = vpop.f32.mrf.mxu2  ;;  %2832 = vmatpush.msrb.mxu1 %v5588_v58 }
 0x964   : > { %v2560_v22 = vpop.f32.mrf.mxu3 }
 0x965   : > { %v2517_v9 = vpop.f32.mrf.mxu1  ;;  %v2561_v2 = vadd.f32 %v2560_v22, %v2538_v52  ;;  %v2761_v52 = vld [vmem:[#allocation4 + $0xc0] sm:$0xff]  ;;  %v5594_v22 = vld [vmem:[#allocation4 + $0x168] sm:$0xff] }
 0x966   : > { %v2518_v5 = vadd.f32 %v5277_v0, %v2517_v9  ;;  %2815 = vmatpush.msrb.mxu0 %v2761_v52  ;;  %v5596_v9 = vld [vmem:[#allocation4 + $0x60] sm:$0xff]  ;;  %2833 = vmatpush.msrb.mxu1 %v5594_v22 }
 0x967   : > { %v5566_v17 = vadd.f32 %v2561_v2, %v5281_v23  ;;  %v2760_v2 = vld [vmem:[#allocation4 + $0xb8] sm:$0xff] }
 0x968   : > { %v2541_v6 = vadd.f32 %v2540_v62, %v2518_v5  ;;  %2816 = vmatpush.msrb.mxu0 %v2760_v2  ;;  %v5600_v5 = vld [vmem:[#allocation4 + $0x160] sm:$0xff]  ;;  %v2759_v62 = vld [vmem:[#allocation4 + $0xb0] sm:$0xff] }
 0x969   : > { %v2574_v55 = vrot.slane %v5566_v17, 7  ;;  %2681 = vmatmul.f32.vlgmr.msra.gmra.mxu1 %v5566_v17  ;;  %v2581_v23 = vrot.slane %v5566_v17, 1 }
 0x96a   : > { %2834 = vmatpush.msrb.mxu1 %v5600_v5  ;;  %2817 = vmatpush.msrb.mxu0 %v2759_v62 }
 0x96b   : > { %2579 = vst [vmem:[#allocation2 + $0x28] sm:$0xfe] %v2574_v55 }
 0x96c   : > { %v2563_v33 = vpop.f32.mrf.mxu3 }
 0x96d   : > { %v2564_v31 = vadd.f32 %v2563_v33, %v2541_v6  ;;  %v5606_v6 = vld [vmem:[#allocation4 + $0x158] sm:$0xff]  ;;  %v5608_v33 = vld [vmem:[#allocation4 + $0x50] sm:$0xff] }
 0x96e   : > { %2835 = vmatpush.msrb.mxu1 %v5606_v6 }
 0x96f   : > { %v5571_v49 = vadd.f32 %v2564_v31, %v5287_v39  ;;  %v2758_v31 = vld [vmem:[#allocation4 + $0xa8] sm:$0xff] }
 0x970   : > { %2818 = vmatpush.msrb.mxu0 %v2758_v31 }
 0x971   : > { %5795 = vst [vmem:[#allocation9_spill] sm:$0xff] %v5571_v49  ;;  %v2582_v56 = vrot.slane %v5571_v49, 1  ;;  %2684 = vmatmul.f32.gmra.mxu1 %v5571_v49  ;;  %v2575_v25 = vrot.slane %v5571_v49, 7  ;;  %v5672_v49 = vld [vmem:[#allocation4] sm:$0xff] }
 0x972   : > { %v2588_v51 = vld [vmem:[#allocation2 + $0x28] sm:$0xff] }
 0x973   : > { %v2583_v4 = vsel %vm276_vm0, %v2581_v23, %v2582_v56  ;;  %2587 = vst [vmem:[#allocation2 + $0x20] sm:$0x7f] %v2582_v56  ;;  %2658 = vmatmul.f32.vlgmr.msra.gmra.mxu0 %v2588_v51  ;;  %v2576_v39 = vsel %vm268_vm1, %v2574_v55, %v2575_v25  ;;  %v5602_v55 = vld [vmem:[#allocation4 + $0x58] sm:$0xff]  ;;  %v5612_v23 = vld [vmem:[#allocation4 + $0x150] sm:$0xff]  ;;  %v5614_v56 = vld [vmem:[#allocation4 + $0x48] sm:$0xff] }
 0x974   : > { %2704 = vmatmul.f32.vlgmr.msra.gmra.mxu2 %v2583_v4  ;;  %2836 = vmatpush.msrb.mxu1 %v5612_v23  ;;  %v2757_v51 = vld [vmem:[#allocation4 + $0xa0] sm:$0xff]  ;;  %v5618_v4 = vld [vmem:[#allocation4 + $0x148] sm:$0xff] }
 0x975   : > { %3096 = vmatpush.msra.mxu2 %v2768_v61  ;;  %v5584_v61 = vld [vmem:[#allocation4 + $0x70] sm:$0xff]  ;;  %2819 = vmatpush.msrb.mxu0 %v2757_v51  ;;  %v5620_v25 = vld [vmem:[#allocation4 + $0x40] sm:$0xff] }
 0x976   : > { %2786 = vmatpush.msra.mxu3 %v5584_v61  ;;  %2837 = vmatpush.msrb.mxu1 %v5618_v4 }
 0x977   : > { %3097 = vmatpush.msra.mxu2 %v2767_v35  ;;  %v5626_v35 = vld [vmem:[#allocation4 + $0x38] sm:$0xff] }
 0x978   : > { %2787 = vmatpush.msra.mxu3 %v5590_v8 }
 0x979   : > { %3098 = vmatpush.msra.mxu2 %v2766_v38  ;;  %v2755_v38 = vld [vmem:[#allocation4 + $0x90] sm:$0xff] }
 0x97a   : > { %v2593_v37 = vld [vmem:[#allocation2 + $0x20] sm:$0xff]  ;;  %2788 = vmatpush.msra.mxu3 %v5596_v9 }
 0x97b   : > { %2661 = vmatmul.f32.gmra.mxu0 %v2576_v39  ;;  %3099 = vmatpush.msra.mxu2 %v2765_v19  ;;  %v2756_v39 = vld [vmem:[#allocation4 + $0x98] sm:$0xff] }
 0x97c   : > { %2707 = vmatmul.f32.gmra.mxu2 %v2593_v37  ;;  %2789 = vmatpush.msra.mxu3 %v5602_v55  ;;  %v5624_v37 = vld [vmem:[#allocation4 + $0x140] sm:$0xff]  ;;  %v5630_v19 = vld [vmem:[#allocation4 + $0x138] sm:$0xff] }
 0x97d   : > { %3100 = vmatpush.msra.mxu2 %v2764_v30  ;;  %2820 = vmatpush.msrb.mxu0 %v2756_v39  ;;  %v5632_v30 = vld [vmem:[#allocation4 + $0x30] sm:$0xff] }
 0x97e   : > { %2790 = vmatpush.msra.mxu3 %v5608_v33  ;;  %2838 = vmatpush.msrb.mxu1 %v5624_v37 }
 0x97f   : > { %3101 = vmatpush.msra.mxu2 %v2763_v3  ;;  %2821 = vmatpush.msrb.mxu0 %v2755_v38  ;;  %v2754_v3 = vld [vmem:[#allocation4 + $0x88] sm:$0xff] }
 0x980   : > { %2791 = vmatpush.msra.mxu3 %v5614_v56  ;;  %2839 = vmatpush.msrb.mxu1 %v5630_v19 }
 0x981   : > { %3102 = vmatpush.msra.mxu2 %v2762_v16  ;;  %2822 = vmatpush.msrb.mxu0 %v2754_v3  ;;  %v5636_v16 = vld [vmem:[#allocation4 + $0x130] sm:$0xff] }
 0x982   : > { %2792 = vmatpush.msra.mxu3 %v5620_v25  ;;  %2840 = vmatpush.msrb.mxu1 %v5636_v16 }
 0x983   : > { %3103 = vmatpush.msra.mxu2 %v2761_v52  ;;  %v5638_v52 = vld [vmem:[#allocation4 + $0x28] sm:$0xff] }
 0x984   : > { %2793 = vmatpush.msra.mxu3 %v5626_v35 }
 0x985   : > { %3104 = vmatpush.msra.mxu2 %v2760_v2  ;;  %v2753_v2 = vld [vmem:[#allocation4 + $0x80] sm:$0xff] }
 0x986   : > { %2794 = vmatpush.msra.mxu3 %v5632_v30  ;;  %2823 = vmatpush.msrb.mxu0 %v2753_v2 }
 0x987   : > { %3105 = vmatpush.msra.mxu2 %v2759_v62  ;;  %v5642_v62 = vld [vmem:[#allocation4 + $0x128] sm:$0xff] }
 0x988   : > { %2795 = vmatpush.msra.mxu3 %v5638_v52  ;;  %2841 = vmatpush.msrb.mxu1 %v5642_v62 }
 0x989   : > { %3106 = vmatpush.msra.mxu2 %v2758_v31  ;;  %v5644_v31 = vld [vmem:[#allocation4 + $0x20] sm:$0xff]  ;;  %2976 = vmatpush.msra.mxu0 %v5344_v32  ;;  %v5663_v32 = vld [vmem:[#allocation4 + $0x110] sm:$0xff] }
 0x98a   : > { %2796 = vmatpush.msra.mxu3 %v5644_v31 }
 0x98b   : > { %3107 = vmatpush.msra.mxu2 %v2757_v51  ;;  %v5649_v51 = vld [vmem:[#allocation4 + $0x120] sm:$0xff]  ;;  %2977 = vmatpush.msra.mxu0 %v5362_v28  ;;  %v5670_v28 = vld [vmem:[#allocation4 + $0x108] sm:$0xff] }
 0x98c   : > { %2842 = vmatpush.msrb.mxu1 %v5649_v51 }
 0x98d   : > { %3108 = vmatpush.msra.mxu2 %v2756_v39  ;;  %v5651_v39 = vld [vmem:[#allocation4 + $0x18] sm:$0xff]  ;;  %2978 = vmatpush.msra.mxu0 %v5380_v43  ;;  %v5677_v43 = vld [vmem:[#allocation4 + $0x100] sm:$0xff] }
 0x98e   : > { %2797 = vmatpush.msra.mxu3 %v5651_v39 }
 0x98f   : > { %3109 = vmatpush.msra.mxu2 %v2755_v38  ;;  %v5656_v38 = vld [vmem:[#allocation4 + $0x118] sm:$0xff]  ;;  %2979 = vmatpush.msra.mxu0 %v5398_v21 }
 0x990   : > { %2843 = vmatpush.msrb.mxu1 %v5656_v38 }
 0x991   : > { %3110 = vmatpush.msra.mxu2 %v2754_v3  ;;  %v5658_v3 = vld [vmem:[#allocation4 + $0x10] sm:$0xff]  ;;  %2980 = vmatpush.msra.mxu0 %v5416_v42 }
 0x992   : > { %2798 = vmatpush.msra.mxu3 %v5658_v3  ;;  %2844 = vmatpush.msrb.mxu1 %v5663_v32 }
 0x993   : > { %3111 = vmatpush.msra.mxu2 %v2753_v2  ;;  %v5665_v2 = vld [vmem:[#allocation4 + $0x8] sm:$0xff]  ;;  %2981 = vmatpush.msra.mxu0 %v5434_v63 }
 0x994   : > { %2799 = vmatpush.msra.mxu3 %v5665_v2  ;;  %2845 = vmatpush.msrb.mxu1 %v5670_v28 }
 0x995   : > { %2982 = vmatpush.msra.mxu0 %v5449_v10 }
 0x996   : > { %2800 = vmatpush.msra.mxu3 %v5672_v49  ;;  %2846 = vmatpush.msrb.mxu1 %v5677_v43 }
 0x997   : > { %2983 = vmatpush.msra.mxu0 %v5464_v29 }
 0x998   : > { %2953 = vmatpush.msrb.mxu3 %v5298_v1  ;;  %3073 = vmatpush.msra.mxu1 %v5579_v13 }
 0x999   : > { %2984 = vmatpush.msra.mxu0 %v5479_v44 }
 0x99a   : > { %2954 = vmatpush.msrb.mxu3 %v5308_v41  ;;  %3074 = vmatpush.msra.mxu1 %v5584_v61 }
 0x99b   : > { %2985 = vmatpush.msra.mxu0 %v5494_v60 }
 0x99c   : > { %2955 = vmatpush.msrb.mxu3 %v5314_v15  ;;  %3075 = vmatpush.msra.mxu1 %v5590_v8 }
 0x99d   : > { %2986 = vmatpush.msra.mxu0 %v5509_v57 }
 0x99e   : > { %2956 = vmatpush.msrb.mxu3 %v5320_v26  ;;  %3076 = vmatpush.msra.mxu1 %v5596_v9  ;;  %v5796_v9 = vld [vmem:[#allocation9_spill] sm:$0xff] }
 0x99f   : > { %2987 = vmatpush.msra.mxu0 %v5518_v18 }
 0x9a0   : > { %2957 = vmatpush.msrb.mxu3 %v5326_v34  ;;  %3077 = vmatpush.msra.mxu1 %v5602_v55 }
 0x9a1   : > { %2988 = vmatpush.msra.mxu0 %v5527_v54 }
 0x9a2   : > { %2958 = vmatpush.msrb.mxu3 %v5337_v59  ;;  %3078 = vmatpush.msra.mxu1 %v5608_v33 }
 0x9a3   : > { %2989 = vmatpush.msra.mxu0 %v5536_v11 }
 0x9a4   : > { %2959 = vmatpush.msrb.mxu3 %v5355_v7  ;;  %3079 = vmatpush.msra.mxu1 %v5614_v56 }
 0x9a5   : > { %2990 = vmatpush.msra.mxu0 %v5545_v53 }
 0x9a6   : > { %2960 = vmatpush.msrb.mxu3 %v5373_v40  ;;  %3080 = vmatpush.msra.mxu1 %v5620_v25 }
 0x9a7   : > { %2991 = vmatpush.msra.mxu0 %v5554_v46 }
 0x9a8   : > { %2961 = vmatpush.msrb.mxu3 %v5391_v36  ;;  %3081 = vmatpush.msra.mxu1 %v5626_v35 }
 0x9aa   : > { %2962 = vmatpush.msrb.mxu3 %v5409_v14  ;;  %3082 = vmatpush.msra.mxu1 %v5632_v30 }
 0x9ac   : > { %2963 = vmatpush.msrb.mxu3 %v5427_v24  ;;  %3083 = vmatpush.msra.mxu1 %v5638_v52 }
 0x9ae   : > { %2964 = vmatpush.msrb.mxu3 %v5443_v12  ;;  %3084 = vmatpush.msra.mxu1 %v5644_v31 }
 0x9b0   : > { %2965 = vmatpush.msrb.mxu3 %v5458_v47  ;;  %3085 = vmatpush.msra.mxu1 %v5651_v39 }
 0x9b2   : > { %2966 = vmatpush.msrb.mxu3 %v5473_v45  ;;  %3086 = vmatpush.msra.mxu1 %v5658_v3 }
 0x9b4   : > { %2967 = vmatpush.msrb.mxu3 %v5488_v50  ;;  %3087 = vmatpush.msra.mxu1 %v5665_v2 }
 0x9b6   : > { %2968 = vmatpush.msrb.mxu3 %v5503_v20  ;;  %3088 = vmatpush.msra.mxu1 %v5672_v49 }
 0x9e6   : > { %v2682_v15 = vpop.f32.mrf.mxu1 }
 0x9ee   : > { %v2685_v42 = vpop.f32.mrf.mxu1 }
 0x9f0   : > { %v2659_v1 = vpop.f32.mrf.mxu0 }
 0x9f1   : > { %v2660_v41 = vadd.f32 %v5227_v48, %v2659_v1 }
 0x9f3   : > { %v2683_v26 = vadd.f32 %v2682_v15, %v2660_v41 }
 0x9f7   : > { %v2705_v34 = vpop.f32.mrf.mxu2 }
 0x9f8   : > { %v2662_v59 = vpop.f32.mrf.mxu0  ;;  %v2706_v7 = vadd.f32 %v2705_v34, %v2683_v26 }
 0x9f9   : > { %v2663_v40 = vadd.f32 %v5227_v48, %v2662_v59 }
 0x9fa   : > { %v2711_v21 = vmax.f32 %v2706_v7, 0.0 }
 0x9fb   : > { %v2686_v14 = vadd.f32 %v2685_v42, %v2663_v40 }
 0x9fc   : > { %v2717_v36 = vrot.slane %v2711_v21, 7  ;;  %2824 = vmatmul.f32.vlgmr.msrb.gmra.mxu0 %v2711_v21  ;;  %v2724_v12 = vrot.slane %v2711_v21, 1 }
 0x9fe   : > { %2722 = vst [vmem:[#allocation3] sm:$0xfe] %v2717_v36 }
 0x9ff   : > { %v2708_v63 = vpop.f32.mrf.mxu2 }
 0xa00   : > { %v2709_v10 = vadd.f32 %v2708_v63, %v2686_v14 }
 0xa02   : > { %v2712_v24 = vmax.f32 %v2709_v10, 0.0 }
 0xa04   : > { %v2725_v29 = vrot.slane %v2712_v24, 1  ;;  %2827 = vmatmul.f32.gmra.mxu0 %v2712_v24  ;;  %v2718_v45 = vrot.slane %v2712_v24, 7 }
 0xa05   : > { %v2731_v44 = vld [vmem:[#allocation3] sm:$0xff] }
 0xa06   : > { %v2726_v47 = vsel %vm276_vm0, %v2724_v12, %v2725_v29  ;;  %2730 = vst [vmem:[#allocation3 + $0x10] sm:$0x7f] %v2725_v29  ;;  %2801 = vmatmul.f32.vlgmr.msra.gmra.mxu3 %v2731_v44  ;;  %v2719_v50 = vsel %vm268_vm1, %v2717_v36, %v2718_v45 }
 0xa07   : > { %2847 = vmatmul.f32.vlgmr.msrb.gmra.mxu1 %v2726_v47  ;;  %3119 = vmatpush.msra.mxu3 %v5582_v27 }
 0xa09   : > { %3120 = vmatpush.msra.mxu3 %v5588_v58 }
 0xa0b   : > { %3121 = vmatpush.msra.mxu3 %v5594_v22 }
 0xa0d   : > { %v2736_v60 = vld [vmem:[#allocation3 + $0x10] sm:$0xff]  ;;  %3122 = vmatpush.msra.mxu3 %v5600_v5 }
 0xa0e   : > { %2804 = vmatmul.f32.gmra.mxu3 %v2719_v50 }
 0xa0f   : > { %2850 = vmatmul.f32.gmra.mxu1 %v2736_v60  ;;  %3123 = vmatpush.msra.mxu3 %v5606_v6 }
 0xa11   : > { %3124 = vmatpush.msra.mxu3 %v5612_v23 }
 0xa13   : > { %3125 = vmatpush.msra.mxu3 %v5618_v4 }
 0xa15   : > { %3126 = vmatpush.msra.mxu3 %v5624_v37 }
 0xa17   : > { %3127 = vmatpush.msra.mxu3 %v5630_v19 }
 0xa19   : > { %3128 = vmatpush.msra.mxu3 %v5636_v16 }
 0xa1b   : > { %3129 = vmatpush.msra.mxu3 %v5642_v62 }
 0xa1d   : > { %3130 = vmatpush.msra.mxu3 %v5649_v51  ;;  %v3278_v51 = vld [vmem:[%s5773_s2] ss:$0 sm:$0xff] }
 0xa1f   : > { %3131 = vmatpush.msra.mxu3 %v5656_v38 }
 0xa21   : > { %3132 = vmatpush.msra.mxu3 %v5663_v32 }
 0xa23   : > { %3133 = vmatpush.msra.mxu3 %v5670_v28 }
 0xa25   : > { %3134 = vmatpush.msra.mxu3 %v5677_v43 }
 0xa79   : > { %v2825_v20 = vpop.f32.mrf.mxu0 }
 0xa81   : > { %v2828_v61 = vpop.f32.mrf.mxu0 }
 0xa84   : > { %v2848_v54 = vpop.f32.mrf.mxu1 }
 0xa89   : > { %v2802_v57 = vpop.f32.mrf.mxu3 }
 0xa8a   : > { %v2803_v18 = vadd.f32 %v5277_v0, %v2802_v57 }
 0xa8c   : > { %v2826_v11 = vadd.f32 %v2825_v20, %v2803_v18  ;;  %v2851_v8 = vpop.f32.mrf.mxu1 }
 0xa8e   : > { %v2849_v53 = vadd.f32 %v2848_v54, %v2826_v11 }
 0xa90   : > { %v5745_v46 = vadd.f32 %v2849_v53, %v5566_v17 }
 0xa91   : > { %v2805_v49 = vpop.f32.mrf.mxu3 }
 0xa92   : > { %v2862_v13 = vrot.slane %v5745_v46, 7  ;;  %v2806_v27 = vadd.f32 %v5277_v0, %v2805_v49  ;;  %2969 = vmatmul.f32.vlgmr.msrb.gmra.mxu3 %v5745_v46  ;;  %v2869_v55 = vrot.slane %v5745_v46, 1 }
 0xa94   : > { %2867 = vst [vmem:[#allocation2 + $0x28] sm:$0xfe] %v2862_v13  ;;  %v2829_v58 = vadd.f32 %v2828_v61, %v2806_v27 }
 0xa96   : > { %v2852_v22 = vadd.f32 %v2851_v8, %v2829_v58 }
 0xa98   : > { %v2857_v5 = vadd.f32 %v2852_v22, %v5796_v9 }
 0xa9a   : > { %v2870_v6 = vrot.slane %v2857_v5, 1  ;;  %2972 = vmatmul.f32.gmra.mxu3 %v2857_v5  ;;  %v2863_v23 = vrot.slane %v2857_v5, 7 }
 0xa9b   : > { %v2876_v17 = vld [vmem:[#allocation2 + $0x28] sm:$0xff] }
 0xa9c   : > { %v2871_v33 = vsel %vm276_vm0, %v2869_v55, %v2870_v6  ;;  %2875 = vst [vmem:[#allocation2 + $0x20] sm:$0x7f] %v2870_v6  ;;  %2946 = vmatmul.f32.vlgmr.msrb.gmra.mxu2 %v2876_v17  ;;  %v2864_v56 = vsel %vm268_vm1, %v2862_v13, %v2863_v23 }
 0xa9d   : > { %2992 = vmatmul.f32.vlgmr.msra.gmra.mxu0 %v2871_v33 }
 0xaa3   : > { %v2881_v4 = vld [vmem:[#allocation2 + $0x20] sm:$0xff] }
 0xaa4   : > { %2949 = vmatmul.f32.gmra.mxu2 %v2864_v56 }
 0xaa5   : > { %2995 = vmatmul.f32.gmra.mxu0 %v2881_v4 }
 0xb15   : > { %v2970_v25 = vpop.f32.mrf.mxu3 }
 0xb1a   : > { %v2993_v19 = vpop.f32.mrf.mxu0 }
 0xb1d   : > { %v2973_v38 = vpop.f32.mrf.mxu3 }
 0xb1f   : > { %v2947_v37 = vpop.f32.mrf.mxu2 }
 0xb20   : > { %v2948_v35 = vadd.f32 %v5227_v48, %v2947_v37 }
 0xb22   : > { %v2971_v30 = vadd.f32 %v2970_v25, %v2948_v35  ;;  %v2996_v32 = vpop.f32.mrf.mxu0 }
 0xb24   : > { %v2994_v16 = vadd.f32 %v2993_v19, %v2971_v30 }
 0xb26   : > { %v2999_v52 = vmax.f32 %v2994_v16, 0.0 }
 0xb27   : > { %v2950_v62 = vpop.f32.mrf.mxu2 }
 0xb28   : > { %v3005_v31 = vrot.slane %v2999_v52, 7  ;;  %v2951_v39 = vadd.f32 %v3278_v51, %v2950_v62  ;;  %3112 = vmatmul.f32.vlgmr.msra.gmra.mxu2 %v2999_v52  ;;  %v3012_v43 = vrot.slane %v2999_v52, 1 }
 0xb2a   : > { %3010 = vst [vmem:[#allocation3] sm:$0xfe] %v3005_v31  ;;  %v2974_v3 = vadd.f32 %v2973_v38, %v2951_v39 }
 0xb2c   : > { %v2997_v2 = vadd.f32 %v2996_v32, %v2974_v3 }
 0xb2e   : > { %v3000_v28 = vmax.f32 %v2997_v2, 0.0 }
 0xb30   : > { %v3006_v48 = vrot.slane %v3000_v28, 7  ;;  %v3013_v1 = vrot.slane %v3000_v28, 1  ;;  %3115 = vmatmul.f32.gmra.mxu2 %v3000_v28 }
 0xb31   : > { %v3019_v41 = vld [vmem:[#allocation3] sm:$0xff] }
 0xb32   : > { %v3007_v15 = vsel %vm268_vm1, %v3005_v31, %v3006_v48  ;;  %v3014_v26 = vsel %vm276_vm0, %v3012_v43, %v3013_v1  ;;  %3018 = vst [vmem:[#allocation3 + $0x10] sm:$0x7f] %v3013_v1  ;;  %3089 = vmatmul.f32.vlgmr.msra.gmra.mxu1 %v3019_v41 }
 0xb33   : > { %3135 = vmatmul.f32.vlgmr.msra.gmra.mxu3 %v3014_v26 }
 0xb39   : > { %v3024_v34 = vld [vmem:[#allocation3 + $0x10] sm:$0xff] }
 0xb3a   : > { %3092 = vmatmul.f32.gmra.mxu1 %v3007_v15 }
 0xb3b   : > { %3138 = vmatmul.f32.gmra.mxu3 %v3024_v34 }
 0xbab   : > { %v3113_v40 = vpop.f32.mrf.mxu2 }
 0xbaf   : > { %v3090_v59 = vpop.f32.mrf.mxu1 }
 0xbb0   : > { %v3091_v7 = vadd.f32 %v5277_v0, %v3090_v59 }
 0xbb2   : > { %v3114_v21 = vadd.f32 %v3113_v40, %v3091_v7 }
 0xbb3   : > { %v3116_v12 = vpop.f32.mrf.mxu2 }
 0xbb6   : > { %v3136_v36 = vpop.f32.mrf.mxu3 }
 0xbb7   : > { %v3093_v42 = vpop.f32.mrf.mxu1  ;;  %v3137_v14 = vadd.f32 %v3136_v36, %v3114_v21 }
 0xbb8   : > { %v3094_v63 = vadd.f32 %v5277_v0, %v3093_v42 }
 0xbb9   : > { %v3144_v10 = vadd.f32 %v3137_v14, %v5745_v46 }
 0xbba   : > { %v3117_v29 = vadd.f32 %v3116_v12, %v3094_v63 }
 0xbbb   : > { %v3150_v24 = vrot.slane %v3144_v10, 7  ;;  %3166 = vst [vmem:[%s241_s17] sm:$0xff] %v3144_v10 }
 0xbbd   : > { %3155 = vst [vmem:[#allocation2 + $0x28] sm:$0xfe] %v3150_v24 }
 0xbbe   : > { %v3139_v44 = vpop.f32.mrf.mxu3 }
 0xbbf   : > { %v3140_v47 = vadd.f32 %v3139_v44, %v3117_v29 }
 0xbc1   : > { %v3145_v45 = vadd.f32 %v3140_v47, %v2857_v5 }
 0xbc3   : > { %v3158_v50 = vrot.slane %v3145_v45, 1  ;;  %3167 = vst [vmem:[%s241_s17 + $0x8] sm:$0xff] %v3145_v45 }
 0xbc5   : > { %3163 = vst [vmem:[#allocation2 + $0x20] sm:$0x7f] %v3158_v50 }
 0xbc6 PF: > { %s16_s18 = sadd.s32 1, %s3319_s18  }
 0xbc7   : > { %p13_p7 = scmp.ge.s32.totalorder %s16_s18, 4  }
 0xbc9   :  { %15 = sbr.rel (!%p13_p7) target bundleno = 1 (0x1), region = 75 }
 0xbce   :  { %3189 = vsyncpa [#allocation5], 1 }
 0xbcf   :  { %3191 = vsyncpa [#allocation5 + $0x1], 1 }

</bundles_post_ra>
